<compile_context>
chip_gen: v7x
topology: tpu7x:2x2x1
jax: 0.10.0
libtpu: 0.0.40
codegen_flags: <defaults>
</compile_context>

<pallas_src>
import functools

import jax
import jax.numpy as jnp
import numpy as np
from jax.experimental import pallas as pl
from jax.experimental.pallas import tpu as pltpu

KERNEL_MUL = 2.0
KERNEL_NUM = 5


def _round_up(x, m):
    return (x + m - 1) // m * m


def _mmd_tile_kernel(nb_ref,              # (kernel_num,) SMEM: -1/(bw * mul^i)
                     a_ref, b_ref,        # (TM, TK), (TN, TK) blocks of `total`
                     sqa_ref, sqb_ref,    # (TM, 1), (1, TN) row squared-norms
                     sga_ref, sgb_ref,    # (TM, 1), (1, TN) signs (+1/-1/0)
                     out_ref,             # (TM, TN) per-i signed accumulator
                     gram_ref,            # (TM, TN) f32 scratch (Gram over k)
                     *, kernel_num):
    j = pl.program_id(1)
    k = pl.program_id(2)
    nk = pl.num_programs(2)

    @pl.when(k == 0)
    def _():
        gram_ref[...] = jnp.zeros_like(gram_ref)

    @pl.when(jnp.logical_and(j == 0, k == 0))
    def _():
        out_ref[...] = jnp.zeros_like(out_ref)

    # Gram tile: A . B^T, contracting the feature axis directly (MXU, no
    # transpose of the operand block is materialized).
    gram_ref[...] += jax.lax.dot_general(
        a_ref[...], b_ref[...],
        dimension_numbers=(((1,), (1,)), ((), ())),
        preferred_element_type=jnp.float32)

    @pl.when(k == nk - 1)
    def _():
        l2 = sqa_ref[...] + sqb_ref[...] - 2.0 * gram_ref[...]
        l2 = jnp.maximum(l2, 0.0)             # guard tiny negatives on the diag
        sign = sga_ref[...] * sgb_ref[...]    # +1 (XX/YY), -1 (XY/YX), 0 (pad)
        ksum = jnp.zeros_like(l2)
        for q in range(kernel_num):
            # exp(-l2 / bw_q) as a VPU multiply by a precomputed SMEM scalar.
            ksum = ksum + jnp.exp(l2 * nb_ref[q])
        out_ref[...] += sign * ksum


def mmd_loss(source, target, kernel_mul=KERNEL_MUL, kernel_num=KERNEL_NUM,
             fix_sigma=None):
    """Pallas TPU implementation of MMD_loss.forward (multi-scale Gaussian MMD).

    source, target: (batch, features) arrays of the same shape.
    Returns a scalar float32 loss.
    """
    assert source.shape == target.shape
    b, d = source.shape
    n = 2 * b

    total = jnp.concatenate([source, target], axis=0).astype(jnp.float32)

    # ---- O(N*D) glue: squared norms, signs, bandwidth ----------------------
    sq = jnp.sum(total * total, axis=1)                       # (N,)
    if fix_sigma is not None:
        bandwidth = jnp.float32(fix_sigma)
    else:
        colsum = jnp.sum(total, axis=0)                       # (D,)
        # sum of all pairwise squared distances, without forming the N x N matrix
        l2_sum = 2.0 * n * jnp.sum(sq) - 2.0 * jnp.sum(colsum * colsum)
        bandwidth = l2_sum / float(n * n - n)
    # NOTE: like the PyTorch reference, bandwidth == 0 (identical inputs) gives NaN.
    bandwidth = bandwidth / (kernel_mul ** (kernel_num // 2))
    powers = kernel_mul ** jnp.arange(kernel_num, dtype=jnp.float32)
    neg_inv_bw = (-1.0 / (bandwidth * powers)).astype(jnp.float32)

    sgn = jnp.concatenate([jnp.ones((b,), jnp.float32),
                           -jnp.ones((b,), jnp.float32)])

    # ---- padding / tiling ---------------------------------------------------
    # 256-wide tiles match the v6e/v7x MXU (2x256^2) and are 128-multiples for
    # v5e; TK <= 512 keeps double-buffered input blocks + accumulators at a few
    # MiB, well inside v7x's 64 MiB VMEM.
    TM = TN = 256
    n_pad = _round_up(n, TM)
    if d <= 512:
        d_pad = _round_up(d, 128)
        TK = d_pad
    else:
        TK = 512
        d_pad = _round_up(d, TK)

    total_p = jnp.zeros((n_pad, d_pad), jnp.float32).at[:n, :d].set(total)
    sq_p = jnp.zeros((n_pad,), jnp.float32).at[:n].set(sq)
    sg_p = jnp.zeros((n_pad,), jnp.float32).at[:n].set(sgn)

    sq_col = sq_p.reshape(n_pad, 1)
    sq_row = sq_p.reshape(1, n_pad)
    sg_col = sg_p.reshape(n_pad, 1)
    sg_row = sg_p.reshape(1, n_pad)

    n_i = n_pad // TM
    n_j = n_pad // TN
    n_k = d_pad // TK

    kernel = functools.partial(_mmd_tile_kernel, kernel_num=kernel_num)

    partial_sums = pl.pallas_call(
        kernel,
        out_shape=jax.ShapeDtypeStruct((n_pad, TN), jnp.float32),
        grid_spec=pltpu.PrefetchScalarGridSpec(
            num_scalar_prefetch=1,
            grid=(n_i, n_j, n_k),
            in_specs=[
                pl.BlockSpec((TM, TK), lambda i, j, k, nb: (i, k)),   # row block
                pl.BlockSpec((TN, TK), lambda i, j, k, nb: (j, k)),   # col block
                pl.BlockSpec((TM, 1), lambda i, j, k, nb: (i, 0)),    # ||x_i||^2
                pl.BlockSpec((1, TN), lambda i, j, k, nb: (0, j)),    # ||x_j||^2
                pl.BlockSpec((TM, 1), lambda i, j, k, nb: (i, 0)),    # sign_i
                pl.BlockSpec((1, TN), lambda i, j, k, nb: (0, j)),    # sign_j
            ],
            out_specs=pl.BlockSpec((TM, TN), lambda i, j, k, nb: (i, 0)),
            scratch_shapes=[pltpu.VMEM((TM, TN), jnp.float32)],
        ),
        compiler_params=pltpu.CompilerParams(
            dimension_semantics=("parallel", "arbitrary", "arbitrary")),
    )(neg_inv_bw, total_p, total_p, sq_col, sq_row, sg_col, sg_row)

    # signed sum == sum(XX) + sum(YY) - sum(XY) - sum(YX); mean over b*b terms.
    return jnp.sum(partial_sums) / jnp.float32(b * b)


def _mmd_loss_ref(source, target, kernel_mul=KERNEL_MUL, kernel_num=KERNEL_NUM):
    # Pure-numpy reference mirroring the PyTorch module.
    source = np.asarray(source, dtype=np.float64)
    target = np.asarray(target, dtype=np.float64)
    b = source.shape[0]
    total = np.concatenate([source, target], axis=0)
    n = total.shape[0]
    diff = total[None, :, :] - total[:, None, :]
    l2 = (diff ** 2).sum(-1)
    bandwidth = l2.sum() / (n * n - n)
    bandwidth /= kernel_mul ** (kernel_num // 2)
    kernels = sum(np.exp(-l2 / (bandwidth * kernel_mul ** i)) for i in range(kernel_num))
    xx = kernels[:b, :b]
    yy = kernels[b:, b:]
    xy = kernels[:b, b:]
    yx = kernels[b:, :b]
    return float(np.mean(xx + yy - xy - yx))


if __name__ == "__main__":
    key = jax.random.PRNGKey(0)
    k1, k2 = jax.random.split(key)
    batch, hidden = 2, 32
    source = jax.random.normal(k1, (batch, hidden), dtype=jnp.float32)
    target = jax.random.normal(k2, (batch, hidden), dtype=jnp.float32) + 0.5

    loss = jax.jit(mmd_loss)(source, target)
    loss = jax.block_until_ready(loss)

    ref = _mmd_loss_ref(source, target)
    assert np.allclose(float(loss), ref, rtol=1e-4, atol=1e-5), (float(loss), ref)
    print("KERNEL_OK")
</pallas_src>

<mosaic_0001>
module attributes {stable_mosaic.version = 11 : i64} {
  func.func @_mmd_tile_kernel(%arg0: i32, %arg1: i32, %arg2: i32, %arg3: memref<5xf32, #tpu.memory_space<smem>>, %arg4: memref<256x128xf32, #tpu.memory_space<vmem>>, %arg5: memref<256x128xf32, #tpu.memory_space<vmem>>, %arg6: memref<256x1xf32, #tpu.memory_space<vmem>>, %arg7: memref<1x256xf32, #tpu.memory_space<vmem>>, %arg8: memref<256x1xf32, #tpu.memory_space<vmem>>, %arg9: memref<1x256xf32, #tpu.memory_space<vmem>>, %arg10: memref<256x256xf32, #tpu.memory_space<vmem>>, %arg11: memref<256x256xf32, #tpu.memory_space<vmem>>) attributes {dimension_semantics = [#tpu.dimension_semantics<parallel>, #tpu.dimension_semantics<arbitrary>, #tpu.dimension_semantics<arbitrary>], iteration_bounds = array<i64: 1, 1, 1>, scalar_prefetch = 1 : i64, scratch_operands = 1 : i64, tpu.core_type = #tpu.core_type<tc>, window_params = [{transform_indices = @transform_0, window_bounds = array<i64: 256, 128>}, {transform_indices = @transform_1, window_bounds = array<i64: 256, 128>}, {transform_indices = @transform_2, window_bounds = array<i64: 256, 1>}, {transform_indices = @transform_3, window_bounds = array<i64: 1, 256>}, {transform_indices = @transform_4, window_bounds = array<i64: 256, 1>}, {transform_indices = @transform_5, window_bounds = array<i64: 1, 256>}, {transform_indices = @transform_6, window_bounds = array<i64: 256, 256>}]} {
    %c0_i32 = arith.constant 0 : i32
    %0 = arith.cmpi eq, %arg2, %c0_i32 : i32
    %1 = arith.extui %0 : i1 to i32
    %c0_i32_0 = arith.constant 0 : i32
    %2 = arith.cmpi ne, %1, %c0_i32_0 : i32
    scf.if %2 {
      %cst_13 = arith.constant 0.000000e+00 : f32
      %17 = vector.broadcast %cst_13 : f32 to vector<256x256xf32>
      %c0_14 = arith.constant 0 : index
      %c0_15 = arith.constant 0 : index
      %18 = vector.load %arg11[%c0_14, %c0_15] : memref<256x256xf32, #tpu.memory_space<vmem>>, vector<256x256xf32>
      tpu.vector_store %arg11[%c0_14, %c0_15], %17 {strides = array<i32>} : memref<256x256xf32, #tpu.memory_space<vmem>>, vector<256x256xf32>,
    } else {
    }
    %c0_i32_1 = arith.constant 0 : i32
    %3 = arith.cmpi eq, %arg1, %c0_i32_1 : i32
    %c0_i32_2 = arith.constant 0 : i32
    %4 = arith.cmpi eq, %arg2, %c0_i32_2 : i32
    %5 = arith.andi %3, %4 : i1
    %6 = arith.extui %5 : i1 to i32
    %c0_i32_3 = arith.constant 0 : i32
    %7 = arith.cmpi ne, %6, %c0_i32_3 : i32
    scf.if %7 {
      %cst_13 = arith.constant 0.000000e+00 : f32
      %17 = vector.broadcast %cst_13 : f32 to vector<256x256xf32>
      %c0_14 = arith.constant 0 : index
      %c0_15 = arith.constant 0 : index
      %18 = vector.load %arg10[%c0_14, %c0_15] : memref<256x256xf32, #tpu.memory_space<vmem>>, vector<256x256xf32>
      tpu.vector_store %arg10[%c0_14, %c0_15], %17 {strides = array<i32>} : memref<256x256xf32, #tpu.memory_space<vmem>>, vector<256x256xf32>,
    } else {
    }
    %c0 = arith.constant 0 : index
    %c0_4 = arith.constant 0 : index
    %8 = vector.load %arg11[%c0, %c0_4] : memref<256x256xf32, #tpu.memory_space<vmem>>, vector<256x256xf32>
    %c0_5 = arith.constant 0 : index
    %c0_6 = arith.constant 0 : index
    %9 = vector.load %arg4[%c0_5, %c0_6] : memref<256x128xf32, #tpu.memory_space<vmem>>, vector<256x128xf32>
    %c0_7 = arith.constant 0 : index
    %c0_8 = arith.constant 0 : index
    %10 = vector.load %arg5[%c0_7, %c0_8] : memref<256x128xf32, #tpu.memory_space<vmem>>, vector<256x128xf32>
    %cst = arith.constant dense<0.000000e+00> : vector<256x256xf32>
    %11 = tpu.matmul %9, %10, %cst {dimension_numbers = #tpu.dot_dimension_numbers<[1], [1], [0], [0], [0, 0, 1, 0], [], []>} : vector<256x128xf32>, vector<256x128xf32>, vector<256x256xf32> -> vector<256x256xf32>
    %12 = arith.addf %8, %11 : vector<256x256xf32>
    %c0_9 = arith.constant 0 : index
    %c0_10 = arith.constant 0 : index
    %13 = vector.load %arg11[%c0_9, %c0_10] : memref<256x256xf32, #tpu.memory_space<vmem>>, vector<256x256xf32>
    tpu.vector_store %arg11[%c0_9, %c0_10], %12 {strides = array<i32>} : memref<256x256xf32, #tpu.memory_space<vmem>>, vector<256x256xf32>,
    %c0_i32_11 = arith.constant 0 : i32
    %14 = arith.cmpi eq, %arg2, %c0_i32_11 : i32
    %15 = arith.extui %14 : i1 to i32
    %c0_i32_12 = arith.constant 0 : i32
    %16 = arith.cmpi ne, %15, %c0_i32_12 : i32
    scf.if %16 {
      %c0_13 = arith.constant 0 : index
      %c0_14 = arith.constant 0 : index
      %17 = vector.load %arg6[%c0_13, %c0_14] : memref<256x1xf32, #tpu.memory_space<vmem>>, vector<256x1xf32>
      %c0_15 = arith.constant 0 : index
      %c0_16 = arith.constant 0 : index
      %18 = vector.load %arg7[%c0_15, %c0_16] : memref<1x256xf32, #tpu.memory_space<vmem>>, vector<1x256xf32>
      %19 = vector.broadcast %17 : vector<256x1xf32> to vector<256x256xf32>
      %20 = vector.broadcast %18 : vector<1x256xf32> to vector<256x256xf32>
      %21 = arith.addf %19, %20 : vector<256x256xf32>
      %c0_17 = arith.constant 0 : index
      %c0_18 = arith.constant 0 : index
      %22 = vector.load %arg11[%c0_17, %c0_18] : memref<256x256xf32, #tpu.memory_space<vmem>>, vector<256x256xf32>
      %cst_19 = arith.constant 2.000000e+00 : f32
      %23 = vector.broadcast %cst_19 : f32 to vector<256x256xf32>
      %24 = arith.mulf %23, %22 : vector<256x256xf32>
      %25 = arith.subf %21, %24 : vector<256x256xf32>
      %cst_20 = arith.constant 0.000000e+00 : f32
      %26 = vector.broadcast %cst_20 : f32 to vector<256x256xf32>
      %27 = arith.maximumf %25, %26 : vector<256x256xf32>
      %c0_21 = arith.constant 0 : index
      %c0_22 = arith.constant 0 : index
      %28 = vector.load %arg8[%c0_21, %c0_22] : memref<256x1xf32, #tpu.memory_space<vmem>>, vector<256x1xf32>
      %c0_23 = arith.constant 0 : index
      %c0_24 = arith.constant 0 : index
      %29 = vector.load %arg9[%c0_23, %c0_24] : memref<1x256xf32, #tpu.memory_space<vmem>>, vector<1x256xf32>
      %30 = vector.broadcast %28 : vector<256x1xf32> to vector<256x256xf32>
      %31 = vector.broadcast %29 : vector<1x256xf32> to vector<256x256xf32>
      %32 = arith.mulf %30, %31 : vector<256x256xf32>
      %cst_25 = arith.constant 0.000000e+00 : f32
      %33 = vector.broadcast %cst_25 : f32 to vector<256x256xf32>
      %c0_26 = arith.constant 0 : index
      %34 = memref.load %arg3[%c0_26] : memref<5xf32, #tpu.memory_space<smem>>
      %35 = vector.broadcast %34 : f32 to vector<256x256xf32>
      %36 = arith.mulf %27, %35 : vector<256x256xf32>
      %37 = math.exp %36 : vector<256x256xf32>
      %38 = arith.addf %33, %37 : vector<256x256xf32>
      %c1 = arith.constant 1 : index
      %39 = memref.load %arg3[%c1] : memref<5xf32, #tpu.memory_space<smem>>
      %40 = vector.broadcast %39 : f32 to vector<256x256xf32>
      %41 = arith.mulf %27, %40 : vector<256x256xf32>
      %42 = math.exp %41 : vector<256x256xf32>
      %43 = arith.addf %38, %42 : vector<256x256xf32>
      %c2 = arith.constant 2 : index
      %44 = memref.load %arg3[%c2] : memref<5xf32, #tpu.memory_space<smem>>
      %45 = vector.broadcast %44 : f32 to vector<256x256xf32>
      %46 = arith.mulf %27, %45 : vector<256x256xf32>
      %47 = math.exp %46 : vector<256x256xf32>
      %48 = arith.addf %43, %47 : vector<256x256xf32>
      %c3 = arith.constant 3 : index
      %49 = memref.load %arg3[%c3] : memref<5xf32, #tpu.memory_space<smem>>
      %50 = vector.broadcast %49 : f32 to vector<256x256xf32>
      %51 = arith.mulf %27, %50 : vector<256x256xf32>
      %52 = math.exp %51 : vector<256x256xf32>
      %53 = arith.addf %48, %52 : vector<256x256xf32>
      %c4 = arith.constant 4 : index
      %54 = memref.load %arg3[%c4] : memref<5xf32, #tpu.memory_space<smem>>
      %55 = vector.broadcast %54 : f32 to vector<256x256xf32>
      %56 = arith.mulf %27, %55 : vector<256x256xf32>
      %57 = math.exp %56 : vector<256x256xf32>
      %58 = arith.addf %53, %57 : vector<256x256xf32>
      %c0_27 = arith.constant 0 : index
      %c0_28 = arith.constant 0 : index
      %59 = vector.load %arg10[%c0_27, %c0_28] : memref<256x256xf32, #tpu.memory_space<vmem>>, vector<256x256xf32>
      %60 = arith.mulf %32, %58 : vector<256x256xf32>
      %61 = arith.addf %59, %60 : vector<256x256xf32>
      %c0_29 = arith.constant 0 : index
      %c0_30 = arith.constant 0 : index
      %62 = vector.load %arg10[%c0_29, %c0_30] : memref<256x256xf32, #tpu.memory_space<vmem>>, vector<256x256xf32>
      tpu.vector_store %arg10[%c0_29, %c0_30], %61 {strides = array<i32>} : memref<256x256xf32, #tpu.memory_space<vmem>>, vector<256x256xf32>,
    } else {
    }
    return
  }
  func.func @transform_0(%arg0: i32, %arg1: i32, %arg2: i32, %arg3: memref<5xf32, #tpu.memory_space<smem>>) -> (i32, i32) {
    %c0_i32 = arith.constant 0 : i32
    return %arg0, %arg2 : i32, i32
  }
  func.func @transform_1(%arg0: i32, %arg1: i32, %arg2: i32, %arg3: memref<5xf32, #tpu.memory_space<smem>>) -> (i32, i32) {
    %c0_i32 = arith.constant 0 : i32
    return %arg1, %arg2 : i32, i32
  }
  func.func @transform_2(%arg0: i32, %arg1: i32, %arg2: i32, %arg3: memref<5xf32, #tpu.memory_space<smem>>) -> (i32, i32) {
    %c0_i32 = arith.constant 0 : i32
    %c0_i32_0 = arith.constant 0 : i32
    return %arg0, %c0_i32 : i32, i32
  }
  func.func @transform_3(%arg0: i32, %arg1: i32, %arg2: i32, %arg3: memref<5xf32, #tpu.memory_space<smem>>) -> (i32, i32) {
    %c0_i32 = arith.constant 0 : i32
    %c0_i32_0 = arith.constant 0 : i32
    return %c0_i32, %arg1 : i32, i32
  }
  func.func @transform_4(%arg0: i32, %arg1: i32, %arg2: i32, %arg3: memref<5xf32, #tpu.memory_space<smem>>) -> (i32, i32) {
    %c0_i32 = arith.constant 0 : i32
    %c0_i32_0 = arith.constant 0 : i32
    return %arg0, %c0_i32 : i32, i32
  }
  func.func @transform_5(%arg0: i32, %arg1: i32, %arg2: i32, %arg3: memref<5xf32, #tpu.memory_space<smem>>) -> (i32, i32) {
    %c0_i32 = arith.constant 0 : i32
    %c0_i32_0 = arith.constant 0 : i32
    return %c0_i32, %arg1 : i32, i32
  }
  func.func @transform_6(%arg0: i32, %arg1: i32, %arg2: i32, %arg3: memref<5xf32, #tpu.memory_space<smem>>) -> (i32, i32) {
    %c0_i32 = arith.constant 0 : i32
    %c0_i32_0 = arith.constant 0 : i32
    return %arg0, %c0_i32 : i32, i32
  }
}

</mosaic_0001>

<bundles_post_ra>
// kernel: mmd_loss.1
= control target key start
LH: loop header
LB: loop body
LE: loop exit
PB: predicated region body
PF: predicated region fallthrough
CT: control target
= control target key end

     0   :  { %s5592_s0 = inlined_call_operand.vmem [shape: f32[5], index: 0, kind: input, shape index: {}]   ;;  %s5593_s1 = inlined_call_operand.vmem [shape: f32[256,128], index: 1, kind: input, shape index: {}, may-alias: {1,2}]   ;;  %s5594_s2 = inlined_call_operand.vmem [shape: f32[256,128], index: 2, kind: input, shape index: {}, may-alias: {1,2}]   ;;  %s5595_s3 = inlined_call_operand.vmem [shape: f32[256,1], index: 3, kind: input, shape index: {}]   ;;  %s5596_s4 = inlined_call_operand.vmem [shape: f32[1,256], index: 4, kind: input, shape index: {}]   ;;  %s5597_s5 = inlined_call_operand.vmem [shape: f32[256,1], index: 5, kind: input, shape index: {}]   ;;  %s5598_s6 = inlined_call_operand.vmem [shape: f32[1,256], index: 6, kind: input, shape index: {}]   ;;  %s5599_s7 = inlined_call_operand.vmem [shape: f32[256,256], index: 7, kind: output, shape index: {}]  }
   0x1   :  { %s12_s26 = sshll.u32 %s5592_s0, 4  ;;  %s13_s26 = int_to_ptr.vmem [resolvable:$true] %s12_s26 }
   0x2   :  { %s3818_s27 = scalar_lea.vmem %s13_s26, 16  ;;  %p3823_p1 = scmp.lt.s32.totalorder %s13_s26, %s13_s26 }
   0x3   :  { %p3819_p0 = scmp.ne.s32.totalorder %s13_s26, %s3818_s27  ;;  %p3824_p2 = scmp.lt.s32.totalorder %s3818_s27, %s3818_s27 }
   0x5   :  { %p3825_p3 = por %p3824_p2, %p3823_p1 }
   0x7   :  { %p3826_p4 = pnand %p3825_p3, %p3819_p0 }
   0x9   :  { %3829 = shalt.err (!%p3826_p4)  }
   0xa   :  { %s3832_s28 = smov [#allocation4]  }
   0xb   :  { %15 = dma.vmem_to_smem %s13_s26, 16, %s3832_s28, [#allocation3] }
   0xc   :  { %3830 = dma.done.wait [#allocation3], 16 }
   0xd   :  { %3831 = vsyncadd [#allocation3], 4294967280 }
   0xe   :  { %17 = sfence }
   0xf   :  { %v685_v0 = vld [vmem:[%s5595_s3 + $0x10] sm:$0xff]  ;;  %v683_v1 = vld [vmem:[%s5595_s3] sm:$0xff]  ;;  %v3833_v3 = vmov 0   ;;  %v280_v4 = vld [vmem:[%s5594_s2 + $0x88] sm:$0xff]  ;;  %s3025_s12 = sld [smem:[#allocation4 + $0x1]]  ;;  %s3026_s13 = sld [smem:[#allocation4 + $0x2]] }
  0x10   :  { %v279_v2 = vld [vmem:[%s5594_s2 + $0x80] sm:$0xff]  ;;  %3177 = vset.pattern.permute.xlu1 %v3833_v3  ;;  %3176 = vset.pattern.permute.xlu0 %v3833_v3  ;;  %v264_v6 = vld [vmem:[%s5594_s2 + $0x8] sm:$0xff]  ;;  %v686_v9 = vld [vmem:[%s5595_s3 + $0x18] sm:$0xff]  ;;  %s3027_s14 = sld [smem:[#allocation4 + $0x3]]  ;;  %s3028_s15 = sld [smem:[#allocation4 + $0x4]] }
  0x11   :  { %v263_v5 = vld [vmem:[%s5594_s2] sm:$0xff]  ;;  %728 = vperm.xlu1 %3177, %v685_v0   ;;  %718 = vperm.xlu0 %3176, %v683_v1   ;;  %v3125_v7 = vpack.c.bf16 %v280_v4, %v279_v2  ;;  %v684_v10 = vld [vmem:[%s5595_s3 + $0x8] sm:$0xff]  ;;  %v281_v11 = vld [vmem:[%s5594_s2 + $0x90] sm:$0xff] }
  0x12   :  { %v3127_v8 = vpack.c.bf16 %v264_v6, %v263_v5  ;;  %v282_v12 = vld [vmem:[%s5594_s2 + $0x98] sm:$0xff]  ;;  %v265_v14 = vld [vmem:[%s5594_s2 + $0x10] sm:$0xff]  ;;  %v688_v16 = vld [vmem:[%s5595_s3 + $0x28] sm:$0xff] }
  0x13   :  { %3126 = vmatprep.subr.bf16.mxu0 %v3125_v7  ;;  %3157 = vmatprep.subr.bf16.mxu1 %v3125_v7  ;;  %v3129_v13 = vpack.c.bf16 %v282_v12, %v281_v11  ;;  %v266_v15 = vld [vmem:[%s5594_s2 + $0x18] sm:$0xff]  ;;  %v687_v17 = vld [vmem:[%s5595_s3 + $0x20] sm:$0xff]  ;;  %v284_v19 = vld [vmem:[%s5594_s2 + $0xa8] sm:$0xff] }
  0x14   :  { %3128 = vmatpush3.bf16.xpose.msra.mxu0 %v3127_v8  ;;  %3165 = vmatpush3.bf16.xpose.msra.mxu1 %v3127_v8  ;;  %v283_v18 = vld [vmem:[%s5594_s2 + $0xa0] sm:$0xff]  ;;  %v3131_v20 = vpack.c.bf16 %v266_v15, %v265_v14  ;;  %v690_v21 = vld [vmem:[%s5595_s3 + $0x38] sm:$0xff]  ;;  %v689_v22 = vld [vmem:[%s5595_s3 + $0x30] sm:$0xff] }
  0x15   :  { %733 = vperm.xlu1 %3177, %v686_v9   ;;  %723 = vperm.xlu0 %3176, %v684_v10   ;;  %v3133_v23 = vpack.c.bf16 %v284_v19, %v283_v18  ;;  %v267_v24 = vld [vmem:[%s5594_s2 + $0x20] sm:$0xff]  ;;  %v268_v25 = vld [vmem:[%s5594_s2 + $0x28] sm:$0xff]  ;;  %v285_v28 = vld [vmem:[%s5594_s2 + $0xb0] sm:$0xff] }
  0x16   :  { %3130 = vmatprep.subr.bf16.mxu0 %v3129_v13  ;;  %3158 = vmatprep.subr.bf16.mxu1 %v3129_v13  ;;  %v692_v26 = vld [vmem:[%s5595_s3 + $0x48] sm:$0xff]  ;;  %v691_v27 = vld [vmem:[%s5595_s3 + $0x40] sm:$0xff]  ;;  %v286_v29 = vld [vmem:[%s5594_s2 + $0xb8] sm:$0xff]  ;;  %v3135_v30 = vpack.c.bf16 %v268_v25, %v267_v24 }
  0x17   :  { %v694_v31 = vld [vmem:[%s5595_s3 + $0x58] sm:$0xff]  ;;  %v693_v32 = vld [vmem:[%s5595_s3 + $0x50] sm:$0xff]  ;;  %v3137_v33 = vpack.c.bf16 %v286_v29, %v285_v28  ;;  %v3964_v36 = vld [vmem:[%s5593_s1] sm:$0xff] }
  0x18   :  { %v269_v34 = vld [vmem:[%s5594_s2 + $0x30] sm:$0xff]  ;;  %v270_v35 = vld [vmem:[%s5594_s2 + $0x38] sm:$0xff]  ;;  %v3969_v37 = vld [vmem:[%s5593_s1 + $0x80] sm:$0xff]  ;;  %3061 = vmatprep.mubr.f32.mxu0 %v3964_v36 }
  0x19   :  { %743 = vperm.xlu1 %3177, %v688_v16   ;;  %738 = vperm.xlu0 %3176, %v687_v17   ;;  %v696_v38 = vld [vmem:[%s5595_s3 + $0x68] sm:$0xff]  ;;  %v695_v39 = vld [vmem:[%s5595_s3 + $0x60] sm:$0xff]  ;;  %v3139_v42 = vpack.c.bf16 %v270_v35, %v269_v34  ;;  %v698_v43 = vld [vmem:[%s5595_s3 + $0x78] sm:$0xff] }
  0x1a   :  { %v287_v40 = vld [vmem:[%s5594_s2 + $0xc0] sm:$0xff]  ;;  %v288_v41 = vld [vmem:[%s5594_s2 + $0xc8] sm:$0xff]  ;;  %3093 = vmatprep.mubr.f32.mxu1 %v3969_v37  ;;  %v697_v44 = vld [vmem:[%s5595_s3 + $0x70] sm:$0xff] }
  0x1b   :  { %v3141_v45 = vpack.c.bf16 %v288_v41, %v287_v40  ;;  %v271_v46 = vld [vmem:[%s5594_s2 + $0x40] sm:$0xff]  ;;  %v272_v47 = vld [vmem:[%s5594_s2 + $0x48] sm:$0xff]  ;;  %v289_v50 = vld [vmem:[%s5594_s2 + $0xd0] sm:$0xff] }
  0x1c   :  { %3132 = vmatpush3.bf16.xpose.msra.mxu0 %v3131_v20  ;;  %3166 = vmatpush3.bf16.xpose.msra.mxu1 %v3131_v20  ;;  %v700_v48 = vld [vmem:[%s5595_s3 + $0x88] sm:$0xff]  ;;  %v699_v49 = vld [vmem:[%s5595_s3 + $0x80] sm:$0xff]  ;;  %v290_v51 = vld [vmem:[%s5594_s2 + $0xd8] sm:$0xff]  ;;  %v3143_v52 = vpack.c.bf16 %v272_v47, %v271_v46 }
  0x1d   :  { %753 = vperm.xlu1 %3177, %v690_v21   ;;  %748 = vperm.xlu0 %3176, %v689_v22   ;;  %v702_v53 = vld [vmem:[%s5595_s3 + $0x98] sm:$0xff]  ;;  %v701_v54 = vld [vmem:[%s5595_s3 + $0x90] sm:$0xff]  ;;  %v3145_v55 = vpack.c.bf16 %v290_v51, %v289_v50  ;;  %v704_v58 = vld [vmem:[%s5595_s3 + $0xa8] sm:$0xff] }
  0x1e   :  { %3134 = vmatprep.subr.bf16.mxu0 %v3133_v23  ;;  %3159 = vmatprep.subr.bf16.mxu1 %v3133_v23  ;;  %v273_v56 = vld [vmem:[%s5594_s2 + $0x50] sm:$0xff]  ;;  %v274_v57 = vld [vmem:[%s5594_s2 + $0x58] sm:$0xff]  ;;  %v703_v59 = vld [vmem:[%s5595_s3 + $0xa0] sm:$0xff] }
  0x1f   :  { %v291_v60 = vld [vmem:[%s5594_s2 + $0xe0] sm:$0xff]  ;;  %v292_v61 = vld [vmem:[%s5594_s2 + $0xe8] sm:$0xff]  ;;  %v3147_v62 = vpack.c.bf16 %v274_v57, %v273_v56  ;;  %v706_v63 = vld [vmem:[%s5595_s3 + $0xb8] sm:$0xff] }
  0x20   :  { %v705_v0 = vld [vmem:[%s5595_s3 + $0xb0] sm:$0xff]  ;;  %v3149_v1 = vpack.c.bf16 %v292_v61, %v291_v60  ;;  %v275_v2 = vld [vmem:[%s5594_s2 + $0x60] sm:$0xff]  ;;  %v276_v3 = vld [vmem:[%s5594_s2 + $0x68] sm:$0xff] }
  0x21   :  { %763 = vperm.xlu1 %3177, %v692_v26   ;;  %758 = vperm.xlu0 %3176, %v691_v27   ;;  %v708_v4 = vld [vmem:[%s5595_s3 + $0xc8] sm:$0xff]  ;;  %v707_v5 = vld [vmem:[%s5595_s3 + $0xc0] sm:$0xff]  ;;  %v293_v6 = vld [vmem:[%s5594_s2 + $0xf0] sm:$0xff]  ;;  %v3151_v8 = vpack.c.bf16 %v276_v3, %v275_v2 }
  0x22   :  { %v294_v7 = vld [vmem:[%s5594_s2 + $0xf8] sm:$0xff]  ;;  %v709_v10 = vld [vmem:[%s5595_s3 + $0xd0] sm:$0xff]  ;;  %v712_v14 = vld [vmem:[%s5595_s3 + $0xe8] sm:$0xff] }
  0x23   :  { %v710_v9 = vld [vmem:[%s5595_s3 + $0xd8] sm:$0xff]  ;;  %v3153_v11 = vpack.c.bf16 %v294_v7, %v293_v6  ;;  %v277_v12 = vld [vmem:[%s5594_s2 + $0x70] sm:$0xff]  ;;  %v711_v15 = vld [vmem:[%s5595_s3 + $0xe0] sm:$0xff] }
  0x24   :  { %3136 = vmatpush3.bf16.xpose.msra.mxu0 %v3135_v30  ;;  %3167 = vmatpush3.bf16.xpose.msra.mxu1 %v3135_v30  ;;  %v278_v13 = vld [vmem:[%s5594_s2 + $0x78] sm:$0xff]  ;;  %v713_v18 = vld [vmem:[%s5595_s3 + $0xf0] sm:$0xff]  ;;  %v1208_v19 = vld [vmem:[%s5597_s5 + $0x8] sm:$0xff] }
  0x25   :  { %773 = vperm.xlu1 %3177, %v694_v31   ;;  %768 = vperm.xlu0 %3176, %v693_v32   ;;  %v3155_v16 = vpack.c.bf16 %v278_v13, %v277_v12  ;;  %v714_v17 = vld [vmem:[%s5595_s3 + $0xf8] sm:$0xff]  ;;  %v1207_v20 = vld [vmem:[%s5597_s5] sm:$0xff]  ;;  %v232_v21 = vld [vmem:[%s5593_s1 + $0x8] sm:$0xff] }
  0x26   :  { %3138 = vmatprep.subr.bf16.mxu0 %v3137_v33  ;;  %3160 = vmatprep.subr.bf16.mxu1 %v3137_v33  ;;  %v248_v22 = vld [vmem:[%s5593_s1 + $0x88] sm:$0xff]  ;;  %v1210_v23 = vld [vmem:[%s5597_s5 + $0x18] sm:$0xff]  ;;  %v1209_v24 = vld [vmem:[%s5597_s5 + $0x10] sm:$0xff] }
  0x27   :  { %v233_v25 = vld [vmem:[%s5593_s1 + $0x10] sm:$0xff]  ;;  %v1212_v27 = vld [vmem:[%s5597_s5 + $0x28] sm:$0xff]  ;;  %v1211_v28 = vld [vmem:[%s5597_s5 + $0x20] sm:$0xff] }
  0x28   :  { %v249_v26 = vld [vmem:[%s5593_s1 + $0x90] sm:$0xff]  ;;  %v234_v29 = vld [vmem:[%s5593_s1 + $0x18] sm:$0xff]  ;;  %v235_v33 = vld [vmem:[%s5593_s1 + $0x20] sm:$0xff] }
  0x29   :  { %783 = vperm.xlu1 %3177, %v696_v38   ;;  %778 = vperm.xlu0 %3176, %v695_v39   ;;  %v250_v30 = vld [vmem:[%s5593_s1 + $0x98] sm:$0xff]  ;;  %v1213_v32 = vld [vmem:[%s5597_s5 + $0x30] sm:$0xff]  ;;  %v251_v34 = vld [vmem:[%s5593_s1 + $0xa0] sm:$0xff] }
  0x2a   :  { %v1214_v31 = vld [vmem:[%s5597_s5 + $0x38] sm:$0xff]  ;;  %v1216_v35 = vld [vmem:[%s5597_s5 + $0x48] sm:$0xff]  ;;  %v1217_v40 = vld [vmem:[%s5597_s5 + $0x50] sm:$0xff] }
  0x2b   :  { %v252_v38 = vld [vmem:[%s5593_s1 + $0xa8] sm:$0xff]  ;;  %v1218_v39 = vld [vmem:[%s5597_s5 + $0x58] sm:$0xff]  ;;  %v237_v41 = vld [vmem:[%s5593_s1 + $0x30] sm:$0xff] }
  0x2c   :  { %3140 = vmatpush3.bf16.xpose.msra.mxu0 %v3139_v42  ;;  %3168 = vmatpush3.bf16.xpose.msra.mxu1 %v3139_v42  ;;  %v253_v42 = vld [vmem:[%s5593_s1 + $0xb0] sm:$0xff]  ;;  %v254_v46 = vld [vmem:[%s5593_s1 + $0xb8] sm:$0xff]  ;;  %v255_v50 = vld [vmem:[%s5593_s1 + $0xc0] sm:$0xff] }
  0x2d   :  { %793 = vperm.xlu1 %3177, %v698_v43   ;;  %788 = vperm.xlu0 %3176, %v697_v44   ;;  %v1220_v43 = vld [vmem:[%s5597_s5 + $0x68] sm:$0xff]  ;;  %v1219_v44 = vld [vmem:[%s5597_s5 + $0x60] sm:$0xff]  ;;  %v1222_v47 = vld [vmem:[%s5597_s5 + $0x78] sm:$0xff] }
  0x2e   :  { %3142 = vmatprep.subr.bf16.mxu0 %v3141_v45  ;;  %3161 = vmatprep.subr.bf16.mxu1 %v3141_v45  ;;  %v238_v45 = vld [vmem:[%s5593_s1 + $0x38] sm:$0xff]  ;;  %v1224_v51 = vld [vmem:[%s5597_s5 + $0x88] sm:$0xff]  ;;  %v1225_v56 = vld [vmem:[%s5597_s5 + $0x90] sm:$0xff] }
  0x2f   :  { %v241_v57 = vld [vmem:[%s5593_s1 + $0x50] sm:$0xff]  ;;  %v1227_v60 = vld [vmem:[%s5597_s5 + $0xa0] sm:$0xff]  ;;  %v242_v61 = vld [vmem:[%s5593_s1 + $0x58] sm:$0xff] }
  0x30   :  { %v259_v2 = vld [vmem:[%s5593_s1 + $0xe0] sm:$0xff]  ;;  %v1232_v3 = vld [vmem:[%s5597_s5 + $0xc8] sm:$0xff]  ;;  %v1234_v7 = vld [vmem:[%s5597_s5 + $0xd8] sm:$0xff] }
  0x31   :  { %803 = vperm.xlu1 %3177, %v700_v48   ;;  %798 = vperm.xlu0 %3176, %v699_v49   ;;  %v1221_v48 = vld [vmem:[%s5597_s5 + $0x70] sm:$0xff]  ;;  %v239_v49 = vld [vmem:[%s5593_s1 + $0x40] sm:$0xff]  ;;  %v260_v6 = vld [vmem:[%s5593_s1 + $0xe8] sm:$0xff] }
  0x32   :  { %v1236_v12 = vld [vmem:[%s5597_s5 + $0xe8] sm:$0xff]  ;;  %v1235_v13 = vld [vmem:[%s5597_s5 + $0xe0] sm:$0xff] }
  0x34   :  { %3144 = vmatpush3.bf16.xpose.msra.mxu0 %v3143_v52  ;;  %3169 = vmatpush3.bf16.xpose.msra.mxu1 %v3143_v52  ;;  %v1223_v52 = vld [vmem:[%s5597_s5 + $0x80] sm:$0xff] }
  0x35   :  { %813 = vperm.xlu1 %3177, %v702_v53   ;;  %808 = vperm.xlu0 %3176, %v701_v54   ;;  %v240_v53 = vld [vmem:[%s5593_s1 + $0x48] sm:$0xff] }
  0x36   :  { %3146 = vmatprep.subr.bf16.mxu0 %v3145_v55  ;;  %3162 = vmatprep.subr.bf16.mxu1 %v3145_v55  ;;  %v256_v54 = vld [vmem:[%s5593_s1 + $0xc8] sm:$0xff]  ;;  %v1226_v55 = vld [vmem:[%s5597_s5 + $0x98] sm:$0xff] }
  0x39   :  { %823 = vperm.xlu1 %3177, %v704_v58   ;;  %818 = vperm.xlu0 %3176, %v703_v59   ;;  %v257_v58 = vld [vmem:[%s5593_s1 + $0xd0] sm:$0xff]  ;;  %v1228_v59 = vld [vmem:[%s5597_s5 + $0xa8] sm:$0xff] }
  0x3c   :  { %3148 = vmatpush3.bf16.xpose.msra.mxu0 %v3147_v62  ;;  %3170 = vmatpush3.bf16.xpose.msra.mxu1 %v3147_v62  ;;  %v258_v62 = vld [vmem:[%s5593_s1 + $0xd8] sm:$0xff] }
  0x3d   :  { %833 = vperm.xlu1 %3177, %v706_v63   ;;  %828 = vperm.xlu0 %3176, %v705_v0   ;;  %v1230_v63 = vld [vmem:[%s5597_s5 + $0xb8] sm:$0xff]  ;;  %v1229_v0 = vld [vmem:[%s5597_s5 + $0xb0] sm:$0xff] }
  0x3e   :  { %3150 = vmatprep.subr.bf16.mxu0 %v3149_v1  ;;  %3163 = vmatprep.subr.bf16.mxu1 %v3149_v1  ;;  %v243_v1 = vld [vmem:[%s5593_s1 + $0x60] sm:$0xff] }
  0x41   :  { %843 = vperm.xlu1 %3177, %v708_v4   ;;  %838 = vperm.xlu0 %3176, %v707_v5   ;;  %v1231_v4 = vld [vmem:[%s5597_s5 + $0xc0] sm:$0xff]  ;;  %v244_v5 = vld [vmem:[%s5593_s1 + $0x68] sm:$0xff] }
  0x44   :  { %3152 = vmatpush3.bf16.xpose.msra.mxu0 %v3151_v8  ;;  %3171 = vmatpush3.bf16.xpose.msra.mxu1 %v3151_v8  ;;  %v1233_v8 = vld [vmem:[%s5597_s5 + $0xd0] sm:$0xff] }
  0x45   :  { %853 = vperm.xlu1 %3177, %v710_v9   ;;  %848 = vperm.xlu0 %3176, %v709_v10   ;;  %v245_v9 = vld [vmem:[%s5593_s1 + $0x70] sm:$0xff] }
  0x46   :  { %3154 = vmatprep.subr.bf16.mxu0 %v3153_v11  ;;  %3164 = vmatprep.subr.bf16.mxu1 %v3153_v11  ;;  %v261_v10 = vld [vmem:[%s5593_s1 + $0xf0] sm:$0xff]  ;;  %v877_v11 = vlaneseq }
  0x49   :  { %863 = vperm.xlu1 %3177, %v712_v14   ;;  %858 = vperm.xlu0 %3176, %v711_v15   ;;  %v246_v14 = vld [vmem:[%s5593_s1 + $0x78] sm:$0xff] }
  0x4a   :  { %v262_v15 = vld [vmem:[%s5593_s1 + $0xf8] sm:$0xff] }
  0x4c   :  { %3156 = vmatpush3.bf16.xpose.msra.mxu0 %v3155_v16  ;;  %3172 = vmatpush3.bf16.xpose.msra.mxu1 %v3155_v16  ;;  %v4263_v16 = vshrl.u32 %v877_v11, 7 }
  0x4d   :  { %873 = vperm.xlu1 %3177, %v714_v17   ;;  %868 = vperm.xlu0 %3176, %v713_v18   ;;  %v1238_v17 = vld [vmem:[%s5597_s5 + $0xf8] sm:$0xff]  ;;  %v1237_v18 = vld [vmem:[%s5597_s5 + $0xf0] sm:$0xff] }
  0x51   :  { %1247 = vperm.xlu1 %3177, %v1208_v19   ;;  %1242 = vperm.xlu0 %3176, %v1207_v20   ;;  %v5601_v19 = vsub.s32 0, %v4263_v16  ;;  %v5600_v20 = vsub.s32 1, %v4263_v16 }
  0x53   :  { %3062 = vmatmul.mubr.f32.vlgmr.msra.gmra.mrb[0].mxu0 %v3964_v36  ;;  %3094 = vmatmul.mubr.f32.vlgmr.msra.gmra.mrb[0].mxu1 %v3969_v37  ;;  %v1215_v36 = vld [vmem:[%s5597_s5 + $0x40] sm:$0xff]  ;;  %v236_v37 = vld [vmem:[%s5593_s1 + $0x28] sm:$0xff] }
  0x54   :  { %3063 = vmatprep.mubr.f32.mxu0 %v232_v21  ;;  %3095 = vmatprep.mubr.f32.mxu1 %v248_v22 }
  0x55   :  { %1257 = vperm.xlu1 %3177, %v1210_v23   ;;  %1252 = vperm.xlu0 %3176, %v1209_v24  }
  0x57   :  { %3064 = vmatmul.mubr.f32.gmra.mrb[2].mxu0 %v232_v21  ;;  %3096 = vmatmul.mubr.f32.gmra.mrb[2].mxu1 %v248_v22  ;;  %v715_v21 = vld [vmem:[%s5596_s4] sm:$0x3] }
  0x58   :  { %3065 = vmatprep.mubr.f32.mxu0 %v233_v25  ;;  %3097 = vmatprep.mubr.f32.mxu1 %v249_v26  ;;  %v4282_v24 = vrot.slane %v715_v21, %v5601_v19 }
  0x59   :  { %1267 = vperm.xlu1 %3177, %v1212_v27   ;;  %1262 = vperm.xlu0 %3176, %v1211_v28  }
  0x5b   :  { %3066 = vmatmul.mubr.f32.gmra.mrb[4].mxu0 %v233_v25  ;;  %3098 = vmatmul.mubr.f32.gmra.mrb[4].mxu1 %v249_v26  ;;  %v4286_v25 = vrot.slane %v715_v21, %v5600_v20 }
  0x5c   :  { %3067 = vmatprep.mubr.f32.mxu0 %v234_v29  ;;  %3099 = vmatprep.mubr.f32.mxu1 %v250_v30 }
  0x5d   :  { %1277 = vperm.xlu1 %3177, %v1214_v31   ;;  %1272 = vperm.xlu0 %3176, %v1213_v32  }
  0x5f   :  { %3068 = vmatmul.mubr.f32.gmra.mrb[6].mxu0 %v234_v29  ;;  %3100 = vmatmul.mubr.f32.gmra.mrb[6].mxu1 %v250_v30 }
  0x60   :  { %3069 = vmatprep.mubr.f32.mxu0 %v235_v33  ;;  %3101 = vmatprep.mubr.f32.mxu1 %v251_v34 }
  0x61   :  { %1287 = vperm.xlu1 %3177, %v1216_v35   ;;  %1282 = vperm.xlu0 %3176, %v1215_v36  }
  0x63   :  { %3070 = vmatmul.mubr.f32.gmra.mrb[8].mxu0 %v235_v33  ;;  %3102 = vmatmul.mubr.f32.gmra.mrb[8].mxu1 %v251_v34 }
  0x64   :  { %3071 = vmatprep.mubr.f32.mxu0 %v236_v37  ;;  %3103 = vmatprep.mubr.f32.mxu1 %v252_v38 }
  0x65   :  { %1297 = vperm.xlu1 %3177, %v1218_v39   ;;  %1292 = vperm.xlu0 %3176, %v1217_v40  }
  0x67   :  { %3072 = vmatmul.mubr.f32.gmra.mrb[10].mxu0 %v236_v37  ;;  %3104 = vmatmul.mubr.f32.gmra.mrb[10].mxu1 %v252_v38 }
  0x68   :  { %3073 = vmatprep.mubr.f32.mxu0 %v237_v41  ;;  %3105 = vmatprep.mubr.f32.mxu1 %v253_v42 }
  0x69   :  { %1307 = vperm.xlu1 %3177, %v1220_v43   ;;  %1302 = vperm.xlu0 %3176, %v1219_v44  }
  0x6b   :  { %3074 = vmatmul.mubr.f32.gmra.mrb[12].mxu0 %v237_v41  ;;  %3106 = vmatmul.mubr.f32.gmra.mrb[12].mxu1 %v253_v42 }
  0x6c   :  { %3075 = vmatprep.mubr.f32.mxu0 %v238_v45  ;;  %3107 = vmatprep.mubr.f32.mxu1 %v254_v46 }
  0x6d   :  { %1317 = vperm.xlu1 %3177, %v1222_v47   ;;  %1312 = vperm.xlu0 %3176, %v1221_v48  }
  0x6f   :  { %3076 = vmatmul.mubr.f32.gmra.mrb[14].mxu0 %v238_v45  ;;  %3108 = vmatmul.mubr.f32.gmra.mrb[14].mxu1 %v254_v46 }
  0x70   :  { %3077 = vmatprep.mubr.f32.mxu0 %v239_v49  ;;  %3109 = vmatprep.mubr.f32.mxu1 %v255_v50 }
  0x71   :  { %1327 = vperm.xlu1 %3177, %v1224_v51   ;;  %1322 = vperm.xlu0 %3176, %v1223_v52  }
  0x73   :  { %3078 = vmatmul.mubr.f32.gmra.mrb[16].mxu0 %v239_v49  ;;  %3110 = vmatmul.mubr.f32.gmra.mrb[16].mxu1 %v255_v50 }
  0x74   :  { %3079 = vmatprep.mubr.f32.mxu0 %v240_v53  ;;  %3111 = vmatprep.mubr.f32.mxu1 %v256_v54 }
  0x75   :  { %1337 = vperm.xlu1 %3177, %v1226_v55   ;;  %1332 = vperm.xlu0 %3176, %v1225_v56  }
  0x77   :  { %3080 = vmatmul.mubr.f32.gmra.mrb[18].mxu0 %v240_v53  ;;  %3112 = vmatmul.mubr.f32.gmra.mrb[18].mxu1 %v256_v54 }
  0x78   :  { %3081 = vmatprep.mubr.f32.mxu0 %v241_v57  ;;  %3113 = vmatprep.mubr.f32.mxu1 %v257_v58 }
  0x79   :  { %1347 = vperm.xlu1 %3177, %v1228_v59   ;;  %1342 = vperm.xlu0 %3176, %v1227_v60  }
  0x7b   :  { %3082 = vmatmul.mubr.f32.gmra.mrb[20].mxu0 %v241_v57  ;;  %3114 = vmatmul.mubr.f32.gmra.mrb[20].mxu1 %v257_v58 }
  0x7c   :  { %3083 = vmatprep.mubr.f32.mxu0 %v242_v61  ;;  %3115 = vmatprep.mubr.f32.mxu1 %v258_v62 }
  0x7d   :  { %1357 = vperm.xlu1 %3177, %v1230_v63   ;;  %1352 = vperm.xlu0 %3176, %v1229_v0  }
  0x7f   :  { %3084 = vmatmul.mubr.f32.gmra.mrb[22].mxu0 %v242_v61  ;;  %3116 = vmatmul.mubr.f32.gmra.mrb[22].mxu1 %v258_v62 }
  0x80   :  { %3085 = vmatprep.mubr.f32.mxu0 %v243_v1  ;;  %3117 = vmatprep.mubr.f32.mxu1 %v259_v2 }
  0x81   :  { %1367 = vperm.xlu1 %3177, %v1232_v3   ;;  %1362 = vperm.xlu0 %3176, %v1231_v4  }
  0x83   :  { %3086 = vmatmul.mubr.f32.gmra.mrb[24].mxu0 %v243_v1  ;;  %3118 = vmatmul.mubr.f32.gmra.mrb[24].mxu1 %v259_v2 }
  0x84   :  { %3087 = vmatprep.mubr.f32.mxu0 %v244_v5  ;;  %3119 = vmatprep.mubr.f32.mxu1 %v260_v6 }
  0x85   :  { %1377 = vperm.xlu1 %3177, %v1234_v7   ;;  %1372 = vperm.xlu0 %3176, %v1233_v8  }
  0x87   :  { %3088 = vmatmul.mubr.f32.gmra.mrb[26].mxu0 %v244_v5  ;;  %3120 = vmatmul.mubr.f32.gmra.mrb[26].mxu1 %v260_v6 }
  0x88   :  { %3089 = vmatprep.mubr.f32.mxu0 %v245_v9  ;;  %3121 = vmatprep.mubr.f32.mxu1 %v261_v10 }
  0x89   :  { %1387 = vperm.xlu1 %3177, %v1236_v12   ;;  %1382 = vperm.xlu0 %3176, %v1235_v13  }
  0x8b   :  { %3090 = vmatmul.mubr.f32.gmra.mrb[28].mxu0 %v245_v9  ;;  %3122 = vmatmul.mubr.f32.gmra.mrb[28].mxu1 %v261_v10 }
  0x8c   :  { %3091 = vmatprep.mubr.f32.mxu0 %v246_v14  ;;  %3123 = vmatprep.mubr.f32.mxu1 %v262_v15 }
  0x8d   :  { %1397 = vperm.xlu1 %3177, %v1238_v17   ;;  %1392 = vperm.xlu0 %3176, %v1237_v18  }
  0x8f   :  { %3092 = vmatmul.mubr.f32.gmra.mrb[30].mxu0 %v246_v14  ;;  %3124 = vmatmul.mubr.f32.gmra.mrb[30].mxu1 %v262_v15 }
  0x90   :  { %v4276_v22 = vpop.permute.xlu1 %728  ;;  %v4278_v23 = vpop.permute.xlu0 %718 }
  0x94   :  { %v734_v26 = vpop.permute.xlu1 %733  ;;  %v4288_v27 = vpop.permute.xlu0 %723 }
  0x95   :  { %v4291_v28 = vadd.f32 %v4282_v24, %v734_v26  ;;  %v4294_v29 = vadd.f32 %v4286_v25, %v734_v26 }
  0x98   :  { %v744_v30 = vpop.permute.xlu1 %743  ;;  %v739_v31 = vpop.permute.xlu0 %738 }
  0x99   :  { %v4297_v32 = vadd.f32 %v4282_v24, %v744_v30  ;;  %v4300_v33 = vadd.f32 %v4286_v25, %v744_v30  ;;  %v4303_v34 = vadd.f32 %v4282_v24, %v739_v31  ;;  %v4306_v35 = vadd.f32 %v4286_v25, %v739_v31 }
  0x9b   :  { %5606 = vst [vmem:[#allocation6_spill] sm:$0xff] %v4297_v32  ;;  %5607 = vst [vmem:[#allocation7_spill] sm:$0xff] %v4300_v33 }
  0x9c   :  { %5608 = vst [vmem:[#allocation8_spill] sm:$0xff] %v4303_v34  ;;  %5609 = vst [vmem:[#allocation9_spill] sm:$0xff] %v4306_v35  ;;  %v754_v36 = vpop.permute.xlu1 %753  ;;  %v749_v37 = vpop.permute.xlu0 %748 }
  0x9d   :  { %v4309_v38 = vadd.f32 %v4282_v24, %v754_v36  ;;  %v4312_v39 = vadd.f32 %v4286_v25, %v754_v36  ;;  %v4315_v40 = vadd.f32 %v4282_v24, %v749_v37  ;;  %v4318_v41 = vadd.f32 %v4286_v25, %v749_v37 }
  0x9f   :  { %5610 = vst [vmem:[#allocation10_spill] sm:$0xff] %v4309_v38  ;;  %5611 = vst [vmem:[#allocation11_spill] sm:$0xff] %v4312_v39 }
  0xa0   :  { %5612 = vst [vmem:[#allocation12_spill] sm:$0xff] %v4315_v40  ;;  %5613 = vst [vmem:[#allocation13_spill] sm:$0xff] %v4318_v41  ;;  %v764_v42 = vpop.permute.xlu1 %763  ;;  %v759_v43 = vpop.permute.xlu0 %758 }
  0xa1   :  { %v4321_v44 = vadd.f32 %v4282_v24, %v764_v42  ;;  %v4324_v45 = vadd.f32 %v4286_v25, %v764_v42  ;;  %v4327_v46 = vadd.f32 %v4282_v24, %v759_v43  ;;  %v4330_v47 = vadd.f32 %v4286_v25, %v759_v43 }
  0xa3   :  { %5614 = vst [vmem:[#allocation14_spill] sm:$0xff] %v4321_v44  ;;  %5615 = vst [vmem:[#allocation15_spill] sm:$0xff] %v4324_v45  ;;  %v4565_v45 = vadd.f32 %v4282_v24, %v4288_v27 }
  0xa4   :  { %5616 = vst [vmem:[#allocation16_spill] sm:$0xff] %v4327_v46  ;;  %5617 = vst [vmem:[#allocation17_spill] sm:$0xff] %v4330_v47  ;;  %v774_v48 = vpop.permute.xlu1 %773  ;;  %v769_v49 = vpop.permute.xlu0 %768  ;;  %v4579_v47 = vstv %s3028_s15 }
  0xa5   :  { %v4333_v50 = vadd.f32 %v4282_v24, %v774_v48  ;;  %v4336_v51 = vadd.f32 %v4286_v25, %v774_v48  ;;  %v4339_v52 = vadd.f32 %v4282_v24, %v769_v49  ;;  %v4342_v53 = vadd.f32 %v4286_v25, %v769_v49 }
  0xa7   :  { %5618 = vst [vmem:[#allocation18_spill] sm:$0xff] %v4333_v50  ;;  %5619 = vst [vmem:[#allocation19_spill] sm:$0xff] %v4336_v51 }
  0xa8   :  { %5620 = vst [vmem:[#allocation20_spill] sm:$0xff] %v4339_v52  ;;  %5621 = vst [vmem:[#allocation21_spill] sm:$0xff] %v4342_v53  ;;  %v784_v54 = vpop.permute.xlu1 %783  ;;  %v779_v55 = vpop.permute.xlu0 %778 }
  0xa9   :  { %v4345_v56 = vadd.f32 %v4282_v24, %v784_v54  ;;  %v4348_v57 = vadd.f32 %v4286_v25, %v784_v54  ;;  %v4351_v58 = vadd.f32 %v4282_v24, %v779_v55  ;;  %v4354_v59 = vadd.f32 %v4286_v25, %v779_v55 }
  0xab   :  { %5622 = vst [vmem:[#allocation22_spill] sm:$0xff] %v4345_v56  ;;  %5623 = vst [vmem:[#allocation23_spill] sm:$0xff] %v4348_v57 }
  0xac   :  { %5624 = vst [vmem:[#allocation24_spill] sm:$0xff] %v4351_v58  ;;  %5625 = vst [vmem:[#allocation25_spill] sm:$0xff] %v4354_v59  ;;  %v794_v60 = vpop.permute.xlu1 %793  ;;  %v789_v61 = vpop.permute.xlu0 %788 }
  0xad   :  { %v4357_v62 = vadd.f32 %v4282_v24, %v794_v60  ;;  %v4360_v63 = vadd.f32 %v4286_v25, %v794_v60  ;;  %v4363_v0 = vadd.f32 %v4282_v24, %v789_v61  ;;  %v4366_v1 = vadd.f32 %v4286_v25, %v789_v61 }
  0xaf   :  { %5626 = vst [vmem:[#allocation26_spill] sm:$0xff] %v4357_v62  ;;  %5627 = vst [vmem:[#allocation27_spill] sm:$0xff] %v4360_v63  ;;  %v1239_v63 = vld [vmem:[%s5598_s6] sm:$0x3]  ;;  %s1475_s6 = sld [smem:[#allocation4]] }
  0xb0   :  { %5628 = vst [vmem:[#allocation28_spill] sm:$0xff] %v4363_v0  ;;  %5629 = vst [vmem:[#allocation29_spill] sm:$0xff] %v4366_v1  ;;  %v4368_v2 = vpop.permute.xlu1 %803  ;;  %v4370_v3 = vpop.permute.xlu0 %798  ;;  %v5655_v1 = vsub.s32 0, %v4263_v16 }
  0xb4   :  { %v814_v4 = vpop.permute.xlu1 %813  ;;  %v4372_v5 = vpop.permute.xlu0 %808 }
  0xb5   :  { %v4375_v6 = vadd.f32 %v4282_v24, %v814_v4  ;;  %v4378_v7 = vadd.f32 %v4286_v25, %v814_v4  ;;  %v4571_v44 = vstv %s1475_s6  ;;  %v4599_v39 = vadd.f32 %v4286_v25, %v4372_v5 }
  0xb7   :  { %5630 = vst [vmem:[#allocation30_spill] sm:$0xff] %v4378_v7 }
  0xb8   :  { %v824_v8 = vpop.permute.xlu1 %823  ;;  %v819_v9 = vpop.permute.xlu0 %818 }
  0xb9   :  { %v4381_v10 = vadd.f32 %v4282_v24, %v824_v8  ;;  %v4384_v11 = vadd.f32 %v4286_v25, %v824_v8  ;;  %v4387_v12 = vadd.f32 %v4282_v24, %v819_v9  ;;  %v4390_v13 = vadd.f32 %v4286_v25, %v819_v9 }
  0xbb   :  { %5631 = vst [vmem:[#allocation31_spill] sm:$0xff] %v4381_v10  ;;  %5632 = vst [vmem:[#allocation32_spill] sm:$0xff] %v4384_v11 }
  0xbc   :  { %5633 = vst [vmem:[#allocation33_spill] sm:$0xff] %v4387_v12  ;;  %5634 = vst [vmem:[#allocation34_spill] sm:$0xff] %v4390_v13  ;;  %v834_v14 = vpop.permute.xlu1 %833  ;;  %v829_v15 = vpop.permute.xlu0 %828 }
  0xbd   :  { %v4393_v17 = vadd.f32 %v4282_v24, %v834_v14  ;;  %v4396_v18 = vadd.f32 %v4286_v25, %v834_v14  ;;  %v4399_v21 = vadd.f32 %v4282_v24, %v829_v15  ;;  %v4402_v26 = vadd.f32 %v4286_v25, %v829_v15 }
  0xbf   :  { %5635 = vst [vmem:[#allocation35_spill] sm:$0xff] %v4393_v17  ;;  %5636 = vst [vmem:[#allocation36_spill] sm:$0xff] %v4396_v18 }
  0xc0   :  { %5637 = vst [vmem:[#allocation37_spill] sm:$0xff] %v4399_v21  ;;  %5638 = vst [vmem:[#allocation38_spill] sm:$0xff] %v4402_v26  ;;  %v844_v30 = vpop.permute.xlu1 %843  ;;  %v839_v31 = vpop.permute.xlu0 %838 }
  0xc1   :  { %v4405_v36 = vadd.f32 %v4282_v24, %v844_v30  ;;  %v4408_v37 = vadd.f32 %v4286_v25, %v844_v30  ;;  %v4411_v42 = vadd.f32 %v4282_v24, %v839_v31  ;;  %v4414_v43 = vadd.f32 %v4286_v25, %v839_v31 }
  0xc3   :  { %5639 = vst [vmem:[#allocation39_spill] sm:$0xff] %v4405_v36  ;;  %5640 = vst [vmem:[#allocation40_spill] sm:$0xff] %v4408_v37  ;;  %v4569_v36 = vadd.f32 %v4286_v25, %v4288_v27  ;;  %v919_v27 = vadd.f32 %v4282_v24, %v4370_v3 }
  0xc4   :  { %5641 = vst [vmem:[#allocation41_spill] sm:$0xff] %v4411_v42  ;;  %5642 = vst [vmem:[#allocation42_spill] sm:$0xff] %v4414_v43  ;;  %v854_v48 = vpop.permute.xlu1 %853  ;;  %v849_v49 = vpop.permute.xlu0 %848  ;;  %v4577_v43 = vstv %s3027_s14  ;;  %v920_v42 = vadd.f32 %v4286_v25, %v4370_v3 }
  0xc5   :  { %v4417_v54 = vadd.f32 %v4282_v24, %v854_v48  ;;  %v4420_v55 = vadd.f32 %v4286_v25, %v854_v48  ;;  %v4423_v60 = vadd.f32 %v4282_v24, %v849_v49  ;;  %v4426_v61 = vadd.f32 %v4286_v25, %v849_v49 }
  0xc7   :  { %5643 = vst [vmem:[#allocation43_spill] sm:$0xff] %v4417_v54  ;;  %5644 = vst [vmem:[#allocation44_spill] sm:$0xff] %v4420_v55 }
  0xc8   :  { %5645 = vst [vmem:[#allocation45_spill] sm:$0xff] %v4423_v60  ;;  %5646 = vst [vmem:[#allocation46_spill] sm:$0xff] %v4426_v61  ;;  %v864_v4 = vpop.permute.xlu1 %863  ;;  %v859_v8 = vpop.permute.xlu0 %858 }
  0xc9   :  { %v4429_v9 = vadd.f32 %v4282_v24, %v864_v4  ;;  %v4432_v14 = vadd.f32 %v4286_v25, %v864_v4  ;;  %v4435_v15 = vadd.f32 %v4282_v24, %v859_v8  ;;  %v4438_v30 = vadd.f32 %v4286_v25, %v859_v8 }
  0xcb   :  { %5647 = vst [vmem:[#allocation47_spill] sm:$0xff] %v4429_v9  ;;  %5648 = vst [vmem:[#allocation48_spill] sm:$0xff] %v4432_v14 }
  0xcc   :  { %5649 = vst [vmem:[#allocation49_spill] sm:$0xff] %v4435_v15  ;;  %5650 = vst [vmem:[#allocation50_spill] sm:$0xff] %v4438_v30  ;;  %v874_v31 = vpop.permute.xlu1 %873  ;;  %v869_v48 = vpop.permute.xlu0 %868 }
  0xcd   :  { %v4441_v20 = vadd.f32 %v4282_v24, %v874_v31  ;;  %v4444_v49 = vadd.f32 %v4286_v25, %v874_v31  ;;  %v4447_v19 = vadd.f32 %v4282_v24, %v869_v48  ;;  %v4450_v4 = vadd.f32 %v4286_v25, %v869_v48 }
  0xce   :  { %v5657_v31 = vsub.s32 1, %v4263_v16 }
  0xcf   :  { %5651 = vst [vmem:[#allocation51_spill] sm:$0xff] %v4441_v20  ;;  %5652 = vst [vmem:[#allocation52_spill] sm:$0xff] %v4444_v49  ;;  %v4461_v20 = vrot.slane %v1239_v63, %v5655_v1 }
  0xd0   :  { %5653 = vst [vmem:[#allocation53_spill] sm:$0xff] %v4447_v19  ;;  %5654 = vst [vmem:[#allocation54_spill] sm:$0xff] %v4450_v4  ;;  %v4455_v8 = vpop.permute.xlu1 %1247  ;;  %v4457_v62 = vpop.permute.xlu0 %1242  ;;  %v4465_v49 = vrot.slane %v1239_v63, %v5657_v31 }
  0xd1   :  { %5656 = vst [vmem:[#allocation55_spill] sm:$0xff] %v4461_v20  ;;  %v4611_v3 = vmul.f32 %v4461_v20, %v4457_v62 }
  0xd2   :  { %5658 = vst [vmem:[#allocation56_spill] sm:$0xff] %v4465_v49 }
  0xd4   :  { %v1258_v19 = vpop.permute.xlu1 %1257  ;;  %v4467_v0 = vpop.permute.xlu0 %1252 }
  0xd5   :  { %v4470_v48 = vmul.f32 %v4461_v20, %v1258_v19  ;;  %v4473_v4 = vmul.f32 %v4465_v49, %v1258_v19 }
  0xd7   :  { %5659 = vst [vmem:[#allocation57_spill] sm:$0xff] %v4470_v48  ;;  %5660 = vst [vmem:[#allocation58_spill] sm:$0xff] %v4473_v4 }
  0xd8   :  { %v1268_v14 = vpop.permute.xlu1 %1267  ;;  %v1263_v57 = vpop.permute.xlu0 %1262 }
  0xd9   :  { %v4476_v9 = vmul.f32 %v4461_v20, %v1268_v14  ;;  %v4479_v1 = vmul.f32 %v4465_v49, %v1268_v14  ;;  %v4482_v16 = vmul.f32 %v4461_v20, %v1263_v57  ;;  %v4485_v63 = vmul.f32 %v4465_v49, %v1263_v57 }
  0xdb   :  { %5661 = vst [vmem:[#allocation59_spill] sm:$0xff] %v4476_v9  ;;  %5662 = vst [vmem:[#allocation60_spill] sm:$0xff] %v4479_v1 }
  0xdc   :  { %5663 = vst [vmem:[#allocation61_spill] sm:$0xff] %v4482_v16  ;;  %5664 = vst [vmem:[#allocation62_spill] sm:$0xff] %v4485_v63  ;;  %v1278_v31 = vpop.permute.xlu1 %1277  ;;  %v1273_v56 = vpop.permute.xlu0 %1272 }
  0xdd   :  { %v4488_v30 = vmul.f32 %v4461_v20, %v1278_v31  ;;  %v4491_v19 = vmul.f32 %v4465_v49, %v1278_v31  ;;  %v4494_v59 = vmul.f32 %v4461_v20, %v1273_v56  ;;  %v4497_v14 = vmul.f32 %v4465_v49, %v1273_v56 }
  0xdf   :  { %5665 = vst [vmem:[#allocation63_spill] sm:$0xff] %v4488_v30  ;;  %5666 = vst [vmem:[#allocation64_spill] sm:$0xff] %v4491_v19  ;;  %v4575_v19 = vstv %s3026_s13  ;;  %v4587_v30 = vadd.f32 %v4286_v25, %v4368_v2 }
  0xe0   :  { %5667 = vst [vmem:[#allocation65_spill] sm:$0xff] %v4494_v59  ;;  %5668 = vst [vmem:[#allocation66_spill] sm:$0xff] %v4497_v14  ;;  %v1288_v15 = vpop.permute.xlu1 %1287  ;;  %v1283_v58 = vpop.permute.xlu0 %1282  ;;  %v4595_v14 = vadd.f32 %v4282_v24, %v4372_v5  ;;  %v4607_v59 = vmul.f32 %v4465_v49, %v4455_v8  ;;  %v4623_v5 = vmul.f32 %v4465_v49, %v4467_v0 }
  0xe1   :  { %v4500_v55 = vmul.f32 %v4461_v20, %v1288_v15  ;;  %v4503_v57 = vmul.f32 %v4465_v49, %v1288_v15  ;;  %v4506_v51 = vmul.f32 %v4461_v20, %v1283_v58  ;;  %v4509_v31 = vmul.f32 %v4465_v49, %v1283_v58 }
  0xe2   :  { %5685 = vst [vmem:[#allocation83_spill] sm:$0xff] %v4623_v5 }
  0xe3   :  { %5669 = vst [vmem:[#allocation67_spill] sm:$0xff] %v4500_v55  ;;  %5670 = vst [vmem:[#allocation68_spill] sm:$0xff] %v4503_v57 }
  0xe4   :  { %5671 = vst [vmem:[#allocation69_spill] sm:$0xff] %v4506_v51  ;;  %5672 = vst [vmem:[#allocation70_spill] sm:$0xff] %v4509_v31  ;;  %v1298_v54 = vpop.permute.xlu1 %1297  ;;  %v1293_v50 = vpop.permute.xlu0 %1292 }
  0xe5   :  { %v4512_v61 = vmul.f32 %v4461_v20, %v1298_v54  ;;  %v4515_v56 = vmul.f32 %v4465_v49, %v1298_v54  ;;  %v4518_v53 = vmul.f32 %v4461_v20, %v1293_v50  ;;  %v4521_v15 = vmul.f32 %v4465_v49, %v1293_v50 }
  0xe7   :  { %5673 = vst [vmem:[#allocation71_spill] sm:$0xff] %v4512_v61  ;;  %5674 = vst [vmem:[#allocation72_spill] sm:$0xff] %v4515_v56 }
  0xe8   :  { %5675 = vst [vmem:[#allocation73_spill] sm:$0xff] %v4518_v53  ;;  %5676 = vst [vmem:[#allocation74_spill] sm:$0xff] %v4521_v15  ;;  %v1308_v57 = vpop.permute.xlu1 %1307  ;;  %v1303_v55 = vpop.permute.xlu0 %1302 }
  0xe9   :  { %v4524_v60 = vmul.f32 %v4461_v20, %v1308_v57  ;;  %v4527_v58 = vmul.f32 %v4465_v49, %v1308_v57  ;;  %v4530_v52 = vmul.f32 %v4461_v20, %v1303_v55  ;;  %v4533_v54 = vmul.f32 %v4465_v49, %v1303_v55 }
  0xeb   :  { %5677 = vst [vmem:[#allocation75_spill] sm:$0xff] %v4524_v60  ;;  %5678 = vst [vmem:[#allocation76_spill] sm:$0xff] %v4527_v58 }
  0xec   :  { %5679 = vst [vmem:[#allocation77_spill] sm:$0xff] %v4530_v52  ;;  %5680 = vst [vmem:[#allocation78_spill] sm:$0xff] %v4533_v54  ;;  %v1318_v56 = vpop.permute.xlu1 %1317  ;;  %v1313_v61 = vpop.permute.xlu0 %1312 }
  0xed   :  { %v4536_v53 = vmul.f32 %v4461_v20, %v1318_v56  ;;  %v4539_v50 = vmul.f32 %v4465_v49, %v1318_v56  ;;  %v4542_v15 = vmul.f32 %v4461_v20, %v1313_v61  ;;  %v4545_v57 = vmul.f32 %v4465_v49, %v1313_v61 }
  0xee   :  { %v4553_v61 = vadd.f32 %v4286_v25, %v4276_v22 }
  0xef   :  { %5681 = vst [vmem:[#allocation79_spill] sm:$0xff] %v4536_v53  ;;  %5682 = vst [vmem:[#allocation80_spill] sm:$0xff] %v4539_v50  ;;  %v4549_v53 = vadd.f32 %v4282_v24, %v4276_v22  ;;  %v4573_v22 = vstv %s3025_s12 }
  0xf0   :  { %5683 = vst [vmem:[#allocation81_spill] sm:$0xff] %v4542_v15  ;;  %5684 = vst [vmem:[#allocation82_spill] sm:$0xff] %v4545_v57  ;;  %v1328_v58 = vpop.permute.xlu1 %1327  ;;  %v1323_v60 = vpop.permute.xlu0 %1322  ;;  %v4557_v57 = vadd.f32 %v4282_v24, %v4278_v23  ;;  %v4561_v15 = vadd.f32 %v4286_v25, %v4278_v23  ;;  %v4583_v23 = vadd.f32 %v4282_v24, %v4368_v2 }
  0xf1   :  { %v4603_v2 = vmul.f32 %v4461_v20, %v4455_v8  ;;  %v4615_v24 = vmul.f32 %v4465_v49, %v4457_v62  ;;  %v4619_v25 = vmul.f32 %v4461_v20, %v4467_v0  ;;  %v4626_v17 = vmul.f32 %v4461_v20, %v1328_v58 }
  0xf2   :  { %v4629_v8 = vmul.f32 %v4465_v49, %v1328_v58  ;;  %v4632_v38 = vmul.f32 %v4461_v20, %v1323_v60  ;;  %v4635_v62 = vmul.f32 %v4465_v49, %v1323_v60 }
  0xf4   :  { %v1338_v52 = vpop.permute.xlu1 %1337  ;;  %v1333_v31 = vpop.permute.xlu0 %1332 }
  0xf5   :  { %v4638_v26 = vmul.f32 %v4461_v20, %v1338_v52  ;;  %v4641_v1 = vmul.f32 %v4465_v49, %v1338_v52  ;;  %v4644_v0 = vmul.f32 %v4461_v20, %v1333_v31  ;;  %v4647_v41 = vmul.f32 %v4465_v49, %v1333_v31 }
  0xf7   :  { %5686 = vst [vmem:[#allocation84_spill] sm:$0xff] %v4638_v26  ;;  %5687 = vst [vmem:[#allocation85_spill] sm:$0xff] %v4641_v1 }
  0xf8   :  { %v1348_v55 = vpop.permute.xlu1 %1347  ;;  %v1343_v54 = vpop.permute.xlu0 %1342  ;;  %5688 = vst [vmem:[#allocation86_spill] sm:$0xff] %v4644_v0  ;;  %5689 = vst [vmem:[#allocation87_spill] sm:$0xff] %v4647_v41 }
  0xf9   :  { %v4650_v58 = vmul.f32 %v4461_v20, %v1348_v55  ;;  %v4653_v9 = vmul.f32 %v4465_v49, %v1348_v55  ;;  %v4656_v60 = vmul.f32 %v4461_v20, %v1343_v54  ;;  %v4659_v21 = vmul.f32 %v4465_v49, %v1343_v54 }
  0xfb   :  { %5690 = vst [vmem:[#allocation88_spill] sm:$0xff] %v4650_v58  ;;  %5691 = vst [vmem:[#allocation89_spill] sm:$0xff] %v4653_v9 }
  0xfc   :  { %v1358_v37 = vpop.permute.xlu1 %1357  ;;  %v1353_v51 = vpop.permute.xlu0 %1352  ;;  %5692 = vst [vmem:[#allocation90_spill] sm:$0xff] %v4656_v60  ;;  %5693 = vst [vmem:[#allocation91_spill] sm:$0xff] %v4659_v21 }
  0xfd   :  { %v4662_v52 = vmul.f32 %v4461_v20, %v1358_v37  ;;  %v4665_v40 = vmul.f32 %v4465_v49, %v1358_v37  ;;  %v4668_v31 = vmul.f32 %v4461_v20, %v1353_v51  ;;  %v4671_v58 = vmul.f32 %v4465_v49, %v1353_v51 }
  0xff   :  { %5694 = vst [vmem:[#allocation92_spill] sm:$0xff] %v4662_v52  ;;  %5695 = vst [vmem:[#allocation93_spill] sm:$0xff] %v4665_v40 }
 0x100   :  { %v1368_v56 = vpop.permute.xlu1 %1367  ;;  %v1363_v50 = vpop.permute.xlu0 %1362  ;;  %5696 = vst [vmem:[#allocation94_spill] sm:$0xff] %v4668_v31  ;;  %5697 = vst [vmem:[#allocation95_spill] sm:$0xff] %v4671_v58 }
 0x101   :  { %v4674_v63 = vmul.f32 %v4461_v20, %v1368_v56  ;;  %v4677_v54 = vmul.f32 %v4465_v49, %v1368_v56  ;;  %v4680_v21 = vmul.f32 %v4461_v20, %v1363_v50  ;;  %v4683_v37 = vmul.f32 %v4465_v49, %v1363_v50 }
 0x103   :  { %5698 = vst [vmem:[#allocation96_spill] sm:$0xff] %v4674_v63  ;;  %5699 = vst [vmem:[#allocation97_spill] sm:$0xff] %v4677_v54 }
 0x104   :  { %v1378_v46 = vpop.permute.xlu1 %1377  ;;  %v1373_v18 = vpop.permute.xlu0 %1372  ;;  %5700 = vst [vmem:[#allocation98_spill] sm:$0xff] %v4680_v21  ;;  %5701 = vst [vmem:[#allocation99_spill] sm:$0xff] %v4683_v37 }
 0x105   :  { %v4686_v31 = vmul.f32 %v4461_v20, %v1378_v46  ;;  %v4689_v51 = vmul.f32 %v4465_v49, %v1378_v46  ;;  %v4692_v56 = vmul.f32 %v4461_v20, %v1373_v18  ;;  %v4695_v54 = vmul.f32 %v4465_v49, %v1373_v18 }
 0x107   :  { %5702 = vst [vmem:[#allocation100_spill] sm:$0xff] %v4686_v31  ;;  %5703 = vst [vmem:[#allocation101_spill] sm:$0xff] %v4689_v51 }
 0x108   :  { %v1388_v55 = vpop.permute.xlu1 %1387  ;;  %v1383_v9 = vpop.permute.xlu0 %1382  ;;  %5704 = vst [vmem:[#allocation102_spill] sm:$0xff] %v4692_v56  ;;  %5705 = vst [vmem:[#allocation103_spill] sm:$0xff] %v4695_v54 }
 0x109   :  { %v4698_v21 = vmul.f32 %v4461_v20, %v1388_v55  ;;  %v4701_v31 = vmul.f32 %v4465_v49, %v1388_v55  ;;  %v4708_v51 = vmul.f32 %v4465_v49, %v1383_v9 }
 0x10b   :  { %5706 = vst [vmem:[#allocation104_spill] sm:$0xff] %v4698_v21  ;;  %5707 = vst [vmem:[#allocation105_spill] sm:$0xff] %v4701_v31 }
 0x10c   :  { %5709 = vst [vmem:[#allocation107_spill] sm:$0xff] %v4708_v51 }
 0x126   :  { %v361_v40 = vpop.f32.mrb[0].mxu0  ;;  %v457_v52 = vpop.f32.mrb[0].mxu1 }
 0x127   :  { %v1015_v58 = vmul.f32 2.0, %v361_v40  ;;  %v1047_v11 = vmul.f32 2.0, %v457_v52  ;;  %v363_v63 = vpop.f32.mrb[1].mxu0  ;;  %v459_v33 = vpop.f32.mrb[1].mxu1  ;;  %v4705_v52 = vmul.f32 %v4461_v20, %v1383_v9 }
 0x128   :  { %v1016_v50 = vmul.f32 2.0, %v363_v63  ;;  %v1048_v37 = vmul.f32 2.0, %v459_v33 }
 0x129   :  { %v1079_v46 = vsub.f32 %v4557_v57, %v1015_v58  ;;  %v1111_v40 = vsub.f32 %v919_v27, %v1047_v11  ;;  %5708 = vst [vmem:[#allocation106_spill] sm:$0xff] %v4705_v52 }
 0x12a   :  { %v1080_v18 = vsub.f32 %v4561_v15, %v1016_v50  ;;  %v1112_v54 = vsub.f32 %v920_v42, %v1048_v37  ;;  %v367_v63 = vpop.f32.mrb[2].mxu0  ;;  %v463_v33 = vpop.f32.mrb[2].mxu1 }
 0x12b   :  { %v1143_v56 = vmax.f32 %v1079_v46, 0.0  ;;  %v1175_v60 = vmax.f32 %v1111_v40, 0.0  ;;  %v4711_v21 = vmul.f32 2.0, %v367_v63  ;;  %v4713_v55 = vmul.f32 2.0, %v463_v33  ;;  %v369_v31 = vpop.f32.mrb[3].mxu0  ;;  %v465_v57 = vpop.f32.mrb[3].mxu1 }
 0x12c   :  { %v1144_v11 = vmax.f32 %v1080_v18, 0.0  ;;  %v1176_v27 = vmax.f32 %v1112_v54, 0.0  ;;  %v4715_v58 = vmul.f32 2.0, %v369_v31  ;;  %v4717_v20 = vmul.f32 2.0, %v465_v57 }
 0x12d   :  { %v1477_v9 = vmul.f32 %v4571_v44, %v1143_v56  ;;  %v1735_v42 = vmul.f32 %v4573_v22, %v1143_v56  ;;  %v1993_v15 = vmul.f32 %v4575_v19, %v1143_v56  ;;  %v2251_v37 = vmul.f32 %v4577_v43, %v1143_v56 }
 0x12e   :  { %v2509_v50 = vmul.f32 %v4579_v47, %v1143_v56  ;;  %v1509_v46 = vmul.f32 %v4571_v44, %v1175_v60  ;;  %v1767_v40 = vmul.f32 %v4573_v22, %v1175_v60  ;;  %v2025_v54 = vmul.f32 %v4575_v19, %v1175_v60  ;;  %v4727_v31 = vpop.f32.mrb[4].mxu0  ;;  %v4729_v18 = vpop.f32.mrb[4].mxu1 }
 0x12f   :  { %v1541_v63 = vmul.f32 1.442695, %v1477_v9  ;;  %v1799_v33 = vmul.f32 1.442695, %v1735_v42  ;;  %v2057_v57 = vmul.f32 1.442695, %v1993_v15  ;;  %v2283_v49 = vmul.f32 %v4577_v43, %v1175_v60 }
 0x130   :  { %v2315_v51 = vmul.f32 1.442695, %v2251_v37  ;;  %v2573_v52 = vmul.f32 1.442695, %v2509_v50  ;;  %v1605_v16 = vmul.f32 1.442695, %v1509_v46  ;;  %v2541_v56 = vmul.f32 %v4579_v47, %v1175_v60 }
 0x131   :  { %3178 = vpow2.f32 %v1541_v63  ;;  %v1863_v10 = vmul.f32 1.442695, %v1767_v40  ;;  %v2121_v32 = vmul.f32 1.442695, %v2025_v54  ;;  %v2379_v1 = vmul.f32 1.442695, %v2283_v49 }
 0x132   :  { %3180 = vpow2.f32 %v1799_v33  ;;  %v2637_v13 = vmul.f32 1.442695, %v2541_v56  ;;  %v1478_v4 = vmul.f32 %v4571_v44, %v1144_v11  ;;  %v1736_v26 = vmul.f32 %v4573_v22, %v1144_v11  ;;  %v4735_v9 = vpop.f32.mrb[5].mxu0  ;;  %v4737_v42 = vpop.f32.mrb[5].mxu1 }
 0x133   :  { %3182 = vpow2.f32 %v2057_v57  ;;  %v1994_v15 = vmul.f32 %v4575_v19, %v1144_v11  ;;  %v2252_v37 = vmul.f32 %v4577_v43, %v1144_v11  ;;  %v2510_v60 = vmul.f32 %v4579_v47, %v1144_v11  ;;  %v4742_v50 = vpop.f32.mrb[6].mxu0  ;;  %v4744_v49 = vpop.f32.mrb[6].mxu1 }
 0x134   :  { %3184 = vpow2.f32 %v2315_v51  ;;  %v1543_v46 = vmul.f32 1.442695, %v1478_v4  ;;  %v1801_v40 = vmul.f32 1.442695, %v1736_v26  ;;  %v1510_v54 = vmul.f32 %v4571_v44, %v1176_v27  ;;  %v4747_v63 = vpop.f32.mrb[7].mxu0  ;;  %v4749_v33 = vpop.f32.mrb[7].mxu1 }
 0x135   :  { %5710 = vst [vmem:[#allocation108_spill] sm:$0xff] %v4749_v33  ;;  %3186 = vpow2.f32 %v2573_v52  ;;  %v2059_v57 = vmul.f32 1.442695, %v1994_v15  ;;  %v2317_v56 = vmul.f32 1.442695, %v2252_v37  ;;  %v1768_v11 = vmul.f32 %v4573_v22, %v1176_v27 }
 0x136   :  { %v2575_v35 = vmul.f32 1.442695, %v2510_v60  ;;  %3188 = vpow2.f32 %v1605_v16  ;;  %v1607_v48 = vmul.f32 1.442695, %v1510_v54  ;;  %v2026_v12 = vmul.f32 %v4575_v19, %v1176_v27  ;;  %v4753_v41 = vpop.f32.mrb[8].mxu0  ;;  %v4755_v4 = vpop.f32.mrb[8].mxu1 }
 0x137   :  { %5711 = vst [vmem:[#allocation109_spill] sm:$0xff] %v4753_v41  ;;  %5712 = vst [vmem:[#allocation110_spill] sm:$0xff] %v4755_v4  ;;  %3190 = vpow2.f32 %v1863_v10  ;;  %v2284_v26 = vmul.f32 %v4577_v43, %v1176_v27  ;;  %v2542_v51 = vmul.f32 %v4579_v47, %v1176_v27  ;;  %v1081_v52 = vsub.f32 %v4565_v45, %v4711_v21  ;;  %v4761_v15 = vpop.f32.mrb[9].mxu0  ;;  %v4763_v16 = vpop.f32.mrb[9].mxu1 }
 0x138   :  { %5713 = vst [vmem:[#allocation111_spill] sm:$0xff] %v4761_v15  ;;  %5714 = vst [vmem:[#allocation112_spill] sm:$0xff] %v4763_v16  ;;  %3192 = vpow2.f32 %v2121_v32  ;;  %v1865_v37 = vmul.f32 1.442695, %v1768_v11  ;;  %v2123_v60 = vmul.f32 1.442695, %v2026_v12  ;;  %v1113_v54 = vsub.f32 %v4583_v23, %v4713_v55 }
 0x139   :  { %3194 = vpow2.f32 %v2379_v1  ;;  %v2381_v4 = vmul.f32 1.442695, %v2284_v26  ;;  %v2639_v10 = vmul.f32 1.442695, %v2542_v51  ;;  %v1145_v34 = vmax.f32 %v1081_v52, 0.0 }
 0x13a   :  { %3196 = vpow2.f32 %v2637_v13  ;;  %v1177_v5 = vmax.f32 %v1113_v54, 0.0  ;;  %v1082_v27 = vsub.f32 %v4569_v36, %v4715_v58  ;;  %v4771_v21 = vpop.f32.mrb[10].mxu0  ;;  %v4773_v32 = vpop.f32.mrb[10].mxu1 }
 0x13b   :  { %5715 = vst [vmem:[#allocation113_spill] sm:$0xff] %v4771_v21  ;;  %5716 = vst [vmem:[#allocation114_spill] sm:$0xff] %v4773_v32  ;;  %v3179_v12 = vpop.eup %3178  ;;  %3198 = vpow2.f32 %v1543_v46  ;;  %v1479_v23 = vmul.f32 %v4571_v44, %v1145_v34  ;;  %v1737_v1 = vmul.f32 %v4573_v22, %v1145_v34  ;;  %v1995_v55 = vmul.f32 %v4575_v19, %v1145_v34  ;;  %v4778_v13 = vpop.f32.mrb[11].mxu0 }
 0x13c   :  { %5717 = vst [vmem:[#allocation115_spill] sm:$0xff] %v4778_v13  ;;  %v4780_v11 = vpop.f32.mrb[11].mxu1  ;;  %v3181_v36 = vpop.eup %3180  ;;  %3200 = vpow2.f32 %v1801_v40  ;;  %v2253_v58 = vmul.f32 %v4577_v43, %v1145_v34  ;;  %v2511_v26 = vmul.f32 %v4579_v47, %v1145_v34  ;;  %v1511_v51 = vmul.f32 %v4571_v44, %v1177_v5 }
 0x13d   :  { %5718 = vst [vmem:[#allocation116_spill] sm:$0xff] %v4780_v11  ;;  %v3183_v52 = vpop.eup %3182  ;;  %v1927_v46 = vadd.f32 %v3181_v36, %v3179_v12  ;;  %3202 = vpow2.f32 %v2059_v57  ;;  %v1545_v54 = vmul.f32 1.442695, %v1479_v23  ;;  %v1803_v45 = vmul.f32 1.442695, %v1737_v1 }
 0x13e   :  { %v3185_v32 = vpop.eup %3184  ;;  %3204 = vpow2.f32 %v2317_v56  ;;  %v2061_v21 = vmul.f32 1.442695, %v1995_v55  ;;  %v2319_v16 = vmul.f32 1.442695, %v2253_v58  ;;  %v2577_v13 = vmul.f32 1.442695, %v2511_v26 }
 0x13f   :  { %v3187_v15 = vpop.eup %3186  ;;  %v2185_v11 = vadd.f32 %v3183_v52, %v1927_v46  ;;  %3206 = vpow2.f32 %v2575_v35  ;;  %v1609_v40 = vmul.f32 1.442695, %v1511_v51  ;;  %v1769_v41 = vmul.f32 %v4573_v22, %v1177_v5  ;;  %v4786_v7 = vpop.f32.mrb[12].mxu0 }
 0x140   :  { %5719 = vst [vmem:[#allocation117_spill] sm:$0xff] %v4786_v7  ;;  %v4788_v34 = vpop.f32.mrb[12].mxu1  ;;  %v3189_v0 = vpop.eup %3188  ;;  %3208 = vpow2.f32 %v1607_v48  ;;  %v2027_v57 = vmul.f32 %v4575_v19, %v1177_v5  ;;  %v2285_v12 = vmul.f32 %v4577_v43, %v1177_v5  ;;  %v2543_v56 = vmul.f32 %v4579_v47, %v1177_v5 }
 0x141   :  { %5720 = vst [vmem:[#allocation118_spill] sm:$0xff] %v4788_v34  ;;  %v4793_v23 = vpop.f32.mrb[13].mxu0  ;;  %v4795_v1 = vpop.f32.mrb[13].mxu1  ;;  %v2443_v55 = vadd.f32 %v3185_v32, %v2185_v11  ;;  %3210 = vpow2.f32 %v1865_v37  ;;  %v1867_v36 = vmul.f32 1.442695, %v1769_v41  ;;  %v1146_v58 = vmax.f32 %v1082_v27, 0.0 }
 0x142   :  { %5721 = vst [vmem:[#allocation119_spill] sm:$0xff] %v4793_v23  ;;  %5722 = vst [vmem:[#allocation120_spill] sm:$0xff] %v4795_v1  ;;  %v3191_v35 = vpop.eup %3190  ;;  %3212 = vpow2.f32 %v2123_v60  ;;  %v2125_v52 = vmul.f32 1.442695, %v2027_v57  ;;  %v2383_v48 = vmul.f32 1.442695, %v2285_v12 }
 0x143   :  { %v3193_v26 = vpop.eup %3192  ;;  %v1959_v51 = vadd.f32 %v3191_v35, %v3189_v0  ;;  %v2701_v34 = vadd.f32 %v3187_v15, %v2443_v55  ;;  %3214 = vpow2.f32 %v2381_v4  ;;  %v2641_v7 = vmul.f32 1.442695, %v2543_v56 }
 0x144   :  { %v3195_v46 = vpop.eup %3194  ;;  %v1480_v5 = vmul.f32 %v4571_v44, %v1146_v58  ;;  %3216 = vpow2.f32 %v2639_v10  ;;  %v1738_v1 = vmul.f32 %v4573_v22, %v1146_v58  ;;  %v1996_v37 = vmul.f32 %v4575_v19, %v1146_v58 }
 0x145   :  { %v3197_v33 = vpop.eup %3196  ;;  %v2217_v23 = vadd.f32 %v3193_v26, %v1959_v51  ;;  %v2829_v27 = vmul.f32 %v2701_v34, %v4611_v3  ;;  %3218 = vpow2.f32 %v1545_v54  ;;  %v2254_v60 = vmul.f32 %v4577_v43, %v1146_v58  ;;  %v4806_v34 = vpop.f32.mrb[14].mxu0 }
 0x146   :  { %v3199_v41 = vpop.eup %3198  ;;  %v1547_v0 = vmul.f32 1.442695, %v1480_v5  ;;  %3220 = vpow2.f32 %v1803_v45  ;;  %v1805_v4 = vmul.f32 1.442695, %v1738_v1  ;;  %v2063_v11 = vmul.f32 1.442695, %v1996_v37 }
 0x147   :  { %v3201_v32 = vpop.eup %3200  ;;  %v2475_v15 = vadd.f32 %v3195_v46, %v2217_v23  ;;  %3222 = vpow2.f32 %v2061_v21  ;;  %v2321_v10 = vmul.f32 1.442695, %v2254_v60  ;;  %v2512_v55 = vmul.f32 %v4579_v47, %v1146_v58  ;;  %2957 = vst [vmem:[%s5599_s7] sm:$0xff] %v2829_v27 }
 0x148   :  { %v3203_v57 = vpop.eup %3202  ;;  %v1928_v12 = vadd.f32 %v3201_v32, %v3199_v41  ;;  %3224 = vpow2.f32 %v2319_v16  ;;  %v5723_v3 = vsub.f32 %v4587_v30, %v4717_v20  ;;  %v1019_v21 = vmul.f32 2.0, %v4727_v31  ;;  %v4815_v30 = vpop.f32.mrb[14].mxu1 }
 0x149   :  { %v3205_v56 = vpop.eup %3204  ;;  %v2733_v35 = vadd.f32 %v3197_v33, %v2475_v15  ;;  %3226 = vpow2.f32 %v2577_v13  ;;  %v1051_v33 = vmul.f32 2.0, %v4729_v18  ;;  %v2579_v1 = vmul.f32 1.442695, %v2512_v55 }
 0x14a   :  { %v1178_v54 = vmax.f32 %v5723_v3, 0.0  ;;  %v3207_v26 = vpop.eup %3206  ;;  %v2186_v45 = vadd.f32 %v3203_v57, %v1928_v12  ;;  %3228 = vpow2.f32 %v1609_v40  ;;  %v1083_v57 = vsub.f32 %v4549_v53, %v1019_v21  ;;  %v4827_v3 = vpop.f32.mrb[15].mxu0 }
 0x14b   :  { %v3209_v16 = vpop.eup %3208  ;;  %v2861_v23 = vmul.f32 %v2733_v35, %v4632_v38  ;;  %3230 = vpow2.f32 %v1867_v36 }
 0x14c   :  { %v1512_v20 = vmul.f32 %v4571_v44, %v1178_v54  ;;  %v3211_v58 = vpop.eup %3210  ;;  %v2444_v51 = vadd.f32 %v3205_v56, %v2186_v45  ;;  %v1770_v46 = vmul.f32 %v4573_v22, %v1178_v54  ;;  %v2028_v13 = vmul.f32 %v4575_v19, %v1178_v54 }
 0x14d   :  { %v3213_v5 = vpop.eup %3212  ;;  %v1960_v31 = vadd.f32 %v3211_v58, %v3209_v16  ;;  %3232 = vpow2.f32 %v2125_v52  ;;  %2989 = vst [vmem:[%s5599_s7 + $0x100] sm:$0xff] %v2861_v23  ;;  %v2286_v36 = vmul.f32 %v4577_v43, %v1178_v54  ;;  %v2544_v32 = vmul.f32 %v4579_v47, %v1178_v54 }
 0x14e   :  { %v1611_v18 = vmul.f32 1.442695, %v1512_v20  ;;  %v3215_v37 = vpop.eup %3214  ;;  %v2702_v41 = vadd.f32 %v3207_v26, %v2444_v51  ;;  %3234 = vpow2.f32 %v2383_v48  ;;  %v1869_v38 = vmul.f32 1.442695, %v1770_v46  ;;  %v4840_v46 = vpop.f32.mrb[15].mxu1 }
 0x14f   :  { %v2127_v40 = vmul.f32 1.442695, %v2028_v13  ;;  %v3217_v27 = vpop.eup %3216  ;;  %v2218_v60 = vadd.f32 %v3213_v5, %v1960_v31  ;;  %3236 = vpow2.f32 %v2641_v7  ;;  %v1115_v48 = vsub.f32 %v4595_v14, %v1051_v33 }
 0x150   :  { %v3219_v15 = vpop.eup %3218  ;;  %v2830_v52 = vmul.f32 %v2702_v41, %v4615_v24  ;;  %3238 = vpow2.f32 %v1547_v0  ;;  %v2385_v35 = vmul.f32 1.442695, %v2286_v36  ;;  %v2643_v55 = vmul.f32 1.442695, %v2544_v32 }
 0x151   :  { %v3221_v12 = vpop.eup %3220  ;;  %v2476_v56 = vadd.f32 %v3215_v37, %v2218_v60  ;;  %3240 = vpow2.f32 %v1805_v4  ;;  %v1147_v45 = vmax.f32 %v1083_v57, 0.0  ;;  %v1179_v24 = vmax.f32 %v1115_v48, 0.0 }
 0x152   :  { %v3223_v7 = vpop.eup %3222  ;;  %v1929_v26 = vadd.f32 %v3221_v12, %v3219_v15  ;;  %3242 = vpow2.f32 %v2063_v11  ;;  %v4830_v0 = vmul.f32 2.0, %v4735_v9  ;;  %2958 = vst [vmem:[%s5599_s7 + $0x8] sm:$0xff] %v2830_v52 }
 0x153   :  { %v3225_v54 = vpop.eup %3224  ;;  %v2734_v16 = vadd.f32 %v3217_v27, %v2476_v56  ;;  %3244 = vpow2.f32 %v2321_v10  ;;  %v1481_v4 = vmul.f32 %v4571_v44, %v1147_v45  ;;  %v1739_v21 = vmul.f32 %v4573_v22, %v1147_v45 }
 0x154   :  { %v3227_v53 = vpop.eup %3226  ;;  %v2187_v14 = vadd.f32 %v3223_v7, %v1929_v26  ;;  %3246 = vpow2.f32 %v2579_v1  ;;  %v1997_v10 = vmul.f32 %v4575_v19, %v1147_v45  ;;  %v2255_v9 = vmul.f32 %v4577_v43, %v1147_v45 }
 0x155   :  { %v3229_v11 = vpop.eup %3228  ;;  %v2862_v33 = vmul.f32 %v2734_v16, %v4635_v62  ;;  %3248 = vpow2.f32 %v1611_v18  ;;  %v1549_v58 = vmul.f32 1.442695, %v1481_v4  ;;  %v1807_v51 = vmul.f32 1.442695, %v1739_v21 }
 0x156   :  { %v3231_v23 = vpop.eup %3230  ;;  %v2445_v20 = vadd.f32 %v3225_v54, %v2187_v14  ;;  %3250 = vpow2.f32 %v1869_v38  ;;  %v2065_v5 = vmul.f32 1.442695, %v1997_v10  ;;  %v2323_v62 = vmul.f32 1.442695, %v2255_v9 }
 0x157   :  { %v3233_v1 = vpop.eup %3232  ;;  %v1961_v13 = vadd.f32 %v3231_v23, %v3229_v11  ;;  %3252 = vpow2.f32 %v2127_v40  ;;  %v2513_v18 = vmul.f32 %v4579_v47, %v1147_v45  ;;  %2990 = vst [vmem:[%s5599_s7 + $0x108] sm:$0xff] %v2862_v33  ;;  %v1513_v27 = vmul.f32 %v4571_v44, %v1179_v24 }
 0x158   :  { %v3235_v31 = vpop.eup %3234  ;;  %v2703_v37 = vadd.f32 %v3227_v53, %v2445_v20  ;;  %3254 = vpow2.f32 %v2385_v35  ;;  %v1771_v60 = vmul.f32 %v4573_v22, %v1179_v24  ;;  %v2029_v15 = vmul.f32 %v4575_v19, %v1179_v24 }
 0x159   :  { %v3237_v41 = vpop.eup %3236  ;;  %v2219_v38 = vadd.f32 %v3233_v1, %v1961_v13  ;;  %3256 = vpow2.f32 %v2643_v55  ;;  %v2581_v32 = vmul.f32 1.442695, %v2513_v18  ;;  %v1613_v48 = vmul.f32 1.442695, %v1513_v27 }
 0x15a   :  { %v3239_v36 = vpop.eup %3238  ;;  %v2831_v40 = vmul.f32 %v2703_v37, %v4603_v2  ;;  %3258 = vpow2.f32 %v1549_v58  ;;  %v1871_v12 = vmul.f32 1.442695, %v1771_v60  ;;  %v2129_v55 = vmul.f32 1.442695, %v2029_v15 }
 0x15b   :  { %v3241_v52 = vpop.eup %3240  ;;  %v2477_v57 = vadd.f32 %v3235_v31, %v2219_v38  ;;  %3260 = vpow2.f32 %v1807_v51  ;;  %v2287_v45 = vmul.f32 %v4577_v43, %v1179_v24  ;;  %v2545_v2 = vmul.f32 %v4579_v47, %v1179_v24  ;;  %v4874_v38 = vpop.f32.mrb[16].mxu1 }
 0x15c   :  { %v3243_v56 = vpop.eup %3242  ;;  %v1930_v35 = vadd.f32 %v3241_v52, %v3239_v36  ;;  %3262 = vpow2.f32 %v2065_v5  ;;  %2959 = vst [vmem:[%s5599_s7 + $0x10] sm:$0xff] %v2831_v40  ;;  %v1084_v53 = vsub.f32 %v4553_v61, %v4830_v0  ;;  %v1052_v14 = vmul.f32 2.0, %v4737_v42  ;;  %v4863_v61 = vpop.f32.mrb[16].mxu0 }
 0x15d   :  { %v3245_v7 = vpop.eup %3244  ;;  %v2735_v26 = vadd.f32 %v3237_v41, %v2477_v57  ;;  %3264 = vpow2.f32 %v2323_v62  ;;  %v2387_v11 = vmul.f32 1.442695, %v2287_v45  ;;  %v2645_v33 = vmul.f32 1.442695, %v2545_v2 }
 0x15e   :  { %v3247_v54 = vpop.eup %3246  ;;  %v2188_v16 = vadd.f32 %v3243_v56, %v1930_v35  ;;  %3266 = vpow2.f32 %v2581_v32  ;;  %v1148_v9 = vmax.f32 %v1084_v53, 0.0  ;;  %v1116_v23 = vsub.f32 %v4599_v39, %v1052_v14 }
 0x15f   :  { %v3249_v4 = vpop.eup %3248  ;;  %v2863_v21 = vmul.f32 %v2735_v26, %v4626_v17  ;;  %3268 = vpow2.f32 %v1613_v48  ;;  %v4861_v51 = vmul.f32 2.0, %v4742_v50 }
 0x160   :  { %v3251_v10 = vpop.eup %3250  ;;  %v2446_v24 = vadd.f32 %v3245_v7, %v2188_v16  ;;  %3270 = vpow2.f32 %v1871_v12  ;;  %v1482_v17 = vmul.f32 %v4571_v44, %v1148_v9  ;;  %v1740_v1 = vmul.f32 %v4573_v22, %v1148_v9 }
 0x161   :  { %v3253_v20 = vpop.eup %3252  ;;  %v1962_v58 = vadd.f32 %v3251_v10, %v3249_v4  ;;  %3272 = vpow2.f32 %v2129_v55  ;;  %2991 = vst [vmem:[%s5599_s7 + $0x110] sm:$0xff] %v2863_v21  ;;  %v1998_v5 = vmul.f32 %v4575_v19, %v1148_v9  ;;  %v2256_v50 = vmul.f32 %v4577_v43, %v1148_v9 }
 0x162   :  { %v3255_v42 = vpop.eup %3254  ;;  %v2704_v0 = vadd.f32 %v3247_v54, %v2446_v24  ;;  %3274 = vpow2.f32 %v2387_v11  ;;  %v1551_v62 = vmul.f32 1.442695, %v1482_v17  ;;  %v1809_v18 = vmul.f32 1.442695, %v1740_v1  ;;  %v4885_v24 = vpop.f32.mrb[17].mxu0 }
 0x163   :  { %v3257_v13 = vpop.eup %3256  ;;  %v2220_v39 = vadd.f32 %v3253_v20, %v1962_v58  ;;  %3276 = vpow2.f32 %v2645_v33  ;;  %v2514_v41 = vmul.f32 %v4579_v47, %v1148_v9  ;;  %v2067_v36 = vmul.f32 1.442695, %v1998_v5 }
 0x164   :  { %v3259_v31 = vpop.eup %3258  ;;  %v2832_v37 = vmul.f32 %v2704_v0, %v4607_v59  ;;  %v2325_v40 = vmul.f32 1.442695, %v2256_v50  ;;  %v1180_v32 = vmax.f32 %v1116_v23, 0.0  ;;  %3278 = vpow2.f32 %v1551_v62  ;;  %v4900_v50 = vpop.f32.mrb[17].mxu1 }
 0x165   :  { %v3261_v27 = vpop.eup %3260  ;;  %v2478_v60 = vadd.f32 %v3255_v42, %v2220_v39  ;;  %v2583_v57 = vmul.f32 1.442695, %v2514_v41  ;;  %3280 = vpow2.f32 %v1809_v18  ;;  %v1053_v20 = vmul.f32 2.0, %v4744_v49  ;;  %v5724_v49 = vld [vmem:[#allocation108_spill] sm:$0xff] }
 0x166   :  { %v3263_v15 = vpop.eup %3262  ;;  %v1931_v52 = vadd.f32 %v3261_v27, %v3259_v31  ;;  %v1514_v59 = vmul.f32 %v4571_v44, %v1180_v32  ;;  %v1772_v56 = vmul.f32 %v4573_v22, %v1180_v32  ;;  %2960 = vst [vmem:[%s5599_s7 + $0x18] sm:$0xff] %v2832_v37  ;;  %3282 = vpow2.f32 %v2067_v36 }
 0x167   :  { %v3265_v48 = vpop.eup %3264  ;;  %v2736_v12 = vadd.f32 %v3257_v13, %v2478_v60  ;;  %v2030_v7 = vmul.f32 %v4575_v19, %v1180_v32  ;;  %v2288_v26 = vmul.f32 %v4577_v43, %v1180_v32  ;;  %3284 = vpow2.f32 %v2325_v40 }
 0x168   :  { %v3267_v35 = vpop.eup %3266  ;;  %v2189_v55 = vadd.f32 %v3263_v15, %v1931_v52  ;;  %v1615_v54 = vmul.f32 1.442695, %v1514_v59  ;;  %v1873_v16 = vmul.f32 1.442695, %v1772_v56  ;;  %3286 = vpow2.f32 %v2583_v57  ;;  %v5725_v52 = vld [vmem:[#allocation86_spill] sm:$0xff] }
 0x169   :  { %v3269_v45 = vpop.eup %3268  ;;  %v2864_v2 = vmul.f32 %v2736_v12, %v4629_v8  ;;  %v2131_v4 = vmul.f32 1.442695, %v2030_v7  ;;  %v2389_v21 = vmul.f32 1.442695, %v2288_v26  ;;  %v2546_v10 = vmul.f32 %v4579_v47, %v1180_v32 }
 0x16a   :  { %v3271_v53 = vpop.eup %3270  ;;  %v2447_v14 = vadd.f32 %v3265_v48, %v2189_v55  ;;  %3288 = vpow2.f32 %v1615_v54  ;;  %v1085_v8 = vsub.f32 %v4291_v28, %v4861_v51  ;;  %v1022_v17 = vmul.f32 2.0, %v4747_v63 }
 0x16b   :  { %v3273_v11 = vpop.eup %3272  ;;  %v1963_v33 = vadd.f32 %v3271_v53, %v3269_v45  ;;  %3290 = vpow2.f32 %v1873_v16  ;;  %2992 = vst [vmem:[%s5599_s7 + $0x118] sm:$0xff] %v2864_v2  ;;  %v2647_v0 = vmul.f32 1.442695, %v2546_v10  ;;  %v1117_v39 = vsub.f32 %v4375_v6, %v1053_v20  ;;  %v4919_v10 = vpop.f32.mrb[18].mxu0  ;;  %v5726_v20 = vld [vmem:[#allocation30_spill] sm:$0xff] }
 0x16c   :  { %v3275_v9 = vpop.eup %3274  ;;  %v2705_v23 = vadd.f32 %v3267_v35, %v2447_v14  ;;  %3292 = vpow2.f32 %v2131_v4  ;;  %v1149_v13 = vmax.f32 %v1085_v8, 0.0  ;;  %v1086_v28 = vsub.f32 %v4294_v29, %v1022_v17 }
 0x16d   :  { %v3277_v58 = vpop.eup %3276  ;;  %v2221_v42 = vadd.f32 %v3273_v11, %v1963_v33  ;;  %3294 = vpow2.f32 %v2389_v21  ;;  %v4898_v51 = vmul.f32 2.0, %v5724_v49  ;;  %v1181_v27 = vmax.f32 %v1117_v39, 0.0  ;;  %v5728_v39 = vld [vmem:[#allocation83_spill] sm:$0xff] }
 0x16e   :  { %v2833_v1 = vmul.f32 %v2705_v23, %v4619_v25  ;;  %3296 = vpow2.f32 %v2647_v0  ;;  %v3279_v31 = vpop.eup %3278  ;;  %v1483_v37 = vmul.f32 %v4571_v44, %v1149_v13  ;;  %v1741_v63 = vmul.f32 %v4573_v22, %v1149_v13 }
 0x16f   :  { %v2479_v5 = vadd.f32 %v3275_v9, %v2221_v42  ;;  %v1999_v25 = vmul.f32 %v4575_v19, %v1149_v13  ;;  %v3281_v62 = vpop.eup %3280  ;;  %v2257_v6 = vmul.f32 %v4577_v43, %v1149_v13  ;;  %v2515_v41 = vmul.f32 %v4579_v47, %v1149_v13 }
 0x170   :  { %v3283_v29 = vpop.eup %3282  ;;  %2961 = vst [vmem:[%s5599_s7 + $0x20] sm:$0xff] %v2833_v1  ;;  %v1932_v60 = vadd.f32 %v3281_v62, %v3279_v31  ;;  %v1553_v36 = vmul.f32 1.442695, %v1483_v37  ;;  %v1811_v40 = vmul.f32 1.442695, %v1741_v63  ;;  %v1515_v59 = vmul.f32 %v4571_v44, %v1181_v27  ;;  %v5727_v1 = vld [vmem:[#allocation109_spill] sm:$0xff] }
 0x171   :  { %v2737_v18 = vadd.f32 %v3277_v58, %v2479_v5  ;;  %v2069_v32 = vmul.f32 1.442695, %v1999_v25  ;;  %v3285_v15 = vpop.eup %3284  ;;  %v2327_v48 = vmul.f32 1.442695, %v2257_v6  ;;  %v2585_v12 = vmul.f32 1.442695, %v2515_v41 }
 0x172   :  { %v3287_v56 = vpop.eup %3286  ;;  %v2190_v35 = vadd.f32 %v3283_v29, %v1932_v60  ;;  %3298 = vpow2.f32 %v1553_v36  ;;  %v1773_v55 = vmul.f32 %v4573_v22, %v1181_v27  ;;  %v2031_v7 = vmul.f32 %v4575_v19, %v1181_v27  ;;  %v4929_v41 = vpop.f32.mrb[18].mxu1  ;;  %v5729_v36 = vld [vmem:[#allocation8_spill] sm:$0xff] }
 0x173   :  { %v2865_v57 = vmul.f32 %v2737_v18, %v5725_v52  ;;  %3300 = vpow2.f32 %v1811_v40  ;;  %v1617_v45 = vmul.f32 1.442695, %v1515_v59  ;;  %v2289_v2 = vmul.f32 %v4577_v43, %v1181_v27 }
 0x174   :  { %v3289_v26 = vpop.eup %3288  ;;  %v2448_v16 = vadd.f32 %v3285_v15, %v2190_v35  ;;  %3302 = vpow2.f32 %v2069_v32  ;;  %v1875_v53 = vmul.f32 1.442695, %v1773_v55  ;;  %v2133_v14 = vmul.f32 1.442695, %v2031_v7  ;;  %v5730_v15 = vld [vmem:[#allocation87_spill] sm:$0xff] }
 0x175   :  { %v3291_v54 = vpop.eup %3290  ;;  %2993 = vst [vmem:[%s5599_s7 + $0x120] sm:$0xff] %v2865_v57  ;;  %3304 = vpow2.f32 %v2327_v48  ;;  %v2391_v11 = vmul.f32 1.442695, %v2289_v2  ;;  %v2547_v33 = vmul.f32 %v4579_v47, %v1181_v27  ;;  %v1150_v8 = vmax.f32 %v1086_v28, 0.0  ;;  %v5731_v57 = vld [vmem:[#allocation110_spill] sm:$0xff] }
 0x176   :  { %v3293_v4 = vpop.eup %3292  ;;  %v1964_v21 = vadd.f32 %v3291_v54, %v3289_v26  ;;  %v2706_v23 = vadd.f32 %v3287_v56, %v2448_v16  ;;  %3306 = vpow2.f32 %v2585_v12  ;;  %v1118_v58 = vsub.f32 %v5726_v20, %v4898_v51  ;;  %v5732_v12 = vld [vmem:[#allocation111_spill] sm:$0xff] }
 0x177   :  { %v3295_v9 = vpop.eup %3294  ;;  %3308 = vpow2.f32 %v1617_v45  ;;  %v2649_v17 = vmul.f32 1.442695, %v2547_v33  ;;  %v1023_v13 = vmul.f32 2.0, %v5727_v1  ;;  %v1484_v49 = vmul.f32 %v4571_v44, %v1150_v8 }
 0x178   :  { %v3297_v42 = vpop.eup %3296  ;;  %v2222_v0 = vadd.f32 %v3293_v4, %v1964_v21  ;;  %v2834_v5 = vmul.f32 %v2706_v23, %v5728_v39  ;;  %3310 = vpow2.f32 %v1875_v53  ;;  %v1742_v31 = vmul.f32 %v4573_v22, %v1150_v8  ;;  %v4949_v23 = vpop.f32.mrb[19].mxu0 }
 0x179   :  { %3312 = vpow2.f32 %v2133_v14  ;;  %v2000_v28 = vmul.f32 %v4575_v19, %v1150_v8  ;;  %v2258_v63 = vmul.f32 %v4577_v43, %v1150_v8  ;;  %v1555_v51 = vmul.f32 1.442695, %v1484_v49 }
 0x17a   :  { %v2480_v37 = vadd.f32 %v3295_v9, %v2222_v0  ;;  %3314 = vpow2.f32 %v2391_v11  ;;  %v1813_v25 = vmul.f32 1.442695, %v1742_v31  ;;  %2962 = vst [vmem:[%s5599_s7 + $0x28] sm:$0xff] %v2834_v5  ;;  %v2516_v29 = vmul.f32 %v4579_v47, %v1150_v8 }
 0x17b   :  { %3316 = vpow2.f32 %v2649_v17  ;;  %v2071_v18 = vmul.f32 1.442695, %v2000_v28  ;;  %v2329_v6 = vmul.f32 1.442695, %v2258_v63  ;;  %v1182_v60 = vmax.f32 %v1118_v58, 0.0 }
 0x17c   :  { %v2738_v62 = vadd.f32 %v3297_v42, %v2480_v37  ;;  %v3299_v27 = vpop.eup %3298  ;;  %3318 = vpow2.f32 %v1555_v51  ;;  %v1087_v40 = vsub.f32 %v5729_v36, %v1023_v13  ;;  %v1055_v48 = vmul.f32 2.0, %v5731_v57  ;;  %v5733_v42 = vld [vmem:[#allocation33_spill] sm:$0xff] }
 0x17d   :  { %v3301_v32 = vpop.eup %3300  ;;  %3320 = vpow2.f32 %v1813_v25  ;;  %v4939_v59 = vmul.f32 2.0, %v5732_v12  ;;  %v2587_v55 = vmul.f32 1.442695, %v2516_v29  ;;  %v1516_v7 = vmul.f32 %v4571_v44, %v1182_v60 }
 0x17e   :  { %v2866_v52 = vmul.f32 %v2738_v62, %v5730_v15  ;;  %v3303_v56 = vpop.eup %3302  ;;  %v1933_v35 = vadd.f32 %v3301_v32, %v3299_v27  ;;  %3322 = vpow2.f32 %v2071_v18  ;;  %v1774_v45 = vmul.f32 %v4573_v22, %v1182_v60  ;;  %v4956_v62 = vpop.f32.mrb[19].mxu1 }
 0x17f   :  { %v3305_v26 = vpop.eup %3304  ;;  %3324 = vpow2.f32 %v2329_v6  ;;  %v2032_v2 = vmul.f32 %v4575_v19, %v1182_v60  ;;  %v1619_v53 = vmul.f32 1.442695, %v1516_v7  ;;  %v2290_v14 = vmul.f32 %v4577_v43, %v1182_v60  ;;  %v5734_v6 = vld [vmem:[#allocation57_spill] sm:$0xff] }
 0x180   :  { %v3307_v54 = vpop.eup %3306  ;;  %v2191_v16 = vadd.f32 %v3303_v56, %v1933_v35  ;;  %3326 = vpow2.f32 %v2587_v55  ;;  %2994 = vst [vmem:[%s5599_s7 + $0x128] sm:$0xff] %v2866_v52  ;;  %v1877_v21 = vmul.f32 1.442695, %v1774_v45  ;;  %v2548_v33 = vmul.f32 %v4579_v47, %v1182_v60  ;;  %v5735_v55 = vld [vmem:[#allocation9_spill] sm:$0xff] }
 0x181   :  { %v3309_v4 = vpop.eup %3308  ;;  %v2135_v11 = vmul.f32 1.442695, %v2032_v2  ;;  %v1151_v9 = vmax.f32 %v1087_v40, 0.0  ;;  %3328 = vpow2.f32 %v1619_v53  ;;  %v2393_v58 = vmul.f32 1.442695, %v2290_v14 }
 0x182   :  { %v3311_v8 = vpop.eup %3310  ;;  %v2449_v20 = vadd.f32 %v3305_v26, %v2191_v16  ;;  %v1119_v0 = vsub.f32 %v5733_v42, %v1055_v48  ;;  %3330 = vpow2.f32 %v1877_v21  ;;  %v2651_v13 = vmul.f32 1.442695, %v2548_v33  ;;  %v5736_v16 = vld [vmem:[#allocation84_spill] sm:$0xff] }
 0x183   :  { %v3313_v17 = vpop.eup %3312  ;;  %v1965_v1 = vadd.f32 %v3311_v8, %v3309_v4  ;;  %v1485_v39 = vmul.f32 %v4571_v44, %v1151_v9  ;;  %3332 = vpow2.f32 %v2135_v11  ;;  %v1743_v31 = vmul.f32 %v4573_v22, %v1151_v9 }
 0x184   :  { %v3315_v5 = vpop.eup %3314  ;;  %v2707_v49 = vadd.f32 %v3307_v54, %v2449_v20  ;;  %v2001_v37 = vmul.f32 %v4575_v19, %v1151_v9  ;;  %3334 = vpow2.f32 %v2393_v58  ;;  %v2259_v25 = vmul.f32 %v4577_v43, %v1151_v9 }
 0x185   :  { %v3317_v28 = vpop.eup %3316  ;;  %v2223_v63 = vadd.f32 %v3313_v17, %v1965_v1  ;;  %v1557_v51 = vmul.f32 1.442695, %v1485_v39  ;;  %3336 = vpow2.f32 %v2651_v13  ;;  %v1815_v29 = vmul.f32 1.442695, %v1743_v31  ;;  %v4971_v39 = vpop.f32.mrb[20].mxu0 }
 0x186   :  { %v3319_v18 = vpop.eup %3318  ;;  %v2835_v27 = vmul.f32 %v2707_v49, %v5734_v6  ;;  %v2073_v60 = vmul.f32 1.442695, %v2001_v37  ;;  %v2331_v32 = vmul.f32 1.442695, %v2259_v25  ;;  %v2517_v15 = vmul.f32 %v4579_v47, %v1151_v9  ;;  %v4981_v6 = vpop.f32.mrb[20].mxu1 }
 0x187   :  { %v3321_v36 = vpop.eup %3320  ;;  %v2481_v40 = vadd.f32 %v3315_v5, %v2223_v63  ;;  %3338 = vpow2.f32 %v1557_v51  ;;  %v1183_v48 = vmax.f32 %v1119_v0, 0.0  ;;  %v1088_v7 = vsub.f32 %v5735_v55, %v4939_v59  ;;  %v5737_v63 = vld [vmem:[#allocation58_spill] sm:$0xff] }
 0x188   :  { %v3323_v52 = vpop.eup %3322  ;;  %v1934_v57 = vadd.f32 %v3321_v36, %v3319_v18  ;;  %3340 = vpow2.f32 %v1815_v29  ;;  %v2589_v35 = vmul.f32 1.442695, %v2517_v15  ;;  %2963 = vst [vmem:[%s5599_s7 + $0x30] sm:$0xff] %v2835_v27 }
 0x189   :  { %v3325_v12 = vpop.eup %3324  ;;  %v2739_v56 = vadd.f32 %v3317_v28, %v2481_v40  ;;  %3342 = vpow2.f32 %v2073_v60  ;;  %v1517_v2 = vmul.f32 %v4571_v44, %v1183_v48  ;;  %v1775_v54 = vmul.f32 %v4573_v22, %v1183_v48 }
 0x18a   :  { %v3327_v26 = vpop.eup %3326  ;;  %v2192_v45 = vadd.f32 %v3323_v52, %v1934_v57  ;;  %3344 = vpow2.f32 %v2331_v32  ;;  %v2033_v14 = vmul.f32 %v4575_v19, %v1183_v48  ;;  %v2291_v4 = vmul.f32 %v4577_v43, %v1183_v48 }
 0x18b   :  { %v2867_v53 = vmul.f32 %v2739_v56, %v5736_v16  ;;  %3346 = vpow2.f32 %v2589_v35  ;;  %v3329_v21 = vpop.eup %3328  ;;  %v1621_v11 = vmul.f32 1.442695, %v1517_v2  ;;  %v1879_v33 = vmul.f32 1.442695, %v1775_v54 }
 0x18c   :  { %v2450_v59 = vadd.f32 %v3325_v12, %v2192_v45  ;;  %v2549_v9 = vmul.f32 %v4579_v47, %v1183_v48  ;;  %v3331_v8 = vpop.eup %3330  ;;  %v2137_v20 = vmul.f32 1.442695, %v2033_v14  ;;  %v2395_v58 = vmul.f32 1.442695, %v2291_v4  ;;  %v5738_v12 = vld [vmem:[#allocation112_spill] sm:$0xff]  ;;  %v5740_v45 = vld [vmem:[#allocation114_spill] sm:$0xff] }
 0x18d   :  { %v1152_v42 = vmax.f32 %v1088_v7, 0.0  ;;  %v3333_v0 = vpop.eup %3332  ;;  %v1966_v1 = vadd.f32 %v3331_v8, %v3329_v21  ;;  %3348 = vpow2.f32 %v1621_v11  ;;  %2995 = vst [vmem:[%s5599_s7 + $0x130] sm:$0xff] %v2867_v53  ;;  %v1056_v56 = vmul.f32 2.0, %v5738_v12  ;;  %v5739_v7 = vld [vmem:[#allocation113_spill] sm:$0xff]  ;;  %v5741_v14 = vld [vmem:[#allocation34_spill] sm:$0xff] }
 0x18e   :  { %v2708_v17 = vadd.f32 %v3327_v26, %v2450_v59  ;;  %v2653_v13 = vmul.f32 1.442695, %v2549_v9  ;;  %v3335_v5 = vpop.eup %3334  ;;  %3350 = vpow2.f32 %v1879_v33  ;;  %v1025_v26 = vmul.f32 2.0, %v5739_v7  ;;  %v5742_v21 = vld [vmem:[#allocation85_spill] sm:$0xff]  ;;  %v5743_v11 = vld [vmem:[#allocation6_spill] sm:$0xff]  ;;  %v5744_v9 = vld [vmem:[#allocation31_spill] sm:$0xff] }
 0x18f   :  { %v1486_v49 = vmul.f32 %v4571_v44, %v1152_v42  ;;  %v1744_v31 = vmul.f32 %v4573_v22, %v1152_v42  ;;  %v2002_v37 = vmul.f32 %v4575_v19, %v1152_v42  ;;  %v3337_v28 = vpop.eup %3336  ;;  %v2224_v25 = vadd.f32 %v3333_v0, %v1966_v1 }
 0x190   :  { %v2836_v51 = vmul.f32 %v2708_v17, %v5737_v63  ;;  %3352 = vpow2.f32 %v2137_v20  ;;  %v2260_v18 = vmul.f32 %v4577_v43, %v1152_v42  ;;  %v2518_v48 = vmul.f32 %v4579_v47, %v1152_v42  ;;  %v5745_v42 = vld [vmem:[#allocation115_spill] sm:$0xff] }
 0x191   :  { %v3339_v27 = vpop.eup %3338  ;;  %3354 = vpow2.f32 %v2395_v58  ;;  %v1559_v29 = vmul.f32 1.442695, %v1486_v49  ;;  %v1817_v60 = vmul.f32 1.442695, %v1744_v31  ;;  %v2075_v36 = vmul.f32 1.442695, %v2002_v37 }
 0x192   :  { %v3341_v40 = vpop.eup %3340  ;;  %v2482_v32 = vadd.f32 %v3335_v5, %v2224_v25  ;;  %3356 = vpow2.f32 %v2653_v13  ;;  %v2333_v15 = vmul.f32 1.442695, %v2260_v18  ;;  %2964 = vst [vmem:[%s5599_s7 + $0x38] sm:$0xff] %v2836_v51  ;;  %v1057_v2 = vmul.f32 2.0, %v5740_v45  ;;  %v5746_v5 = vld [vmem:[#allocation116_spill] sm:$0xff]  ;;  %v5002_v31 = vpop.f32.mrb[21].mxu0 }
 0x193   :  { %v3343_v52 = vpop.eup %3342  ;;  %v1935_v57 = vadd.f32 %v3341_v40, %v3339_v27  ;;  %3358 = vpow2.f32 %v1559_v29  ;;  %v2591_v53 = vmul.f32 1.442695, %v2518_v48  ;;  %v1120_v4 = vsub.f32 %v5741_v14, %v1056_v56 }
 0x194   :  { %v3345_v35 = vpop.eup %3344  ;;  %v2740_v55 = vadd.f32 %v3337_v28, %v2482_v32  ;;  %3360 = vpow2.f32 %v1817_v60  ;;  %v1089_v33 = vsub.f32 %v5743_v11, %v1025_v26  ;;  %v1121_v8 = vsub.f32 %v5744_v9, %v1057_v2  ;;  %v5747_v32 = vld [vmem:[#allocation61_spill] sm:$0xff] }
 0x195   :  { %v3347_v54 = vpop.eup %3346  ;;  %v2193_v16 = vadd.f32 %v3343_v52, %v1935_v57  ;;  %3362 = vpow2.f32 %v2075_v36  ;;  %v1184_v58 = vmax.f32 %v1120_v4, 0.0  ;;  %v4995_v0 = vmul.f32 2.0, %v5745_v42 }
 0x196   :  { %v2868_v59 = vmul.f32 %v2740_v55, %v5742_v21  ;;  %3364 = vpow2.f32 %v2333_v15  ;;  %v1153_v1 = vmax.f32 %v1089_v33, 0.0  ;;  %v4997_v13 = vmax.f32 %v1121_v8, 0.0 }
 0x197   :  { %v2451_v20 = vadd.f32 %v3345_v35, %v2193_v16  ;;  %3366 = vpow2.f32 %v2591_v53  ;;  %v3349_v17 = vpop.eup %3348  ;;  %v5000_v49 = vmul.f32 2.0, %v5746_v5  ;;  %v1518_v63 = vmul.f32 %v4571_v44, %v1184_v58 }
 0x198   :  { %v3351_v37 = vpop.eup %3350  ;;  %v1776_v51 = vmul.f32 %v4573_v22, %v1184_v58  ;;  %v2034_v25 = vmul.f32 %v4575_v19, %v1184_v58  ;;  %2996 = vst [vmem:[%s5599_s7 + $0x138] sm:$0xff] %v2868_v59  ;;  %v2292_v29 = vmul.f32 %v4577_v43, %v1184_v58  ;;  %v2550_v60 = vmul.f32 %v4579_v47, %v1184_v58 }
 0x199   :  { %v2709_v28 = vadd.f32 %v3347_v54, %v2451_v20  ;;  %v1967_v27 = vadd.f32 %v3351_v37, %v3349_v17  ;;  %v1487_v36 = vmul.f32 %v4571_v44, %v1153_v1  ;;  %v1623_v52 = vmul.f32 1.442695, %v1518_v63  ;;  %v5016_v54 = vpop.f32.mrb[21].mxu1  ;;  %v5748_v37 = vld [vmem:[#allocation90_spill] sm:$0xff] }
 0x19a   :  { %v3353_v18 = vpop.eup %3352  ;;  %v1881_v57 = vmul.f32 1.442695, %v1776_v51  ;;  %v2139_v48 = vmul.f32 1.442695, %v2034_v25  ;;  %v2397_v35 = vmul.f32 1.442695, %v2292_v29  ;;  %v1745_v45 = vmul.f32 %v4573_v22, %v1153_v1 }
 0x19b   :  { %v3355_v40 = vpop.eup %3354  ;;  %v2837_v15 = vmul.f32 %v2709_v28, %v5747_v32  ;;  %v2225_v56 = vadd.f32 %v3353_v18, %v1967_v27  ;;  %v2655_v55 = vmul.f32 1.442695, %v2550_v60  ;;  %v1561_v7 = vmul.f32 1.442695, %v1487_v36  ;;  %v5749_v32 = vld [vmem:[#allocation7_spill] sm:$0xff] }
 0x19c   :  { %v3357_v12 = vpop.eup %3356  ;;  %3368 = vpow2.f32 %v1623_v52  ;;  %v2003_v2 = vmul.f32 %v4575_v19, %v1153_v1  ;;  %v2261_v14 = vmul.f32 %v4577_v43, %v1153_v1  ;;  %v2519_v4 = vmul.f32 %v4579_v47, %v1153_v1  ;;  %v5750_v52 = vld [vmem:[#allocation32_spill] sm:$0xff] }
 0x19d   :  { %v3359_v26 = vpop.eup %3358  ;;  %v2483_v53 = vadd.f32 %v3355_v40, %v2225_v56  ;;  %3370 = vpow2.f32 %v1881_v57  ;;  %2965 = vst [vmem:[%s5599_s7 + $0x40] sm:$0xff] %v2837_v15  ;;  %v1819_v11 = vmul.f32 1.442695, %v1745_v45  ;;  %v1519_v1 = vmul.f32 %v4571_v44, %v4997_v13  ;;  %v5752_v56 = vld [vmem:[#allocation118_spill] sm:$0xff] }
 0x19e   :  { %v3361_v16 = vpop.eup %3360  ;;  %3372 = vpow2.f32 %v2139_v48  ;;  %v2077_v33 = vmul.f32 1.442695, %v2003_v2  ;;  %v2335_v20 = vmul.f32 1.442695, %v2261_v14  ;;  %v2593_v58 = vmul.f32 1.442695, %v2519_v4 }
 0x19f   :  { %v3363_v21 = vpop.eup %3362  ;;  %v1936_v59 = vadd.f32 %v3361_v16, %v3359_v26  ;;  %v2741_v8 = vadd.f32 %v3357_v12, %v2483_v53  ;;  %3374 = vpow2.f32 %v2397_v35  ;;  %v1777_v5 = vmul.f32 %v4573_v22, %v4997_v13  ;;  %v5751_v48 = vld [vmem:[#allocation117_spill] sm:$0xff]  ;;  %v5754_v16 = vld [vmem:[#allocation12_spill] sm:$0xff] }
 0x1a0   :  { %v3365_v9 = vpop.eup %3364  ;;  %3376 = vpow2.f32 %v2655_v55  ;;  %v2035_v63 = vmul.f32 %v4575_v19, %v4997_v13  ;;  %v2293_v51 = vmul.f32 %v4577_v43, %v4997_v13  ;;  %v1625_v18 = vmul.f32 1.442695, %v1519_v1  ;;  %v5755_v14 = vld [vmem:[#allocation37_spill] sm:$0xff] }
 0x1a1   :  { %v3367_v42 = vpop.eup %3366  ;;  %v2194_v17 = vadd.f32 %v3363_v21, %v1936_v59  ;;  %v2869_v28 = vmul.f32 %v2741_v8, %v5748_v37  ;;  %3378 = vpow2.f32 %v1561_v7  ;;  %v1883_v27 = vmul.f32 1.442695, %v1777_v5  ;;  %v5753_v7 = vld [vmem:[#allocation62_spill] sm:$0xff]  ;;  %v5059_v5 = vpop.f32.mrb[22].mxu1 }
 0x1a2   :  { %3380 = vpow2.f32 %v1819_v11  ;;  %v2141_v29 = vmul.f32 1.442695, %v2035_v63  ;;  %v2399_v60 = vmul.f32 1.442695, %v2293_v51  ;;  %v2551_v40 = vmul.f32 %v4579_v47, %v4997_v13  ;;  %v5050_v11 = vpop.f32.mrb[22].mxu0 }
 0x1a3   :  { %v2452_v25 = vadd.f32 %v3365_v9, %v2194_v17  ;;  %3382 = vpow2.f32 %v2077_v33  ;;  %v1090_v15 = vsub.f32 %v5749_v32, %v4995_v0  ;;  %2997 = vst [vmem:[%s5599_s7 + $0x140] sm:$0xff] %v2869_v28  ;;  %v1122_v57 = vsub.f32 %v5750_v52, %v5000_v49 }
 0x1a4   :  { %3384 = vpow2.f32 %v2335_v20  ;;  %v1027_v12 = vmul.f32 2.0, %v5751_v48  ;;  %v5043_v35 = vmul.f32 2.0, %v5752_v56  ;;  %v2657_v13 = vmul.f32 1.442695, %v2551_v40 }
 0x1a5   :  { %v2710_v36 = vadd.f32 %v3367_v42, %v2452_v25  ;;  %3386 = vpow2.f32 %v2593_v58  ;;  %v1154_v45 = vmax.f32 %v1090_v15, 0.0  ;;  %v1186_v2 = vmax.f32 %v1122_v57, 0.0 }
 0x1a6   :  { %v3369_v55 = vpop.eup %3368  ;;  %3388 = vpow2.f32 %v1625_v18  ;;  %v1091_v53 = vsub.f32 %v5754_v16, %v1027_v12  ;;  %v1123_v4 = vsub.f32 %v5755_v14, %v5043_v35  ;;  %v5067_v14 = vpop.f32.mrb[23].mxu0 }
 0x1a7   :  { %v2838_v26 = vmul.f32 %v2710_v36, %v5753_v7  ;;  %v3371_v0 = vpop.eup %3370  ;;  %3390 = vpow2.f32 %v1883_v27  ;;  %v1488_v59 = vmul.f32 %v4571_v44, %v1154_v45  ;;  %v1746_v9 = vmul.f32 %v4573_v22, %v1154_v45 }
 0x1a8   :  { %v3373_v49 = vpop.eup %3372  ;;  %v1968_v21 = vadd.f32 %v3371_v0, %v3369_v55  ;;  %3392 = vpow2.f32 %v2141_v29  ;;  %v2004_v8 = vmul.f32 %v4575_v19, %v1154_v45  ;;  %v2262_v20 = vmul.f32 %v4577_v43, %v1154_v45 }
 0x1a9   :  { %v3375_v33 = vpop.eup %3374  ;;  %3394 = vpow2.f32 %v2399_v60  ;;  %2966 = vst [vmem:[%s5599_s7 + $0x48] sm:$0xff] %v2838_v26  ;;  %v1563_v17 = vmul.f32 1.442695, %v1488_v59  ;;  %v2520_v1 = vmul.f32 %v4579_v47, %v1154_v45  ;;  %v1821_v28 = vmul.f32 1.442695, %v1746_v9 }
 0x1aa   :  { %v3377_v58 = vpop.eup %3376  ;;  %v2226_v42 = vadd.f32 %v3373_v49, %v1968_v21  ;;  %3396 = vpow2.f32 %v2657_v13  ;;  %v2079_v63 = vmul.f32 1.442695, %v2004_v8  ;;  %v2337_v51 = vmul.f32 1.442695, %v2262_v20  ;;  %v5756_v13 = vld [vmem:[#allocation91_spill] sm:$0xff] }
 0x1ab   :  { %v3379_v37 = vpop.eup %3378  ;;  %v1520_v25 = vmul.f32 %v4571_v44, %v1186_v2  ;;  %3398 = vpow2.f32 %v1563_v17  ;;  %v2595_v29 = vmul.f32 1.442695, %v2520_v1  ;;  %v1778_v60 = vmul.f32 %v4573_v22, %v1186_v2 }
 0x1ac   :  { %v3381_v18 = vpop.eup %3380  ;;  %v2484_v27 = vadd.f32 %v3375_v33, %v2226_v42  ;;  %3400 = vpow2.f32 %v1821_v28  ;;  %v2036_v15 = vmul.f32 %v4575_v19, %v1186_v2  ;;  %v2294_v12 = vmul.f32 %v4577_v43, %v1186_v2  ;;  %v5757_v28 = vld [vmem:[#allocation59_spill] sm:$0xff] }
 0x1ad   :  { %v3383_v36 = vpop.eup %3382  ;;  %v1937_v40 = vadd.f32 %v3381_v18, %v3379_v37  ;;  %v1627_v32 = vmul.f32 1.442695, %v1520_v25  ;;  %3402 = vpow2.f32 %v2079_v63  ;;  %v1885_v48 = vmul.f32 1.442695, %v1778_v60  ;;  %v5077_v18 = vpop.f32.mrb[23].mxu1 }
 0x1ae   :  { %v3385_v52 = vpop.eup %3384  ;;  %v2742_v57 = vadd.f32 %v3377_v58, %v2484_v27  ;;  %3404 = vpow2.f32 %v2337_v51  ;;  %v2143_v55 = vmul.f32 1.442695, %v2036_v15  ;;  %v2552_v7 = vmul.f32 %v4579_v47, %v1186_v2 }
 0x1af   :  { %v3387_v56 = vpop.eup %3386  ;;  %v2195_v35 = vadd.f32 %v3383_v36, %v1937_v40  ;;  %3406 = vpow2.f32 %v2595_v29  ;;  %v2401_v0 = vmul.f32 1.442695, %v2294_v12  ;;  %v1155_v16 = vmax.f32 %v1091_v53, 0.0 }
 0x1b0   :  { %v3389_v26 = vpop.eup %3388  ;;  %v2870_v45 = vmul.f32 %v2742_v57, %v5756_v13  ;;  %3408 = vpow2.f32 %v1627_v32  ;;  %v2659_v59 = vmul.f32 1.442695, %v2552_v7  ;;  %v1187_v33 = vmax.f32 %v1123_v4, 0.0  ;;  %v5758_v13 = vld [vmem:[#allocation88_spill] sm:$0xff] }
 0x1b1   :  { %v3391_v49 = vpop.eup %3390  ;;  %v2453_v21 = vadd.f32 %v3385_v52, %v2195_v35  ;;  %3410 = vpow2.f32 %v1885_v48  ;;  %v1489_v20 = vmul.f32 %v4571_v44, %v1155_v16  ;;  %v1747_v42 = vmul.f32 %v4573_v22, %v1155_v16 }
 0x1b2   :  { %v3393_v9 = vpop.eup %3392  ;;  %v1969_v8 = vadd.f32 %v3391_v49, %v3389_v26  ;;  %3412 = vpow2.f32 %v2143_v55  ;;  %v2005_v17 = vmul.f32 %v4575_v19, %v1155_v16  ;;  %2998 = vst [vmem:[%s5599_s7 + $0x148] sm:$0xff] %v2870_v45  ;;  %v2263_v37 = vmul.f32 %v4577_v43, %v1155_v16 }
 0x1b3   :  { %v3395_v58 = vpop.eup %3394  ;;  %v2711_v2 = vadd.f32 %v3387_v56, %v2453_v21  ;;  %3414 = vpow2.f32 %v2401_v0  ;;  %v1565_v4 = vmul.f32 1.442695, %v1489_v20  ;;  %v1823_v51 = vmul.f32 1.442695, %v1747_v42 }
 0x1b4   :  { %v3397_v53 = vpop.eup %3396  ;;  %v2227_v1 = vadd.f32 %v3393_v9, %v1969_v8  ;;  %3416 = vpow2.f32 %v2659_v59  ;;  %v2081_v25 = vmul.f32 1.442695, %v2005_v17  ;;  %v2339_v60 = vmul.f32 1.442695, %v2263_v37  ;;  %v5759_v9 = vld [vmem:[#allocation119_spill] sm:$0xff]  ;;  %v5091_v37 = vpop.f32.mrb[24].mxu0 }
 0x1b5   :  { %v2839_v63 = vmul.f32 %v2711_v2, %v5757_v28  ;;  %v3399_v27 = vpop.eup %3398  ;;  %3418 = vpow2.f32 %v1565_v4  ;;  %v2521_v36 = vmul.f32 %v4579_v47, %v1155_v16  ;;  %v1521_v32 = vmul.f32 %v4571_v44, %v1187_v33 }
 0x1b6   :  { %v2485_v29 = vadd.f32 %v3395_v58, %v2227_v1  ;;  %v3401_v40 = vpop.eup %3400  ;;  %3420 = vpow2.f32 %v1823_v51  ;;  %v1779_v15 = vmul.f32 %v4573_v22, %v1187_v33  ;;  %v2037_v7 = vmul.f32 %v4575_v19, %v1187_v33  ;;  %v5760_v1 = vld [vmem:[#allocation13_spill] sm:$0xff] }
 0x1b7   :  { %v3403_v52 = vpop.eup %3402  ;;  %v1938_v48 = vadd.f32 %v3401_v40, %v3399_v27  ;;  %3422 = vpow2.f32 %v2081_v25  ;;  %v2597_v12 = vmul.f32 1.442695, %v2521_v36  ;;  %2967 = vst [vmem:[%s5599_s7 + $0x50] sm:$0xff] %v2839_v63  ;;  %v1629_v35 = vmul.f32 1.442695, %v1521_v32  ;;  %v5761_v63 = vld [vmem:[#allocation120_spill] sm:$0xff] }
 0x1b8   :  { %v2743_v57 = vadd.f32 %v3397_v53, %v2485_v29  ;;  %v3405_v56 = vpop.eup %3404  ;;  %3424 = vpow2.f32 %v2339_v60  ;;  %v1887_v55 = vmul.f32 1.442695, %v1779_v15  ;;  %v2295_v16 = vmul.f32 %v4577_v43, %v1187_v33  ;;  %v5101_v40 = vpop.f32.mrb[24].mxu1  ;;  %v5762_v15 = vld [vmem:[#allocation60_spill] sm:$0xff] }
 0x1b9   :  { %v3407_v26 = vpop.eup %3406  ;;  %v2196_v0 = vadd.f32 %v3403_v52, %v1938_v48  ;;  %3426 = vpow2.f32 %v2597_v12  ;;  %v2145_v21 = vmul.f32 1.442695, %v2037_v7  ;;  %v2553_v59 = vmul.f32 %v4579_v47, %v1187_v33  ;;  %v5764_v12 = vld [vmem:[#allocation10_spill] sm:$0xff] }
 0x1ba   :  { %v2871_v45 = vmul.f32 %v2743_v57, %v5758_v13  ;;  %v3409_v49 = vpop.eup %3408  ;;  %3428 = vpow2.f32 %v1629_v35  ;;  %v1028_v8 = vmul.f32 2.0, %v5759_v9  ;;  %v2403_v2 = vmul.f32 1.442695, %v2295_v16  ;;  %v5763_v57 = vld [vmem:[#allocation38_spill] sm:$0xff] }
 0x1bb   :  { %v3411_v20 = vpop.eup %3410  ;;  %v2454_v58 = vadd.f32 %v3405_v56, %v2196_v0  ;;  %3430 = vpow2.f32 %v1887_v55  ;;  %v2661_v53 = vmul.f32 1.442695, %v2553_v59  ;;  %v1060_v51 = vmul.f32 2.0, %v5761_v63  ;;  %v5120_v63 = vpop.f32.mrb[25].mxu0 }
 0x1bc   :  { %v3413_v42 = vpop.eup %3412  ;;  %v1970_v17 = vadd.f32 %v3411_v20, %v3409_v49  ;;  %3432 = vpow2.f32 %v2145_v21  ;;  %v1092_v4 = vsub.f32 %v5760_v1, %v1028_v8  ;;  %2999 = vst [vmem:[%s5599_s7 + $0x150] sm:$0xff] %v2871_v45  ;;  %v1029_v25 = vmul.f32 2.0, %v4806_v34 }
 0x1bd   :  { %v3415_v28 = vpop.eup %3414  ;;  %v2712_v33 = vadd.f32 %v3407_v26, %v2454_v58  ;;  %3434 = vpow2.f32 %v2403_v2  ;;  %v5099_v36 = vmul.f32 2.0, %v4815_v30  ;;  %v1124_v48 = vsub.f32 %v5763_v57, %v1060_v51 }
 0x1be   :  { %v3417_v27 = vpop.eup %3416  ;;  %v2228_v29 = vadd.f32 %v3413_v42, %v1970_v17  ;;  %3436 = vpow2.f32 %v2661_v53  ;;  %v1156_v60 = vmax.f32 %v1092_v4, 0.0  ;;  %v1093_v56 = vsub.f32 %v5764_v12, %v1029_v25  ;;  %v5765_v53 = vld [vmem:[#allocation89_spill] sm:$0xff] }
 0x1bf   :  { %v3419_v32 = vpop.eup %3418  ;;  %v2840_v52 = vmul.f32 %v2712_v33, %v5762_v15  ;;  %v5107_v35 = vmul.f32 2.0, %v4827_v3  ;;  %v1188_v42 = vmax.f32 %v1124_v48, 0.0 }
 0x1c0   :  { %v3421_v34 = vpop.eup %3420  ;;  %v2486_v55 = vadd.f32 %v3415_v28, %v2228_v29  ;;  %v1490_v7 = vmul.f32 %v4571_v44, %v1156_v60  ;;  %v1748_v26 = vmul.f32 %v4573_v22, %v1156_v60  ;;  %v2006_v30 = vmul.f32 %v4575_v19, %v1156_v60  ;;  %v5766_v28 = vld [vmem:[#allocation35_spill] sm:$0xff] }
 0x1c1   :  { %v3423_v13 = vpop.eup %3422  ;;  %v1939_v45 = vadd.f32 %v3421_v34, %v3419_v32  ;;  %v2264_v0 = vmul.f32 %v4577_v43, %v1156_v60  ;;  %v2522_v16 = vmul.f32 %v4579_v47, %v1156_v60  ;;  %2968 = vst [vmem:[%s5599_s7 + $0x58] sm:$0xff] %v2840_v52  ;;  %v1157_v4 = vmax.f32 %v1093_v56, 0.0 }
 0x1c2   :  { %v3425_v49 = vpop.eup %3424  ;;  %v2744_v21 = vadd.f32 %v3417_v27, %v2486_v55  ;;  %v1567_v59 = vmul.f32 1.442695, %v1490_v7  ;;  %v1825_v9 = vmul.f32 1.442695, %v1748_v26  ;;  %v2083_v3 = vmul.f32 1.442695, %v2006_v30 }
 0x1c3   :  { %v3427_v8 = vpop.eup %3426  ;;  %v2197_v20 = vadd.f32 %v3423_v13, %v1939_v45  ;;  %v2341_v58 = vmul.f32 1.442695, %v2264_v0  ;;  %v2599_v2 = vmul.f32 1.442695, %v2522_v16  ;;  %v1125_v33 = vsub.f32 %v5766_v28, %v5099_v36  ;;  %v5767_v7 = vld [vmem:[#allocation65_spill] sm:$0xff]  ;;  %v5769_v28 = vld [vmem:[#allocation11_spill] sm:$0xff] }
 0x1c4   :  { %v3429_v17 = vpop.eup %3428  ;;  %v2872_v1 = vmul.f32 %v2744_v21, %v5765_v53  ;;  %3438 = vpow2.f32 %v1567_v59  ;;  %v1522_v27 = vmul.f32 %v4571_v44, %v1188_v42  ;;  %v1780_v29 = vmul.f32 %v4573_v22, %v1188_v42 }
 0x1c5   :  { %v3431_v51 = vpop.eup %3430  ;;  %v2455_v25 = vadd.f32 %v3425_v49, %v2197_v20  ;;  %3440 = vpow2.f32 %v1825_v9  ;;  %v2038_v15 = vmul.f32 %v4575_v19, %v1188_v42  ;;  %v2296_v55 = vmul.f32 %v4577_v43, %v1188_v42 }
 0x1c6   :  { %v3433_v60 = vpop.eup %3432  ;;  %v1971_v32 = vadd.f32 %v3431_v51, %v3429_v17  ;;  %3442 = vpow2.f32 %v2083_v3  ;;  %v1631_v48 = vmul.f32 1.442695, %v1522_v27  ;;  %v1889_v12 = vmul.f32 1.442695, %v1780_v29  ;;  %3000 = vst [vmem:[%s5599_s7 + $0x158] sm:$0xff] %v2872_v1  ;;  %v5768_v17 = vld [vmem:[#allocation94_spill] sm:$0xff] }
 0x1c7   :  { %v3435_v52 = vpop.eup %3434  ;;  %v2713_v57 = vadd.f32 %v3427_v8, %v2455_v25  ;;  %3444 = vpow2.f32 %v2341_v58  ;;  %v2147_v34 = vmul.f32 1.442695, %v2038_v15  ;;  %v2554_v30 = vmul.f32 %v4579_v47, %v1188_v42 }
 0x1c8   :  { %v3437_v36 = vpop.eup %3436  ;;  %v2229_v56 = vadd.f32 %v3433_v60, %v1971_v32  ;;  %3446 = vpow2.f32 %v2599_v2  ;;  %v1491_v13 = vmul.f32 %v4571_v44, %v1157_v4  ;;  %v2405_v0 = vmul.f32 1.442695, %v2296_v55  ;;  %v5139_v2 = vpop.f32.mrb[25].mxu1 }
 0x1c9   :  { %v2841_v26 = vmul.f32 %v2713_v57, %v5767_v7  ;;  %3448 = vpow2.f32 %v1631_v48  ;;  %v1749_v16 = vmul.f32 %v4573_v22, %v1157_v4  ;;  %v2663_v49 = vmul.f32 1.442695, %v2554_v30 }
 0x1ca   :  { %v2487_v45 = vadd.f32 %v3435_v52, %v2229_v56  ;;  %3450 = vpow2.f32 %v1889_v12  ;;  %v1569_v21 = vmul.f32 1.442695, %v1491_v13  ;;  %v2007_v3 = vmul.f32 %v4575_v19, %v1157_v4 }
 0x1cb   :  { %3452 = vpow2.f32 %v2147_v34  ;;  %v1827_v9 = vmul.f32 1.442695, %v1749_v16  ;;  %2969 = vst [vmem:[%s5599_s7 + $0x60] sm:$0xff] %v2841_v26  ;;  %v2265_v8 = vmul.f32 %v4577_v43, %v1157_v4  ;;  %v2523_v20 = vmul.f32 %v4579_v47, %v1157_v4 }
 0x1cc   :  { %v2745_v59 = vadd.f32 %v3437_v36, %v2487_v45  ;;  %3454 = vpow2.f32 %v2405_v0  ;;  %v1189_v58 = vmax.f32 %v1125_v33, 0.0  ;;  %v2085_v1 = vmul.f32 1.442695, %v2007_v3 }
 0x1cd   :  { %3456 = vpow2.f32 %v2663_v49  ;;  %v1094_v51 = vsub.f32 %v5769_v28, %v5107_v35  ;;  %v2343_v27 = vmul.f32 1.442695, %v2265_v8  ;;  %v2601_v29 = vmul.f32 1.442695, %v2523_v20 }
 0x1ce   :  { %v3439_v42 = vpop.eup %3438  ;;  %v2873_v53 = vmul.f32 %v2745_v59, %v5768_v17  ;;  %3458 = vpow2.f32 %v1569_v21  ;;  %v1523_v60 = vmul.f32 %v4571_v44, %v1189_v58  ;;  %v1781_v4 = vmul.f32 %v4573_v22, %v1189_v58 }
 0x1cf   :  { %v3441_v25 = vpop.eup %3440  ;;  %3460 = vpow2.f32 %v1827_v9  ;;  %v2039_v57 = vmul.f32 %v4575_v19, %v1189_v58  ;;  %v2297_v48 = vmul.f32 %v4577_v43, %v1189_v58  ;;  %v2555_v56 = vmul.f32 %v4579_v47, %v1189_v58  ;;  %v5155_v9 = vpop.f32.mrb[26].mxu0 }
 0x1d0   :  { %v3443_v32 = vpop.eup %3442  ;;  %v1940_v15 = vadd.f32 %v3441_v25, %v3439_v42  ;;  %3462 = vpow2.f32 %v2085_v1  ;;  %v1633_v52 = vmul.f32 1.442695, %v1523_v60  ;;  %3001 = vst [vmem:[%s5599_s7 + $0x160] sm:$0xff] %v2873_v53  ;;  %v1891_v36 = vmul.f32 1.442695, %v1781_v4  ;;  %v5159_v1 = vpop.f32.mrb[26].mxu1 }
 0x1d1   :  { %v3445_v33 = vpop.eup %3444  ;;  %3464 = vpow2.f32 %v2343_v27  ;;  %v2149_v55 = vmul.f32 1.442695, %v2039_v57  ;;  %v2407_v7 = vmul.f32 1.442695, %v2297_v48  ;;  %v1158_v26 = vmax.f32 %v1094_v51, 0.0  ;;  %v5770_v51 = vld [vmem:[#allocation66_spill] sm:$0xff] }
 0x1d2   :  { %v3447_v12 = vpop.eup %3446  ;;  %v2198_v35 = vadd.f32 %v3443_v32, %v1940_v15  ;;  %3466 = vpow2.f32 %v2601_v29  ;;  %v2665_v45 = vmul.f32 1.442695, %v2555_v56  ;;  %v1062_v0 = vmul.f32 2.0, %v4840_v46  ;;  %v5771_v4 = vld [vmem:[#allocation36_spill] sm:$0xff] }
 0x1d3   :  { %v3449_v34 = vpop.eup %3448  ;;  %3468 = vpow2.f32 %v1633_v52  ;;  %v1492_v21 = vmul.f32 %v4571_v44, %v1158_v26  ;;  %v1750_v59 = vmul.f32 %v4573_v22, %v1158_v26  ;;  %v2008_v20 = vmul.f32 %v4575_v19, %v1158_v26 }
 0x1d4   :  { %v3451_v30 = vpop.eup %3450  ;;  %v2456_v13 = vadd.f32 %v3445_v33, %v2198_v35  ;;  %3470 = vpow2.f32 %v1891_v36  ;;  %v2266_v58 = vmul.f32 %v4577_v43, %v1158_v26  ;;  %v2524_v60 = vmul.f32 %v4579_v47, %v1158_v26 }
 0x1d5   :  { %v3453_v16 = vpop.eup %3452  ;;  %v1972_v49 = vadd.f32 %v3451_v30, %v3449_v34  ;;  %3472 = vpow2.f32 %v2149_v55  ;;  %v1571_v46 = vmul.f32 1.442695, %v1492_v21  ;;  %v1829_v53 = vmul.f32 1.442695, %v1750_v59  ;;  %v5772_v34 = vld [vmem:[#allocation16_spill] sm:$0xff]  ;;  %v5174_v21 = vpop.f32.mrb[27].mxu0 }
 0x1d6   :  { %v3455_v3 = vpop.eup %3454  ;;  %v2714_v8 = vadd.f32 %v3447_v12, %v2456_v13  ;;  %3474 = vpow2.f32 %v2407_v7  ;;  %v2087_v27 = vmul.f32 1.442695, %v2008_v20  ;;  %v2345_v29 = vmul.f32 1.442695, %v2266_v58 }
 0x1d7   :  { %v3457_v42 = vpop.eup %3456  ;;  %v2230_v17 = vadd.f32 %v3453_v16, %v1972_v49  ;;  %3476 = vpow2.f32 %v2665_v45  ;;  %v1126_v33 = vsub.f32 %v5771_v4, %v1062_v0  ;;  %v1031_v52 = vmul.f32 2.0, %v4863_v61  ;;  %v5773_v45 = vld [vmem:[#allocation95_spill] sm:$0xff] }
 0x1d8   :  { %v3459_v28 = vpop.eup %3458  ;;  %v2842_v25 = vmul.f32 %v2714_v8, %v5770_v51  ;;  %3478 = vpow2.f32 %v1571_v46  ;;  %v2603_v12 = vmul.f32 1.442695, %v2524_v60  ;;  %v1063_v30 = vmul.f32 2.0, %v4874_v38  ;;  %v5775_v4 = vld [vmem:[#allocation63_spill] sm:$0xff] }
 0x1d9   :  { %v3461_v32 = vpop.eup %3460  ;;  %v2488_v15 = vadd.f32 %v3455_v3, %v2230_v17  ;;  %3480 = vpow2.f32 %v1829_v53  ;;  %v1190_v56 = vmax.f32 %v1126_v33, 0.0  ;;  %v1095_v55 = vsub.f32 %v5772_v34, %v1031_v52  ;;  %v5776_v52 = vld [vmem:[#allocation17_spill] sm:$0xff] }
 0x1da   :  { %v3463_v57 = vpop.eup %3462  ;;  %v1941_v48 = vadd.f32 %v3461_v32, %v3459_v28  ;;  %3482 = vpow2.f32 %v2087_v27  ;;  %2970 = vst [vmem:[%s5599_s7 + $0x68] sm:$0xff] %v2842_v25  ;;  %v1032_v61 = vmul.f32 2.0, %v4885_v24  ;;  %v5774_v32 = vld [vmem:[#allocation41_spill] sm:$0xff] }
 0x1db   :  { %v3465_v35 = vpop.eup %3464  ;;  %v2746_v36 = vadd.f32 %v3457_v42, %v2488_v15  ;;  %3484 = vpow2.f32 %v2345_v29  ;;  %v1524_v16 = vmul.f32 %v4571_v44, %v1190_v56  ;;  %v1782_v49 = vmul.f32 %v4573_v22, %v1190_v56 }
 0x1dc   :  { %v3467_v7 = vpop.eup %3466  ;;  %v2199_v26 = vadd.f32 %v3463_v57, %v1941_v48  ;;  %3486 = vpow2.f32 %v2603_v12  ;;  %v2040_v8 = vmul.f32 %v4575_v19, %v1190_v56  ;;  %v2298_v20 = vmul.f32 %v4577_v43, %v1190_v56  ;;  %v5188_v12 = vpop.f32.mrb[27].mxu1 }
 0x1dd   :  { %v3469_v13 = vpop.eup %3468  ;;  %v2874_v0 = vmul.f32 %v2746_v36, %v5773_v45  ;;  %v2556_v38 = vmul.f32 %v4579_v47, %v1190_v56  ;;  %v1635_v42 = vmul.f32 1.442695, %v1524_v16  ;;  %v1893_v17 = vmul.f32 1.442695, %v1782_v49 }
 0x1de   :  { %v3471_v59 = vpop.eup %3470  ;;  %v2457_v3 = vadd.f32 %v3465_v35, %v2199_v26  ;;  %v2151_v28 = vmul.f32 1.442695, %v2040_v8  ;;  %v2409_v51 = vmul.f32 1.442695, %v2298_v20  ;;  %v1159_v60 = vmax.f32 %v1095_v55, 0.0  ;;  %v5777_v8 = vld [vmem:[#allocation92_spill] sm:$0xff] }
 0x1df   :  { %v3473_v58 = vpop.eup %3472  ;;  %v1973_v24 = vadd.f32 %v3471_v59, %v3469_v13  ;;  %v2667_v25 = vmul.f32 1.442695, %v2556_v38  ;;  %3002 = vst [vmem:[%s5599_s7 + $0x168] sm:$0xff] %v2874_v0  ;;  %3488 = vpow2.f32 %v1635_v42  ;;  %v1127_v15 = vsub.f32 %v5774_v32, %v1063_v30 }
 0x1e0   :  { %v3475_v46 = vpop.eup %3474  ;;  %v2715_v53 = vadd.f32 %v3467_v7, %v2457_v3  ;;  %3490 = vpow2.f32 %v1893_v17  ;;  %v1096_v57 = vsub.f32 %v5776_v52, %v1032_v61  ;;  %v5186_v48 = vmul.f32 2.0, %v4900_v50  ;;  %v5778_v17 = vld [vmem:[#allocation42_spill] sm:$0xff] }
 0x1e1   :  { %v3477_v27 = vpop.eup %3476  ;;  %v2231_v29 = vadd.f32 %v3473_v58, %v1973_v24  ;;  %3492 = vpow2.f32 %v2151_v28  ;;  %v1493_v56 = vmul.f32 %v4571_v44, %v1159_v60  ;;  %v1751_v34 = vmul.f32 %v4573_v22, %v1159_v60 }
 0x1e2   :  { %v2843_v33 = vmul.f32 %v2715_v53, %v5775_v4  ;;  %v3479_v35 = vpop.eup %3478  ;;  %3494 = vpow2.f32 %v2409_v51  ;;  %v2009_v7 = vmul.f32 %v4575_v19, %v1159_v60  ;;  %v2267_v26 = vmul.f32 %v4577_v43, %v1159_v60 }
 0x1e3   :  { %v2489_v36 = vadd.f32 %v3475_v46, %v2231_v29  ;;  %v3481_v55 = vpop.eup %3480  ;;  %3496 = vpow2.f32 %v2667_v25  ;;  %v1573_v50 = vmul.f32 1.442695, %v1493_v56  ;;  %v1831_v0 = vmul.f32 1.442695, %v1751_v34 }
 0x1e4   :  { %v3483_v30 = vpop.eup %3482  ;;  %v1942_v13 = vadd.f32 %v3481_v55, %v3479_v35  ;;  %2971 = vst [vmem:[%s5599_s7 + $0x70] sm:$0xff] %v2843_v33  ;;  %v2089_v16 = vmul.f32 1.442695, %v2009_v7  ;;  %v2347_v49 = vmul.f32 1.442695, %v2267_v26  ;;  %v2525_v59 = vmul.f32 %v4579_v47, %v1159_v60  ;;  %v5211_v7 = vpop.f32.mrb[28].mxu0 }
 0x1e5   :  { %v2747_v61 = vadd.f32 %v3477_v27, %v2489_v36  ;;  %v3485_v45 = vpop.eup %3484  ;;  %3498 = vpow2.f32 %v1573_v50  ;;  %v1191_v58 = vmax.f32 %v1127_v15, 0.0  ;;  %v1160_v42 = vmax.f32 %v1096_v57, 0.0  ;;  %v5779_v36 = vld [vmem:[#allocation64_spill] sm:$0xff] }
 0x1e6   :  { %v3487_v3 = vpop.eup %3486  ;;  %v2200_v38 = vadd.f32 %v3483_v30, %v1942_v13  ;;  %3500 = vpow2.f32 %v1831_v0  ;;  %v2605_v24 = vmul.f32 1.442695, %v2525_v59  ;;  %v1128_v46 = vsub.f32 %v5778_v17, %v5186_v48 }
 0x1e7   :  { %v2875_v20 = vmul.f32 %v2747_v61, %v5777_v8  ;;  %3502 = vpow2.f32 %v2089_v16  ;;  %v1525_v28 = vmul.f32 %v4571_v44, %v1191_v58  ;;  %v1783_v51 = vmul.f32 %v4573_v22, %v1191_v58 }
 0x1e8   :  { %v2458_v53 = vadd.f32 %v3485_v45, %v2200_v38  ;;  %3504 = vpow2.f32 %v2347_v49  ;;  %v2041_v25 = vmul.f32 %v4575_v19, %v1191_v58  ;;  %v2299_v27 = vmul.f32 %v4577_v43, %v1191_v58 }
 0x1e9   :  { %v3489_v29 = vpop.eup %3488  ;;  %3003 = vst [vmem:[%s5599_s7 + $0x170] sm:$0xff] %v2875_v20  ;;  %3506 = vpow2.f32 %v2605_v24  ;;  %v1637_v32 = vmul.f32 1.442695, %v1525_v28  ;;  %v2557_v15 = vmul.f32 %v4579_v47, %v1191_v58  ;;  %v1895_v33 = vmul.f32 1.442695, %v1783_v51 }
 0x1ea   :  { %v2716_v60 = vadd.f32 %v3487_v3, %v2458_v53  ;;  %v3491_v4 = vpop.eup %3490  ;;  %v2153_v52 = vmul.f32 1.442695, %v2041_v25  ;;  %v2411_v57 = vmul.f32 1.442695, %v2299_v27  ;;  %v1494_v48 = vmul.f32 %v4571_v44, %v1160_v42  ;;  %v5217_v3 = vpop.f32.mrb[28].mxu1 }
 0x1eb   :  { %v3493_v35 = vpop.eup %3492  ;;  %v1974_v34 = vadd.f32 %v3491_v4, %v3489_v29  ;;  %3508 = vpow2.f32 %v1637_v32  ;;  %v2669_v55 = vmul.f32 1.442695, %v2557_v15  ;;  %v1752_v61 = vmul.f32 %v4573_v22, %v1160_v42  ;;  %v5780_v4 = vld [vmem:[#allocation93_spill] sm:$0xff] }
 0x1ec   :  { %v2844_v56 = vmul.f32 %v2716_v60, %v5779_v36  ;;  %v3495_v26 = vpop.eup %3494  ;;  %3510 = vpow2.f32 %v1895_v33  ;;  %v1575_v30 = vmul.f32 1.442695, %v1494_v48  ;;  %v2010_v13 = vmul.f32 %v4575_v19, %v1160_v42 }
 0x1ed   :  { %v3497_v50 = vpop.eup %3496  ;;  %v2232_v45 = vadd.f32 %v3493_v35, %v1974_v34  ;;  %3512 = vpow2.f32 %v2153_v52  ;;  %v2268_v0 = vmul.f32 %v4577_v43, %v1160_v42  ;;  %v1833_v16 = vmul.f32 1.442695, %v1752_v61  ;;  %v5230_v34 = vpop.f32.mrb[29].mxu0  ;;  %v5782_v61 = vld [vmem:[#allocation39_spill] sm:$0xff] }
 0x1ee   :  { %3514 = vpow2.f32 %v2411_v57  ;;  %v2091_v49 = vmul.f32 1.442695, %v2010_v13  ;;  %v2526_v59 = vmul.f32 %v4579_v47, %v1160_v42  ;;  %2972 = vst [vmem:[%s5599_s7 + $0x78] sm:$0xff] %v2844_v56  ;;  %v1192_v58 = vmax.f32 %v1128_v46, 0.0 }
 0x1ef   :  { %v3499_v8 = vpop.eup %3498  ;;  %v2490_v20 = vadd.f32 %v3495_v26, %v2232_v45  ;;  %3516 = vpow2.f32 %v2669_v55  ;;  %v2349_v38 = vmul.f32 1.442695, %v2268_v0  ;;  %v1033_v53 = vmul.f32 2.0, %v4919_v10  ;;  %v5781_v26 = vld [vmem:[#allocation14_spill] sm:$0xff] }
 0x1f0   :  { %v3501_v24 = vpop.eup %3500  ;;  %3518 = vpow2.f32 %v1575_v30  ;;  %v2607_v17 = vmul.f32 1.442695, %v2526_v59  ;;  %v1065_v28 = vmul.f32 2.0, %v4929_v41  ;;  %v1526_v27 = vmul.f32 %v4571_v44, %v1192_v58 }
 0x1f1   :  { %v3503_v51 = vpop.eup %3502  ;;  %v2748_v42 = vadd.f32 %v3497_v50, %v2490_v20  ;;  %v1943_v25 = vadd.f32 %v3501_v24, %v3499_v8  ;;  %3520 = vpow2.f32 %v1833_v16  ;;  %v1784_v60 = vmul.f32 %v4573_v22, %v1192_v58 }
 0x1f2   :  { %v3505_v29 = vpop.eup %3504  ;;  %3522 = vpow2.f32 %v2091_v49  ;;  %v2042_v32 = vmul.f32 %v4575_v19, %v1192_v58  ;;  %v2300_v46 = vmul.f32 %v4577_v43, %v1192_v58  ;;  %v1639_v41 = vmul.f32 1.442695, %v1526_v27 }
 0x1f3   :  { %v3507_v15 = vpop.eup %3506  ;;  %v2876_v33 = vmul.f32 %v2748_v42, %v5780_v4  ;;  %v2201_v10 = vadd.f32 %v3503_v51, %v1943_v25  ;;  %3524 = vpow2.f32 %v2349_v38  ;;  %v1897_v52 = vmul.f32 1.442695, %v1784_v60  ;;  %v5783_v38 = vld [vmem:[#allocation15_spill] sm:$0xff]  ;;  %v5243_v51 = vpop.f32.mrb[29].mxu1 }
 0x1f4   :  { %3526 = vpow2.f32 %v2607_v17  ;;  %v2155_v57 = vmul.f32 1.442695, %v2042_v32  ;;  %v2413_v48 = vmul.f32 1.442695, %v2300_v46  ;;  %v2558_v56 = vmul.f32 %v4579_v47, %v1192_v58  ;;  %v5784_v17 = vld [vmem:[#allocation69_spill] sm:$0xff] }
 0x1f5   :  { %v3509_v35 = vpop.eup %3508  ;;  %v2459_v36 = vadd.f32 %v3505_v29, %v2201_v10  ;;  %3528 = vpow2.f32 %v1639_v41  ;;  %v1097_v30 = vsub.f32 %v5781_v26, %v1033_v53  ;;  %v1129_v13 = vsub.f32 %v5782_v61, %v1065_v28  ;;  %3004 = vst [vmem:[%s5599_s7 + $0x178] sm:$0xff] %v2876_v33 }
 0x1f6   :  { %v3511_v55 = vpop.eup %3510  ;;  %3530 = vpow2.f32 %v1897_v52  ;;  %v1034_v50 = vmul.f32 2.0, %v4949_v23  ;;  %v2671_v49 = vmul.f32 1.442695, %v2558_v56  ;;  %v5241_v23 = vmul.f32 2.0, %v4956_v62 }
 0x1f7   :  { %v3513_v45 = vpop.eup %3512  ;;  %v2717_v0 = vadd.f32 %v3507_v15, %v2459_v36  ;;  %v1975_v16 = vadd.f32 %v3511_v55, %v3509_v35  ;;  %3532 = vpow2.f32 %v2155_v57  ;;  %v1161_v8 = vmax.f32 %v1097_v30, 0.0 }
 0x1f8   :  { %v3515_v59 = vpop.eup %3514  ;;  %3534 = vpow2.f32 %v2413_v48  ;;  %v1193_v20 = vmax.f32 %v1129_v13, 0.0  ;;  %v1098_v58 = vsub.f32 %v5783_v38, %v1034_v50  ;;  %v5785_v50 = vld [vmem:[#allocation98_spill] sm:$0xff] }
 0x1f9   :  { %v3517_v24 = vpop.eup %3516  ;;  %v2845_v53 = vmul.f32 %v2717_v0, %v5784_v17  ;;  %v2233_v28 = vadd.f32 %v3513_v45, %v1975_v16  ;;  %3536 = vpow2.f32 %v2671_v49  ;;  %v1495_v25 = vmul.f32 %v4571_v44, %v1161_v8 }
 0x1fa   :  { %v3519_v42 = vpop.eup %3518  ;;  %v1753_v27 = vmul.f32 %v4573_v22, %v1161_v8  ;;  %v2011_v29 = vmul.f32 %v4575_v19, %v1161_v8  ;;  %v2269_v60 = vmul.f32 %v4577_v43, %v1161_v8  ;;  %v2527_v15 = vmul.f32 %v4579_v47, %v1161_v8 }
 0x1fb   :  { %v3521_v32 = vpop.eup %3520  ;;  %v2491_v46 = vadd.f32 %v3515_v59, %v2233_v28  ;;  %v1527_v4 = vmul.f32 %v4571_v44, %v1193_v20  ;;  %v1577_v10 = vmul.f32 1.442695, %v1495_v25  ;;  %2973 = vst [vmem:[%s5599_s7 + $0x80] sm:$0xff] %v2845_v53  ;;  %v1785_v30 = vmul.f32 %v4573_v22, %v1193_v20  ;;  %v5259_v28 = vpop.f32.mrb[30].mxu0 }
 0x1fc   :  { %v3523_v33 = vpop.eup %3522  ;;  %v1944_v62 = vadd.f32 %v3521_v32, %v3519_v42  ;;  %v1835_v41 = vmul.f32 1.442695, %v1753_v27  ;;  %v2093_v52 = vmul.f32 1.442695, %v2011_v29  ;;  %v2351_v35 = vmul.f32 1.442695, %v2269_v60 }
 0x1fd   :  { %v3525_v57 = vpop.eup %3524  ;;  %v2749_v48 = vadd.f32 %v3517_v24, %v2491_v46  ;;  %v2609_v36 = vmul.f32 1.442695, %v2527_v15  ;;  %v1641_v56 = vmul.f32 1.442695, %v1527_v4  ;;  %3538 = vpow2.f32 %v1577_v10  ;;  %v5786_v32 = vld [vmem:[#allocation40_spill] sm:$0xff]  ;;  %v5787_v4 = vld [vmem:[#allocation70_spill] sm:$0xff] }
 0x1fe   :  { %v3527_v55 = vpop.eup %3526  ;;  %v2202_v26 = vadd.f32 %v3523_v33, %v1944_v62  ;;  %v2043_v61 = vmul.f32 %v4575_v19, %v1193_v20  ;;  %3540 = vpow2.f32 %v1835_v41  ;;  %v2301_v0 = vmul.f32 %v4577_v43, %v1193_v20 }
 0x1ff   :  { %v3529_v13 = vpop.eup %3528  ;;  %v2877_v45 = vmul.f32 %v2749_v48, %v5785_v50  ;;  %v2559_v16 = vmul.f32 %v4579_v47, %v1193_v20  ;;  %3542 = vpow2.f32 %v2093_v52  ;;  %v1899_v8 = vmul.f32 1.442695, %v1785_v30  ;;  %v5788_v30 = vld [vmem:[#allocation20_spill] sm:$0xff]  ;;  %v5789_v50 = vld [vmem:[#allocation99_spill] sm:$0xff] }
 0x200   :  { %v3531_v49 = vpop.eup %3530  ;;  %v2460_v59 = vadd.f32 %v3525_v57, %v2202_v26  ;;  %v2157_v38 = vmul.f32 1.442695, %v2043_v61  ;;  %3544 = vpow2.f32 %v2351_v35  ;;  %v2415_v53 = vmul.f32 1.442695, %v2301_v0 }
 0x201   :  { %v3533_v24 = vpop.eup %3532  ;;  %v1976_v17 = vadd.f32 %v3531_v49, %v3529_v13  ;;  %3546 = vpow2.f32 %v2609_v36  ;;  %v2673_v27 = vmul.f32 1.442695, %v2559_v16  ;;  %v1162_v29 = vmax.f32 %v1098_v58, 0.0  ;;  %3005 = vst [vmem:[%s5599_s7 + $0x180] sm:$0xff] %v2877_v45  ;;  %v5272_v36 = vpop.f32.mrb[30].mxu1 }
 0x202   :  { %v3535_v42 = vpop.eup %3534  ;;  %v2718_v25 = vadd.f32 %v3527_v55, %v2460_v59  ;;  %3548 = vpow2.f32 %v1641_v56  ;;  %v1130_v46 = vsub.f32 %v5786_v32, %v5241_v23  ;;  %v1035_v15 = vmul.f32 2.0, %v4971_v39 }
 0x203   :  { %v3537_v60 = vpop.eup %3536  ;;  %v2234_v20 = vadd.f32 %v3533_v24, %v1976_v17  ;;  %3550 = vpow2.f32 %v1899_v8  ;;  %v1496_v62 = vmul.f32 %v4571_v44, %v1162_v29  ;;  %v1754_v10 = vmul.f32 %v4573_v22, %v1162_v29 }
 0x204   :  { %v2846_v33 = vmul.f32 %v2718_v25, %v5787_v4  ;;  %3552 = vpow2.f32 %v2157_v38  ;;  %v2012_v41 = vmul.f32 %v4575_v19, %v1162_v29  ;;  %v2270_v52 = vmul.f32 %v4577_v43, %v1162_v29 }
 0x205   :  { %v2492_v58 = vadd.f32 %v3535_v42, %v2234_v20  ;;  %3554 = vpow2.f32 %v2415_v53  ;;  %v1579_v57 = vmul.f32 1.442695, %v1496_v62  ;;  %v1837_v48 = vmul.f32 1.442695, %v1754_v10  ;;  %v5790_v62 = vld [vmem:[#allocation45_spill] sm:$0xff] }
 0x206   :  { %3556 = vpow2.f32 %v2673_v27  ;;  %v2095_v23 = vmul.f32 1.442695, %v2012_v41  ;;  %v2353_v39 = vmul.f32 1.442695, %v2270_v52  ;;  %2974 = vst [vmem:[%s5599_s7 + $0x88] sm:$0xff] %v2846_v33  ;;  %v2528_v55 = vmul.f32 %v4579_v47, %v1162_v29 }
 0x207   :  { %v2750_v35 = vadd.f32 %v3537_v60, %v2492_v58  ;;  %v3539_v56 = vpop.eup %3538  ;;  %3558 = vpow2.f32 %v1579_v57  ;;  %v1194_v26 = vmax.f32 %v1130_v46, 0.0  ;;  %v1099_v61 = vsub.f32 %v5788_v30, %v1035_v15  ;;  %v5292_v46 = vpop.f32.mrb[31].mxu0 }
 0x208   :  { %v3541_v13 = vpop.eup %3540  ;;  %3560 = vpow2.f32 %v1837_v48  ;;  %v1067_v0 = vmul.f32 2.0, %v4981_v6  ;;  %v5282_v16 = vmul.f32 2.0, %v5002_v31  ;;  %v2611_v8 = vmul.f32 1.442695, %v2528_v55 }
 0x209   :  { %v2878_v45 = vmul.f32 %v2750_v35, %v5789_v50  ;;  %v3543_v49 = vpop.eup %3542  ;;  %v1945_v59 = vadd.f32 %v3541_v13, %v3539_v56  ;;  %3562 = vpow2.f32 %v2095_v23  ;;  %v1528_v38 = vmul.f32 %v4571_v44, %v1194_v26  ;;  %v5791_v50 = vld [vmem:[#allocation67_spill] sm:$0xff] }
 0x20a   :  { %v3545_v24 = vpop.eup %3544  ;;  %3564 = vpow2.f32 %v2353_v39  ;;  %v1786_v17 = vmul.f32 %v4573_v22, %v1194_v26  ;;  %v2044_v53 = vmul.f32 %v4575_v19, %v1194_v26  ;;  %v2302_v6 = vmul.f32 %v4577_v43, %v1194_v26 }
 0x20b   :  { %v3547_v42 = vpop.eup %3546  ;;  %v2203_v25 = vadd.f32 %v3543_v49, %v1945_v59  ;;  %3566 = vpow2.f32 %v2611_v8  ;;  %v1643_v27 = vmul.f32 1.442695, %v1528_v38  ;;  %3006 = vst [vmem:[%s5599_s7 + $0x188] sm:$0xff] %v2878_v45  ;;  %v2560_v20 = vmul.f32 %v4579_v47, %v1194_v26 }
 0x20c   :  { %v3549_v31 = vpop.eup %3548  ;;  %v1901_v29 = vmul.f32 1.442695, %v1786_v17  ;;  %v2159_v60 = vmul.f32 1.442695, %v2044_v53  ;;  %v1163_v32 = vmax.f32 %v1099_v61, 0.0  ;;  %v1131_v10 = vsub.f32 %v5790_v62, %v1067_v0  ;;  %v5299_v61 = vpop.f32.mrb[31].mxu1 }
 0x20d   :  { %v3551_v15 = vpop.eup %3550  ;;  %v2461_v4 = vadd.f32 %v3545_v24, %v2203_v25  ;;  %3568 = vpow2.f32 %v1643_v27  ;;  %v2417_v33 = vmul.f32 1.442695, %v2302_v6  ;;  %v2675_v52 = vmul.f32 1.442695, %v2560_v20 }
 0x20e   :  { %v3553_v58 = vpop.eup %3552  ;;  %v1977_v41 = vadd.f32 %v3551_v15, %v3549_v31  ;;  %3570 = vpow2.f32 %v1901_v29  ;;  %v1497_v57 = vmul.f32 %v4571_v44, %v1163_v32  ;;  %v1755_v23 = vmul.f32 %v4573_v22, %v1163_v32  ;;  %v5792_v31 = vld [vmem:[#allocation21_spill] sm:$0xff] }
 0x20f   :  { %v3555_v48 = vpop.eup %3554  ;;  %v2719_v35 = vadd.f32 %v3547_v42, %v2461_v4  ;;  %3572 = vpow2.f32 %v2159_v60  ;;  %v2013_v39 = vmul.f32 %v4575_v19, %v1163_v32  ;;  %v2271_v30 = vmul.f32 %v4577_v43, %v1163_v32  ;;  %v5793_v4 = vld [vmem:[#allocation96_spill] sm:$0xff] }
 0x210   :  { %v3557_v56 = vpop.eup %3556  ;;  %v2235_v55 = vadd.f32 %v3553_v58, %v1977_v41  ;;  %3574 = vpow2.f32 %v2417_v33  ;;  %v1581_v26 = vmul.f32 1.442695, %v1497_v57  ;;  %v1839_v0 = vmul.f32 1.442695, %v1755_v23 }
 0x211   :  { %v3559_v13 = vpop.eup %3558  ;;  %v2847_v45 = vmul.f32 %v2719_v35, %v5791_v50  ;;  %3576 = vpow2.f32 %v2675_v52  ;;  %v2097_v49 = vmul.f32 1.442695, %v2013_v39  ;;  %v2355_v38 = vmul.f32 1.442695, %v2271_v30 }
 0x212   :  { %v3561_v59 = vpop.eup %3560  ;;  %v2493_v8 = vadd.f32 %v3555_v48, %v2235_v55  ;;  %3578 = vpow2.f32 %v1581_v26  ;;  %v2529_v24 = vmul.f32 %v4579_v47, %v1163_v32  ;;  %v1195_v42 = vmax.f32 %v1131_v10, 0.0 }
 0x213   :  { %v3563_v17 = vpop.eup %3562  ;;  %v1946_v53 = vadd.f32 %v3561_v59, %v3559_v13  ;;  %3580 = vpow2.f32 %v1839_v0  ;;  %v1100_v29 = vsub.f32 %v5792_v31, %v5282_v16  ;;  %2975 = vst [vmem:[%s5599_s7 + $0x90] sm:$0xff] %v2847_v45  ;;  %v5794_v59 = vld [vmem:[#allocation68_spill] sm:$0xff] }
 0x214   :  { %v3565_v25 = vpop.eup %3564  ;;  %v2751_v27 = vadd.f32 %v3557_v56, %v2493_v8  ;;  %3582 = vpow2.f32 %v2097_v49  ;;  %v2613_v6 = vmul.f32 1.442695, %v2529_v24  ;;  %v1529_v32 = vmul.f32 %v4571_v44, %v1195_v42 }
 0x215   :  { %v3567_v60 = vpop.eup %3566  ;;  %v2204_v20 = vadd.f32 %v3563_v17, %v1946_v53  ;;  %3584 = vpow2.f32 %v2355_v38  ;;  %v1787_v15 = vmul.f32 %v4573_v22, %v1195_v42  ;;  %v2045_v62 = vmul.f32 %v4575_v19, %v1195_v42 }
 0x216   :  { %v2879_v33 = vmul.f32 %v2751_v27, %v5793_v4  ;;  %3586 = vpow2.f32 %v2613_v6  ;;  %v2303_v10 = vmul.f32 %v4577_v43, %v1195_v42  ;;  %v1645_v41 = vmul.f32 1.442695, %v1529_v32 }
 0x217   :  { %v3569_v58 = vpop.eup %3568  ;;  %v2462_v16 = vadd.f32 %v3565_v25, %v2204_v20  ;;  %v1903_v52 = vmul.f32 1.442695, %v1787_v15  ;;  %v2561_v57 = vmul.f32 %v4579_v47, %v1195_v42  ;;  %v2161_v35 = vmul.f32 1.442695, %v2045_v62 }
 0x218   :  { %v3571_v48 = vpop.eup %3570  ;;  %v2419_v23 = vmul.f32 1.442695, %v2303_v10  ;;  %v1164_v39 = vmax.f32 %v1100_v29, 0.0  ;;  %3588 = vpow2.f32 %v1645_v41  ;;  %3007 = vst [vmem:[%s5599_s7 + $0x190] sm:$0xff] %v2879_v33  ;;  %v1068_v32 = vmul.f32 2.0, %v5016_v54  ;;  %v5795_v41 = vld [vmem:[#allocation46_spill] sm:$0xff] }
 0x219   :  { %v3573_v56 = vpop.eup %3572  ;;  %v2720_v55 = vadd.f32 %v3567_v60, %v2462_v16  ;;  %v1978_v26 = vadd.f32 %v3571_v48, %v3569_v58  ;;  %v2677_v30 = vmul.f32 1.442695, %v2561_v57  ;;  %3590 = vpow2.f32 %v1903_v52  ;;  %v5796_v57 = vld [vmem:[#allocation97_spill] sm:$0xff]  ;;  %v5797_v54 = vld [vmem:[#allocation18_spill] sm:$0xff] }
 0x21a   :  { %v3575_v13 = vpop.eup %3574  ;;  %v1498_v50 = vmul.f32 %v4571_v44, %v1164_v39  ;;  %v1756_v45 = vmul.f32 %v4573_v22, %v1164_v39  ;;  %v2014_v0 = vmul.f32 %v4575_v19, %v1164_v39  ;;  %3592 = vpow2.f32 %v2161_v35 }
 0x21b   :  { %v3577_v49 = vpop.eup %3576  ;;  %v2848_v8 = vmul.f32 %v2720_v55, %v5794_v59  ;;  %v2236_v38 = vadd.f32 %v3573_v56, %v1978_v26  ;;  %v2272_v24 = vmul.f32 %v4577_v43, %v1164_v39  ;;  %3594 = vpow2.f32 %v2419_v23  ;;  %v5798_v23 = vld [vmem:[#allocation43_spill] sm:$0xff] }
 0x21c   :  { %v3579_v17 = vpop.eup %3578  ;;  %v1583_v53 = vmul.f32 1.442695, %v1498_v50  ;;  %v1841_v42 = vmul.f32 1.442695, %v1756_v45  ;;  %v2099_v25 = vmul.f32 1.442695, %v2014_v0  ;;  %3596 = vpow2.f32 %v2677_v30 }
 0x21d   :  { %v3581_v27 = vpop.eup %3580  ;;  %v2494_v6 = vadd.f32 %v3575_v13, %v2236_v38  ;;  %v2357_v31 = vmul.f32 1.442695, %v2272_v24  ;;  %v2530_v20 = vmul.f32 %v4579_v47, %v1164_v39  ;;  %2976 = vst [vmem:[%s5599_s7 + $0x98] sm:$0xff] %v2848_v8  ;;  %v1037_v33 = vmul.f32 2.0, %v5050_v11 }
 0x21e   :  { %v3583_v29 = vpop.eup %3582  ;;  %v1947_v60 = vadd.f32 %v3581_v27, %v3579_v17  ;;  %3598 = vpow2.f32 %v1583_v53  ;;  %v1069_v62 = vmul.f32 2.0, %v5059_v5  ;;  %v1132_v52 = vsub.f32 %v5795_v41, %v1068_v32  ;;  %v5799_v53 = vld [vmem:[#allocation73_spill] sm:$0xff] }
 0x21f   :  { %v3585_v15 = vpop.eup %3584  ;;  %v2752_v4 = vadd.f32 %v3577_v49, %v2494_v6  ;;  %3600 = vpow2.f32 %v1841_v42  ;;  %v2615_v16 = vmul.f32 1.442695, %v2530_v20  ;;  %v1101_v35 = vsub.f32 %v5797_v54, %v1037_v33 }
 0x220   :  { %v3587_v10 = vpop.eup %3586  ;;  %v2205_v58 = vadd.f32 %v3583_v29, %v1947_v60  ;;  %3602 = vpow2.f32 %v2099_v25  ;;  %v1133_v39 = vsub.f32 %v5798_v23, %v1069_v62  ;;  %v1196_v55 = vmax.f32 %v1132_v52, 0.0 }
 0x221   :  { %v2880_v48 = vmul.f32 %v2752_v4, %v5796_v57  ;;  %3604 = vpow2.f32 %v2357_v31  ;;  %v5334_v11 = vmul.f32 2.0, %v5067_v14  ;;  %v1165_v26 = vmax.f32 %v1101_v35, 0.0 }
 0x222   :  { %v2463_v56 = vadd.f32 %v3585_v15, %v2205_v58  ;;  %3606 = vpow2.f32 %v2615_v16  ;;  %v3589_v5 = vpop.eup %3588  ;;  %v1197_v30 = vmax.f32 %v1133_v39, 0.0  ;;  %v5337_v13 = vmul.f32 2.0, %v5077_v18 }
 0x223   :  { %v3591_v50 = vpop.eup %3590  ;;  %v1530_v0 = vmul.f32 %v4571_v44, %v1196_v55  ;;  %v1788_v49 = vmul.f32 %v4573_v22, %v1196_v55  ;;  %v2046_v59 = vmul.f32 %v4575_v19, %v1196_v55  ;;  %3008 = vst [vmem:[%s5599_s7 + $0x198] sm:$0xff] %v2880_v48  ;;  %v2304_v38 = vmul.f32 %v4577_v43, %v1196_v55 }
 0x224   :  { %v2721_v45 = vadd.f32 %v3587_v10, %v2463_v56  ;;  %v3593_v8 = vpop.eup %3592  ;;  %v1979_v14 = vadd.f32 %v3591_v50, %v3589_v5  ;;  %v2562_v24 = vmul.f32 %v4579_v47, %v1196_v55  ;;  %v1499_v18 = vmul.f32 %v4571_v44, %v1165_v26  ;;  %v5800_v50 = vld [vmem:[#allocation102_spill] sm:$0xff] }
 0x225   :  { %v3595_v17 = vpop.eup %3594  ;;  %v1647_v25 = vmul.f32 1.442695, %v1530_v0  ;;  %v1905_v27 = vmul.f32 1.442695, %v1788_v49  ;;  %v2163_v6 = vmul.f32 1.442695, %v2046_v59  ;;  %v1757_v4 = vmul.f32 %v4573_v22, %v1165_v26 }
 0x226   :  { %v2849_v42 = vmul.f32 %v2721_v45, %v5799_v53  ;;  %v3597_v31 = vpop.eup %3596  ;;  %v2237_v29 = vadd.f32 %v3593_v8, %v1979_v14  ;;  %v2421_v60 = vmul.f32 1.442695, %v2304_v38  ;;  %v2679_v20 = vmul.f32 1.442695, %v2562_v24  ;;  %v5801_v53 = vld [vmem:[#allocation19_spill] sm:$0xff] }
 0x227   :  { %v1585_v32 = vmul.f32 1.442695, %v1499_v18  ;;  %3608 = vpow2.f32 %v1647_v25  ;;  %v2015_v33 = vmul.f32 %v4575_v19, %v1165_v26  ;;  %v2273_v58 = vmul.f32 %v4577_v43, %v1165_v26  ;;  %v5802_v25 = vld [vmem:[#allocation44_spill] sm:$0xff] }
 0x228   :  { %v3599_v15 = vpop.eup %3598  ;;  %v2495_v10 = vadd.f32 %v3595_v17, %v2237_v29  ;;  %3610 = vpow2.f32 %v1905_v27  ;;  %v2531_v16 = vmul.f32 %v4579_v47, %v1165_v26  ;;  %2977 = vst [vmem:[%s5599_s7 + $0xa0] sm:$0xff] %v2849_v42  ;;  %v1843_v57 = vmul.f32 1.442695, %v1757_v4  ;;  %v5804_v4 = vld [vmem:[#allocation24_spill] sm:$0xff] }
 0x229   :  { %v3601_v62 = vpop.eup %3600  ;;  %3612 = vpow2.f32 %v2163_v6  ;;  %v2101_v48 = vmul.f32 1.442695, %v2015_v33  ;;  %v2359_v23 = vmul.f32 1.442695, %v2273_v58  ;;  %v1531_v5 = vmul.f32 %v4571_v44, %v1197_v30 }
 0x22a   :  { %v3603_v41 = vpop.eup %3602  ;;  %v1948_v52 = vadd.f32 %v3601_v62, %v3599_v15  ;;  %v2753_v35 = vadd.f32 %v3597_v31, %v2495_v10  ;;  %3614 = vpow2.f32 %v2421_v60  ;;  %v2617_v39 = vmul.f32 1.442695, %v2531_v16  ;;  %v5803_v60 = vld [vmem:[#allocation74_spill] sm:$0xff]  ;;  %v5805_v62 = vld [vmem:[#allocation49_spill] sm:$0xff] }
 0x22b   :  { %v3605_v54 = vpop.eup %3604  ;;  %3616 = vpow2.f32 %v2679_v20  ;;  %v1789_v26 = vmul.f32 %v4573_v22, %v1197_v30  ;;  %v2047_v0 = vmul.f32 %v4575_v19, %v1197_v30  ;;  %v2305_v49 = vmul.f32 %v4577_v43, %v1197_v30 }
 0x22c   :  { %v3607_v56 = vpop.eup %3606  ;;  %v2206_v55 = vadd.f32 %v3603_v41, %v1948_v52  ;;  %v2881_v45 = vmul.f32 %v2753_v35, %v5800_v50  ;;  %3618 = vpow2.f32 %v1585_v32  ;;  %v1649_v8 = vmul.f32 1.442695, %v1531_v5 }
 0x22d   :  { %3620 = vpow2.f32 %v1843_v57  ;;  %v1907_v14 = vmul.f32 1.442695, %v1789_v26  ;;  %v2165_v38 = vmul.f32 1.442695, %v2047_v0  ;;  %v2423_v24 = vmul.f32 1.442695, %v2305_v49 }
 0x22e   :  { %v2464_v59 = vadd.f32 %v3605_v54, %v2206_v55  ;;  %3622 = vpow2.f32 %v2101_v48  ;;  %v2563_v17 = vmul.f32 %v4579_v47, %v1197_v30  ;;  %v1102_v42 = vsub.f32 %v5801_v53, %v5334_v11  ;;  %3009 = vst [vmem:[%s5599_s7 + $0x1a0] sm:$0xff] %v2881_v45 }
 0x22f   :  { %3624 = vpow2.f32 %v2359_v23  ;;  %v1134_v27 = vsub.f32 %v5802_v25, %v5337_v13  ;;  %v1039_v6 = vmul.f32 2.0, %v5091_v37  ;;  %v1071_v31 = vmul.f32 2.0, %v5101_v40 }
 0x230   :  { %v2722_v18 = vadd.f32 %v3607_v56, %v2464_v59  ;;  %3626 = vpow2.f32 %v2617_v39  ;;  %v2681_v30 = vmul.f32 1.442695, %v2563_v17  ;;  %v1166_v32 = vmax.f32 %v1102_v42, 0.0 }
 0x231   :  { %v3609_v29 = vpop.eup %3608  ;;  %3628 = vpow2.f32 %v1649_v8  ;;  %v1198_v11 = vmax.f32 %v1134_v27, 0.0  ;;  %v1103_v33 = vsub.f32 %v5804_v4, %v1039_v6  ;;  %v1135_v10 = vsub.f32 %v5805_v62, %v1071_v31  ;;  %v5806_v31 = vld [vmem:[#allocation103_spill] sm:$0xff] }
 0x232   :  { %v2850_v20 = vmul.f32 %v2722_v18, %v5803_v60  ;;  %v3611_v15 = vpop.eup %3610  ;;  %3630 = vpow2.f32 %v1907_v14  ;;  %v1500_v37 = vmul.f32 %v4571_v44, %v1166_v32  ;;  %v1758_v40 = vmul.f32 %v4573_v22, %v1166_v32 }
 0x233   :  { %v3613_v58 = vpop.eup %3612  ;;  %v1980_v16 = vadd.f32 %v3611_v15, %v3609_v29  ;;  %3632 = vpow2.f32 %v2165_v38  ;;  %v2016_v41 = vmul.f32 %v4575_v19, %v1166_v32  ;;  %v2274_v52 = vmul.f32 %v4577_v43, %v1166_v32 }
 0x234   :  { %v3615_v13 = vpop.eup %3614  ;;  %3634 = vpow2.f32 %v2423_v24  ;;  %2978 = vst [vmem:[%s5599_s7 + $0xa8] sm:$0xff] %v2850_v20  ;;  %v1587_v54 = vmul.f32 1.442695, %v1500_v37  ;;  %v2532_v35 = vmul.f32 %v4579_v47, %v1166_v32  ;;  %v1845_v39 = vmul.f32 1.442695, %v1758_v40 }
 0x235   :  { %v3617_v57 = vpop.eup %3616  ;;  %v2238_v48 = vadd.f32 %v3613_v58, %v1980_v16  ;;  %3636 = vpow2.f32 %v2681_v30  ;;  %v2103_v56 = vmul.f32 1.442695, %v2016_v41  ;;  %v2361_v55 = vmul.f32 1.442695, %v2274_v52 }
 0x236   :  { %v3619_v23 = vpop.eup %3618  ;;  %v1532_v5 = vmul.f32 %v4571_v44, %v1198_v11  ;;  %3638 = vpow2.f32 %v1587_v54  ;;  %v2619_v45 = vmul.f32 1.442695, %v2532_v35  ;;  %v1790_v0 = vmul.f32 %v4573_v22, %v1198_v11 }
 0x237   :  { %v3621_v26 = vpop.eup %3620  ;;  %v2496_v50 = vadd.f32 %v3615_v13, %v2238_v48  ;;  %3640 = vpow2.f32 %v1845_v39  ;;  %v2048_v14 = vmul.f32 %v4575_v19, %v1198_v11  ;;  %v2306_v17 = vmul.f32 %v4577_v43, %v1198_v11 }
 0x238   :  { %v3623_v49 = vpop.eup %3622  ;;  %v1949_v59 = vadd.f32 %v3621_v26, %v3619_v23  ;;  %v1651_v8 = vmul.f32 1.442695, %v1532_v5  ;;  %3642 = vpow2.f32 %v2103_v56  ;;  %v1909_v18 = vmul.f32 1.442695, %v1790_v0 }
 0x239   :  { %v3625_v38 = vpop.eup %3624  ;;  %v2754_v24 = vadd.f32 %v3617_v57, %v2496_v50  ;;  %3644 = vpow2.f32 %v2361_v55  ;;  %v2167_v25 = vmul.f32 1.442695, %v2048_v14  ;;  %v2564_v27 = vmul.f32 %v4579_v47, %v1198_v11  ;;  %v5807_v57 = vld [vmem:[#allocation71_spill] sm:$0xff] }
 0x23a   :  { %v3627_v53 = vpop.eup %3626  ;;  %v2207_v42 = vadd.f32 %v3623_v49, %v1949_v59  ;;  %3646 = vpow2.f32 %v2619_v45  ;;  %v2425_v60 = vmul.f32 1.442695, %v2306_v17  ;;  %v1167_v20 = vmax.f32 %v1103_v33, 0.0  ;;  %v5808_v17 = vld [vmem:[#allocation100_spill] sm:$0xff] }
 0x23b   :  { %v3629_v6 = vpop.eup %3628  ;;  %v2882_v29 = vmul.f32 %v2754_v24, %v5806_v31  ;;  %3648 = vpow2.f32 %v1651_v8  ;;  %v2683_v15 = vmul.f32 1.442695, %v2564_v27  ;;  %v1199_v4 = vmax.f32 %v1135_v10, 0.0 }
 0x23c   :  { %v3631_v30 = vpop.eup %3630  ;;  %v2465_v32 = vadd.f32 %v3625_v38, %v2207_v42  ;;  %3650 = vpow2.f32 %v1909_v18  ;;  %v1501_v16 = vmul.f32 %v4571_v44, %v1167_v20  ;;  %v1759_v11 = vmul.f32 %v4573_v22, %v1167_v20 }
 0x23d   :  { %v3633_v62 = vpop.eup %3632  ;;  %v1981_v58 = vadd.f32 %v3631_v30, %v3629_v6  ;;  %3652 = vpow2.f32 %v2167_v25  ;;  %v2017_v40 = vmul.f32 %v4575_v19, %v1167_v20  ;;  %3010 = vst [vmem:[%s5599_s7 + $0x1a8] sm:$0xff] %v2882_v29  ;;  %v2275_v52 = vmul.f32 %v4577_v43, %v1167_v20 }
 0x23e   :  { %v3635_v37 = vpop.eup %3634  ;;  %v2723_v13 = vadd.f32 %v3627_v53, %v2465_v32  ;;  %3654 = vpow2.f32 %v2425_v60  ;;  %v1589_v10 = vmul.f32 1.442695, %v1501_v16  ;;  %v1847_v54 = vmul.f32 1.442695, %v1759_v11 }
 0x23f   :  { %v3637_v41 = vpop.eup %3636  ;;  %v2239_v33 = vadd.f32 %v3633_v62, %v1981_v58  ;;  %3656 = vpow2.f32 %v2683_v15  ;;  %v2105_v35 = vmul.f32 1.442695, %v2017_v40  ;;  %v2363_v56 = vmul.f32 1.442695, %v2275_v52  ;;  %v5809_v58 = vld [vmem:[#allocation25_spill] sm:$0xff]  ;;  %v5810_v52 = vld [vmem:[#allocation72_spill] sm:$0xff] }
 0x240   :  { %v2851_v48 = vmul.f32 %v2723_v13, %v5807_v57  ;;  %v3639_v23 = vpop.eup %3638  ;;  %3658 = vpow2.f32 %v1589_v10  ;;  %v2533_v55 = vmul.f32 %v4579_v47, %v1167_v20  ;;  %v1533_v26 = vmul.f32 %v4571_v44, %v1199_v4 }
 0x241   :  { %v2497_v39 = vadd.f32 %v3635_v37, %v2239_v33  ;;  %v3641_v5 = vpop.eup %3640  ;;  %3660 = vpow2.f32 %v1847_v54  ;;  %v1791_v50 = vmul.f32 %v4573_v22, %v1199_v4  ;;  %v2049_v24 = vmul.f32 %v4575_v19, %v1199_v4 }
 0x242   :  { %v3643_v45 = vpop.eup %3642  ;;  %v1950_v49 = vadd.f32 %v3641_v5, %v3639_v23  ;;  %3662 = vpow2.f32 %v2105_v35  ;;  %v2621_v59 = vmul.f32 1.442695, %v2533_v55  ;;  %2979 = vst [vmem:[%s5599_s7 + $0xb0] sm:$0xff] %v2851_v48  ;;  %v1653_v14 = vmul.f32 1.442695, %v1533_v26  ;;  %v5811_v48 = vld [vmem:[#allocation50_spill] sm:$0xff] }
 0x243   :  { %v2755_v0 = vadd.f32 %v3637_v41, %v2497_v39  ;;  %v3645_v8 = vpop.eup %3644  ;;  %3664 = vpow2.f32 %v2363_v56  ;;  %v1911_v38 = vmul.f32 1.442695, %v1791_v50  ;;  %v2307_v25 = vmul.f32 %v4577_v43, %v1199_v4  ;;  %v5812_v35 = vld [vmem:[#allocation22_spill] sm:$0xff] }
 0x244   :  { %v3647_v18 = vpop.eup %3646  ;;  %v2208_v42 = vadd.f32 %v3643_v45, %v1950_v49  ;;  %3666 = vpow2.f32 %v2621_v59  ;;  %v2169_v6 = vmul.f32 1.442695, %v2049_v24  ;;  %v2565_v31 = vmul.f32 %v4579_v47, %v1199_v4 }
 0x245   :  { %v2883_v53 = vmul.f32 %v2755_v0, %v5808_v17  ;;  %v3649_v27 = vpop.eup %3648  ;;  %3668 = vpow2.f32 %v1653_v14  ;;  %v1040_v29 = vmul.f32 2.0, %v5120_v63  ;;  %v2427_v30 = vmul.f32 1.442695, %v2307_v25 }
 0x246   :  { %v3651_v60 = vpop.eup %3650  ;;  %v2466_v20 = vadd.f32 %v3645_v8, %v2208_v42  ;;  %3670 = vpow2.f32 %v1911_v38  ;;  %v2685_v62 = vmul.f32 1.442695, %v2565_v31  ;;  %v1072_v4 = vmul.f32 2.0, %v5139_v2  ;;  %v5813_v42 = vld [vmem:[#allocation101_spill] sm:$0xff] }
 0x247   :  { %v3653_v32 = vpop.eup %3652  ;;  %v1982_v15 = vadd.f32 %v3651_v60, %v3649_v27  ;;  %3672 = vpow2.f32 %v2169_v6  ;;  %v1104_v16 = vsub.f32 %v5809_v58, %v1040_v29  ;;  %3011 = vst [vmem:[%s5599_s7 + $0x1b0] sm:$0xff] %v2883_v53  ;;  %v1041_v63 = vmul.f32 2.0, %v5155_v9  ;;  %v5814_v6 = vld [vmem:[#allocation47_spill] sm:$0xff] }
 0x248   :  { %v3655_v37 = vpop.eup %3654  ;;  %v2724_v13 = vadd.f32 %v3647_v18, %v2466_v20  ;;  %3674 = vpow2.f32 %v2427_v30  ;;  %v5414_v33 = vmul.f32 2.0, %v5159_v1  ;;  %v1136_v54 = vsub.f32 %v5811_v48, %v1072_v4 }
 0x249   :  { %v3657_v11 = vpop.eup %3656  ;;  %v2240_v40 = vadd.f32 %v3653_v32, %v1982_v15  ;;  %3676 = vpow2.f32 %v2685_v62  ;;  %v1168_v41 = vmax.f32 %v1104_v16, 0.0  ;;  %v1105_v23 = vsub.f32 %v5812_v35, %v1041_v63 }
 0x24a   :  { %v3659_v10 = vpop.eup %3658  ;;  %v2852_v57 = vmul.f32 %v2724_v13, %v5810_v52  ;;  %v5420_v39 = vmul.f32 2.0, %v5174_v21  ;;  %v1200_v17 = vmax.f32 %v1136_v54, 0.0  ;;  %v1137_v31 = vsub.f32 %v5814_v6, %v5414_v33 }
 0x24b   :  { %v3661_v2 = vpop.eup %3660  ;;  %v2498_v56 = vadd.f32 %v3655_v37, %v2240_v40  ;;  %v1502_v9 = vmul.f32 %v4571_v44, %v1168_v41  ;;  %v1760_v55 = vmul.f32 %v4573_v22, %v1168_v41  ;;  %v2018_v5 = vmul.f32 %v4575_v19, %v1168_v41 }
 0x24c   :  { %v3663_v1 = vpop.eup %3662  ;;  %v1951_v26 = vadd.f32 %v3661_v2, %v3659_v10  ;;  %v2276_v50 = vmul.f32 %v4577_v43, %v1168_v41  ;;  %v2534_v45 = vmul.f32 %v4579_v47, %v1168_v41  ;;  %2980 = vst [vmem:[%s5599_s7 + $0xb8] sm:$0xff] %v2852_v57  ;;  %v1169_v27 = vmax.f32 %v1105_v23, 0.0  ;;  %v5815_v41 = vld [vmem:[#allocation77_spill] sm:$0xff] }
 0x24d   :  { %v3665_v0 = vpop.eup %3664  ;;  %v2756_v49 = vadd.f32 %v3657_v11, %v2498_v56  ;;  %v1591_v59 = vmul.f32 1.442695, %v1502_v9  ;;  %v1849_v8 = vmul.f32 1.442695, %v1760_v55  ;;  %v2107_v21 = vmul.f32 1.442695, %v2018_v5 }
 0x24e   :  { %v3667_v14 = vpop.eup %3666  ;;  %v2209_v38 = vadd.f32 %v3663_v1, %v1951_v26  ;;  %v2365_v24 = vmul.f32 1.442695, %v2276_v50  ;;  %v2623_v18 = vmul.f32 1.442695, %v2534_v45  ;;  %v1534_v20 = vmul.f32 %v4571_v44, %v1200_v17  ;;  %v5816_v50 = vld [vmem:[#allocation106_spill] sm:$0xff] }
 0x24f   :  { %v3669_v53 = vpop.eup %3668  ;;  %v2884_v25 = vmul.f32 %v2756_v49, %v5813_v42  ;;  %3678 = vpow2.f32 %v1591_v59  ;;  %v1792_v30 = vmul.f32 %v4573_v22, %v1200_v17  ;;  %v2050_v62 = vmul.f32 %v4575_v19, %v1200_v17  ;;  %v5817_v49 = vld [vmem:[#allocation23_spill] sm:$0xff] }
 0x250   :  { %v3671_v29 = vpop.eup %3670  ;;  %v2467_v60 = vadd.f32 %v3665_v0, %v2209_v38  ;;  %3680 = vpow2.f32 %v1849_v8  ;;  %v1655_v37 = vmul.f32 1.442695, %v1534_v20  ;;  %v2308_v40 = vmul.f32 %v4577_v43, %v1200_v17 }
 0x251   :  { %v3673_v32 = vpop.eup %3672  ;;  %v1983_v15 = vadd.f32 %v3671_v29, %v3669_v53  ;;  %3682 = vpow2.f32 %v2107_v21  ;;  %v1913_v13 = vmul.f32 1.442695, %v1792_v30  ;;  %3012 = vst [vmem:[%s5599_s7 + $0x1b8] sm:$0xff] %v2884_v25  ;;  %v2171_v11 = vmul.f32 1.442695, %v2050_v62 }
 0x252   :  { %v3675_v58 = vpop.eup %3674  ;;  %v2725_v16 = vadd.f32 %v3667_v14, %v2467_v60  ;;  %3684 = vpow2.f32 %v2365_v24  ;;  %v2566_v10 = vmul.f32 %v4579_v47, %v1200_v17  ;;  %v1503_v52 = vmul.f32 %v4571_v44, %v1169_v27 }
 0x253   :  { %v3677_v4 = vpop.eup %3676  ;;  %v2241_v63 = vadd.f32 %v3673_v32, %v1983_v15  ;;  %3686 = vpow2.f32 %v2623_v18  ;;  %v2429_v48 = vmul.f32 1.442695, %v2308_v40  ;;  %v1761_v54 = vmul.f32 %v4573_v22, %v1169_v27 }
 0x254   :  { %v2853_v33 = vmul.f32 %v2725_v16, %v5815_v41  ;;  %3688 = vpow2.f32 %v1655_v37  ;;  %v2687_v35 = vmul.f32 1.442695, %v2566_v10  ;;  %v1593_v23 = vmul.f32 1.442695, %v1503_v52 }
 0x255   :  { %v2499_v57 = vadd.f32 %v3675_v58, %v2241_v63  ;;  %3690 = vpow2.f32 %v1913_v13  ;;  %v1851_v56 = vmul.f32 1.442695, %v1761_v54  ;;  %v2019_v9 = vmul.f32 %v4575_v19, %v1169_v27  ;;  %v5818_v54 = vld [vmem:[#allocation78_spill] sm:$0xff] }
 0x256   :  { %3692 = vpow2.f32 %v2171_v11  ;;  %2981 = vst [vmem:[%s5599_s7 + $0xc0] sm:$0xff] %v2853_v33  ;;  %v2277_v55 = vmul.f32 %v4577_v43, %v1169_v27  ;;  %v2535_v5 = vmul.f32 %v4579_v47, %v1169_v27  ;;  %v1201_v1 = vmax.f32 %v1137_v31, 0.0 }
 0x257   :  { %v2757_v2 = vadd.f32 %v3677_v4, %v2499_v57  ;;  %3694 = vpow2.f32 %v2429_v48  ;;  %v2109_v0 = vmul.f32 1.442695, %v2019_v9  ;;  %v1106_v59 = vsub.f32 %v5817_v49, %v5420_v39 }
 0x258   :  { %3696 = vpow2.f32 %v2687_v35  ;;  %v2367_v21 = vmul.f32 1.442695, %v2277_v55  ;;  %v2625_v14 = vmul.f32 1.442695, %v2535_v5  ;;  %v1535_v38 = vmul.f32 %v4571_v44, %v1201_v1  ;;  %v5819_v5 = vld [vmem:[#allocation48_spill] sm:$0xff] }
 0x259   :  { %v3679_v26 = vpop.eup %3678  ;;  %v2885_v45 = vmul.f32 %v2757_v2, %v5816_v50  ;;  %3698 = vpow2.f32 %v1593_v23  ;;  %v1793_v17 = vmul.f32 %v4573_v22, %v1201_v1  ;;  %v2051_v25 = vmul.f32 %v4575_v19, %v1201_v1 }
 0x25a   :  { %v3681_v8 = vpop.eup %3680  ;;  %3700 = vpow2.f32 %v1851_v56  ;;  %v1657_v42 = vmul.f32 1.442695, %v1535_v38  ;;  %v2309_v27 = vmul.f32 %v4577_v43, %v1201_v1  ;;  %v2567_v29 = vmul.f32 %v4579_v47, %v1201_v1 }
 0x25b   :  { %v3683_v24 = vpop.eup %3682  ;;  %v1952_v18 = vadd.f32 %v3681_v8, %v3679_v26  ;;  %3702 = vpow2.f32 %v2109_v0  ;;  %3013 = vst [vmem:[%s5599_s7 + $0x1c0] sm:$0xff] %v2885_v45  ;;  %v1915_v31 = vmul.f32 1.442695, %v1793_v17  ;;  %v2173_v20 = vmul.f32 1.442695, %v2051_v25 }
 0x25c   :  { %v3685_v53 = vpop.eup %3684  ;;  %3704 = vpow2.f32 %v2367_v21  ;;  %v2431_v30 = vmul.f32 1.442695, %v2309_v27  ;;  %v1170_v32 = vmax.f32 %v1106_v59, 0.0  ;;  %v2689_v58 = vmul.f32 1.442695, %v2567_v29  ;;  %v5820_v21 = vld [vmem:[#allocation28_spill] sm:$0xff] }
 0x25d   :  { %v3687_v6 = vpop.eup %3686  ;;  %v2210_v39 = vadd.f32 %v3683_v24, %v1952_v18  ;;  %3706 = vpow2.f32 %v2625_v14  ;;  %v1074_v16 = vmul.f32 2.0, %v5188_v12  ;;  %v1043_v26 = vmul.f32 2.0, %v5211_v7 }
 0x25e   :  { %v3689_v60 = vpop.eup %3688  ;;  %3708 = vpow2.f32 %v1657_v42  ;;  %v1504_v4 = vmul.f32 %v4571_v44, %v1170_v32  ;;  %v1762_v63 = vmul.f32 %v4573_v22, %v1170_v32  ;;  %v2020_v41 = vmul.f32 %v4575_v19, %v1170_v32 }
 0x25f   :  { %v3691_v15 = vpop.eup %3690  ;;  %v2468_v62 = vadd.f32 %v3685_v53, %v2210_v39  ;;  %3710 = vpow2.f32 %v1915_v31  ;;  %v2278_v33 = vmul.f32 %v4577_v43, %v1170_v32  ;;  %v2536_v56 = vmul.f32 %v4579_v47, %v1170_v32  ;;  %v5821_v53 = vld [vmem:[#allocation107_spill] sm:$0xff] }
 0x260   :  { %v3693_v37 = vpop.eup %3692  ;;  %v1984_v13 = vadd.f32 %v3691_v15, %v3689_v60  ;;  %3712 = vpow2.f32 %v2173_v20  ;;  %v1595_v57 = vmul.f32 1.442695, %v1504_v4  ;;  %v1853_v48 = vmul.f32 1.442695, %v1762_v63  ;;  %v5822_v63 = vld [vmem:[#allocation53_spill] sm:$0xff] }
 0x261   :  { %v3695_v11 = vpop.eup %3694  ;;  %v2726_v40 = vadd.f32 %v3687_v6, %v2468_v62  ;;  %3714 = vpow2.f32 %v2431_v30  ;;  %v2111_v23 = vmul.f32 1.442695, %v2020_v41  ;;  %v2369_v2 = vmul.f32 1.442695, %v2278_v33  ;;  %v5824_v33 = vld [vmem:[#allocation29_spill] sm:$0xff] }
 0x262   :  { %v3697_v10 = vpop.eup %3696  ;;  %v2242_v52 = vadd.f32 %v3693_v37, %v1984_v13  ;;  %3716 = vpow2.f32 %v2689_v58  ;;  %v1138_v1 = vsub.f32 %v5819_v5, %v1074_v16  ;;  %v2627_v0 = vmul.f32 1.442695, %v2536_v56 }
 0x263   :  { %v3699_v12 = vpop.eup %3698  ;;  %v2854_v35 = vmul.f32 %v2726_v40, %v5818_v54  ;;  %3718 = vpow2.f32 %v1595_v57  ;;  %v1107_v14 = vsub.f32 %v5820_v21, %v1043_v26  ;;  %v1075_v18 = vmul.f32 2.0, %v5217_v3  ;;  %v5823_v40 = vld [vmem:[#allocation75_spill] sm:$0xff] }
 0x264   :  { %v3701_v9 = vpop.eup %3700  ;;  %v2500_v55 = vadd.f32 %v3695_v11, %v2242_v52  ;;  %3720 = vpow2.f32 %v1853_v48  ;;  %v1202_v8 = vmax.f32 %v1138_v1, 0.0  ;;  %v1044_v7 = vmul.f32 2.0, %v5230_v34 }
 0x265   :  { %v3703_v50 = vpop.eup %3702  ;;  %v1953_v45 = vadd.f32 %v3701_v9, %v3699_v12  ;;  %3722 = vpow2.f32 %v2111_v23  ;;  %2982 = vst [vmem:[%s5599_s7 + $0xc8] sm:$0xff] %v2854_v35  ;;  %v1171_v4 = vmax.f32 %v1107_v14, 0.0  ;;  %v1139_v11 = vsub.f32 %v5822_v63, %v1075_v18 }
 0x266   :  { %v3705_v49 = vpop.eup %3704  ;;  %v2758_v59 = vadd.f32 %v3697_v10, %v2500_v55  ;;  %3724 = vpow2.f32 %v2369_v2  ;;  %v1536_v25 = vmul.f32 %v4571_v44, %v1202_v8  ;;  %v1794_v27 = vmul.f32 %v4573_v22, %v1202_v8 }
 0x267   :  { %v3707_v38 = vpop.eup %3706  ;;  %v2211_v24 = vadd.f32 %v3703_v50, %v1953_v45  ;;  %3726 = vpow2.f32 %v2627_v0  ;;  %v2052_v31 = vmul.f32 %v4575_v19, %v1202_v8  ;;  %v2310_v29 = vmul.f32 %v4577_v43, %v1202_v8 }
 0x268   :  { %v3709_v17 = vpop.eup %3708  ;;  %v2886_v42 = vmul.f32 %v2758_v59, %v5821_v53  ;;  %v2568_v60 = vmul.f32 %v4579_v47, %v1202_v8  ;;  %v1659_v30 = vmul.f32 1.442695, %v1536_v25  ;;  %v1917_v34 = vmul.f32 1.442695, %v1794_v27 }
 0x269   :  { %v3711_v6 = vpop.eup %3710  ;;  %v2469_v39 = vadd.f32 %v3705_v49, %v2211_v24  ;;  %v2175_v62 = vmul.f32 1.442695, %v2052_v31  ;;  %v2433_v58 = vmul.f32 1.442695, %v2310_v29  ;;  %v1108_v10 = vsub.f32 %v5824_v33, %v1044_v7  ;;  %v5825_v49 = vld [vmem:[#allocation104_spill] sm:$0xff]  ;;  %v5826_v24 = vld [vmem:[#allocation54_spill] sm:$0xff] }
 0x26a   :  { %v3713_v20 = vpop.eup %3712  ;;  %v1985_v3 = vadd.f32 %v3711_v6, %v3709_v17  ;;  %v2691_v16 = vmul.f32 1.442695, %v2568_v60  ;;  %3014 = vst [vmem:[%s5599_s7 + $0x1c8] sm:$0xff] %v2886_v42  ;;  %3728 = vpow2.f32 %v1659_v30  ;;  %v5489_v52 = vmul.f32 2.0, %v5243_v51 }
 0x26b   :  { %v3715_v32 = vpop.eup %3714  ;;  %v2727_v15 = vadd.f32 %v3707_v38, %v2469_v39  ;;  %3730 = vpow2.f32 %v1917_v34  ;;  %v1505_v12 = vmul.f32 %v4571_v44, %v1171_v4  ;;  %v1763_v54 = vmul.f32 %v4573_v22, %v1171_v4 }
 0x26c   :  { %v3717_v37 = vpop.eup %3716  ;;  %v2243_v13 = vadd.f32 %v3713_v20, %v1985_v3  ;;  %3732 = vpow2.f32 %v2175_v62  ;;  %v2021_v23 = vmul.f32 %v4575_v19, %v1171_v4  ;;  %v2279_v2 = vmul.f32 %v4577_v43, %v1171_v4 }
 0x26d   :  { %v2855_v41 = vmul.f32 %v2727_v15, %v5823_v40  ;;  %v3719_v57 = vpop.eup %3718  ;;  %3734 = vpow2.f32 %v2433_v58  ;;  %v1597_v5 = vmul.f32 1.442695, %v1505_v12  ;;  %v1855_v1 = vmul.f32 1.442695, %v1763_v54 }
 0x26e   :  { %v2501_v48 = vadd.f32 %v3715_v32, %v2243_v13  ;;  %v3721_v35 = vpop.eup %3720  ;;  %3736 = vpow2.f32 %v2691_v16  ;;  %v2113_v26 = vmul.f32 1.442695, %v2021_v23  ;;  %v2371_v50 = vmul.f32 1.442695, %v2279_v2  ;;  %v5827_v32 = vld [vmem:[#allocation76_spill] sm:$0xff] }
 0x26f   :  { %v3723_v56 = vpop.eup %3722  ;;  %v1954_v55 = vadd.f32 %v3721_v35, %v3719_v57  ;;  %2983 = vst [vmem:[%s5599_s7 + $0xd0] sm:$0xff] %v2855_v41  ;;  %v2537_v45 = vmul.f32 %v4579_v47, %v1171_v4  ;;  %3738 = vpow2.f32 %v1597_v5  ;;  %v1203_v21 = vmax.f32 %v1139_v11, 0.0 }
 0x270   :  { %v2759_v9 = vadd.f32 %v3717_v37, %v2501_v48  ;;  %v3725_v51 = vpop.eup %3724  ;;  %3740 = vpow2.f32 %v1855_v1  ;;  %v1172_v38 = vmax.f32 %v1108_v10, 0.0  ;;  %v1140_v18 = vsub.f32 %v5826_v24, %v5489_v52 }
 0x271   :  { %v3727_v0 = vpop.eup %3726  ;;  %v2212_v8 = vadd.f32 %v3723_v56, %v1954_v55  ;;  %v2629_v14 = vmul.f32 1.442695, %v2537_v45  ;;  %3742 = vpow2.f32 %v2113_v26  ;;  %v1537_v17 = vmul.f32 %v4571_v44, %v1203_v21 }
 0x272   :  { %v2887_v59 = vmul.f32 %v2759_v9, %v5825_v49  ;;  %3744 = vpow2.f32 %v2371_v50  ;;  %v1795_v53 = vmul.f32 %v4573_v22, %v1203_v21  ;;  %v2053_v42 = vmul.f32 %v4575_v19, %v1203_v21 }
 0x273   :  { %v2470_v7 = vadd.f32 %v3725_v51, %v2212_v8  ;;  %v2311_v25 = vmul.f32 %v4577_v43, %v1203_v21  ;;  %3746 = vpow2.f32 %v2629_v14  ;;  %v1661_v39 = vmul.f32 1.442695, %v1537_v17  ;;  %v5829_v17 = vld [vmem:[#allocation26_spill] sm:$0xff] }
 0x274   :  { %v3729_v27 = vpop.eup %3728  ;;  %3015 = vst [vmem:[%s5599_s7 + $0x1d0] sm:$0xff] %v2887_v59  ;;  %v2569_v31 = vmul.f32 %v4579_v47, %v1203_v21  ;;  %v1919_v60 = vmul.f32 1.442695, %v1795_v53  ;;  %v2177_v20 = vmul.f32 1.442695, %v2053_v42  ;;  %v1506_v30 = vmul.f32 %v4571_v44, %v1172_v38  ;;  %v5830_v42 = vld [vmem:[#allocation51_spill] sm:$0xff] }
 0x275   :  { %v2728_v6 = vadd.f32 %v3727_v0, %v2470_v7  ;;  %v3731_v29 = vpop.eup %3730  ;;  %v2435_v3 = vmul.f32 1.442695, %v2311_v25  ;;  %3748 = vpow2.f32 %v1661_v39  ;;  %v1764_v13 = vmul.f32 %v4573_v22, %v1172_v38  ;;  %v5828_v0 = vld [vmem:[#allocation105_spill] sm:$0xff]  ;;  %v5527_v7 = vpop.permute.xlu0 %1392 }
 0x276   :  { %v3733_v34 = vpop.eup %3732  ;;  %v1986_v62 = vadd.f32 %v3731_v29, %v3729_v27  ;;  %v2693_v58 = vmul.f32 1.442695, %v2569_v31  ;;  %3750 = vpow2.f32 %v1919_v60  ;;  %v1599_v37 = vmul.f32 1.442695, %v1506_v30  ;;  %v5831_v30 = vld [vmem:[#allocation27_spill] sm:$0xff] }
 0x277   :  { %v2856_v15 = vmul.f32 %v2728_v6, %v5827_v32  ;;  %v3735_v16 = vpop.eup %3734  ;;  %v2022_v4 = vmul.f32 %v4575_v19, %v1172_v38  ;;  %3752 = vpow2.f32 %v2177_v20  ;;  %v2280_v40 = vmul.f32 %v4577_v43, %v1172_v38 }
 0x278   :  { %v3737_v63 = vpop.eup %3736  ;;  %v2244_v11 = vadd.f32 %v3733_v34, %v1986_v62  ;;  %3754 = vpow2.f32 %v2435_v3  ;;  %v1857_v41 = vmul.f32 1.442695, %v1764_v13  ;;  %v2538_v10 = vmul.f32 %v4579_v47, %v1172_v38 }
 0x279   :  { %v2115_v33 = vmul.f32 1.442695, %v2022_v4  ;;  %v3739_v52 = vpop.eup %3738  ;;  %2984 = vst [vmem:[%s5599_s7 + $0xd8] sm:$0xff] %v2856_v15  ;;  %3756 = vpow2.f32 %v2693_v58  ;;  %v2373_v48 = vmul.f32 1.442695, %v2280_v40  ;;  %v1204_v12 = vmax.f32 %v1140_v18, 0.0 }
 0x27a   :  { %v2502_v57 = vadd.f32 %v3735_v16, %v2244_v11  ;;  %v3741_v54 = vpop.eup %3740  ;;  %3758 = vpow2.f32 %v1599_v37  ;;  %v2631_v35 = vmul.f32 1.442695, %v2538_v10  ;;  %v1045_v23 = vmul.f32 2.0, %v5259_v28  ;;  %v5832_v15 = vld [vmem:[#allocation55_spill] sm:$0xff] }
 0x27b   :  { %v1077_v2 = vmul.f32 2.0, %v5272_v36  ;;  %v3743_v56 = vpop.eup %3742  ;;  %v1955_v55 = vadd.f32 %v3741_v54, %v3739_v52  ;;  %3760 = vpow2.f32 %v1857_v41  ;;  %v1538_v5 = vmul.f32 %v4571_v44, %v1204_v12 }
 0x27c   :  { %v2760_v9 = vadd.f32 %v3737_v63, %v2502_v57  ;;  %v3745_v51 = vpop.eup %3744  ;;  %3762 = vpow2.f32 %v2115_v33  ;;  %v1796_v1 = vmul.f32 %v4573_v22, %v1204_v12  ;;  %v2054_v26 = vmul.f32 %v4575_v19, %v1204_v12 }
 0x27d   :  { %v2312_v50 = vmul.f32 %v4577_v43, %v1204_v12  ;;  %v3747_v45 = vpop.eup %3746  ;;  %v2213_v28 = vadd.f32 %v3743_v56, %v1955_v55  ;;  %3764 = vpow2.f32 %v2373_v48  ;;  %v1663_v36 = vmul.f32 1.442695, %v1538_v5 }
 0x27e   :  { %v2888_v49 = vmul.f32 %v2760_v9, %v5828_v0  ;;  %3766 = vpow2.f32 %v2631_v35  ;;  %v1921_v59 = vmul.f32 1.442695, %v1796_v1  ;;  %v2179_v8 = vmul.f32 1.442695, %v2054_v26 }
 0x27f   :  { %v2437_v21 = vmul.f32 1.442695, %v2312_v50  ;;  %v3749_v14 = vpop.eup %3748  ;;  %v2471_v38 = vadd.f32 %v3745_v51, %v2213_v28  ;;  %3768 = vpow2.f32 %v1663_v36  ;;  %v2570_v24 = vmul.f32 %v4579_v47, %v1204_v12 }
 0x280   :  { %v3751_v18 = vpop.eup %3750  ;;  %3770 = vpow2.f32 %v1921_v59  ;;  %v1109_v53 = vsub.f32 %v5829_v17, %v1045_v23  ;;  %v1141_v25 = vsub.f32 %v5830_v42, %v1077_v2  ;;  %v1046_v27 = vmul.f32 2.0, %v5292_v46  ;;  %3016 = vst [vmem:[%s5599_s7 + $0x1d8] sm:$0xff] %v2888_v49  ;;  %v5833_v46 = vld [vmem:[#allocation81_spill] sm:$0xff]  ;;  %v5834_v42 = vld [vmem:[#allocation52_spill] sm:$0xff] }
 0x281   :  { %v3753_v6 = vpop.eup %3752  ;;  %v2729_v39 = vadd.f32 %v3747_v45, %v2471_v38  ;;  %v1987_v31 = vadd.f32 %v3751_v18, %v3749_v14  ;;  %3772 = vpow2.f32 %v2179_v8  ;;  %v2695_v29 = vmul.f32 1.442695, %v2570_v24 }
 0x282   :  { %v3755_v60 = vpop.eup %3754  ;;  %3774 = vpow2.f32 %v2437_v21  ;;  %v1173_v20 = vmax.f32 %v1109_v53, 0.0  ;;  %v1205_v3 = vmax.f32 %v1141_v25, 0.0  ;;  %v1110_v34 = vsub.f32 %v5831_v30, %v1046_v27  ;;  %v5835_v27 = vld [vmem:[#allocation82_spill] sm:$0xff] }
 0x283   :  { %v3757_v32 = vpop.eup %3756  ;;  %v1471_v62 = vmul.f32 %v5832_v15, %v5527_v7  ;;  %v2857_v58 = vmul.f32 %v2729_v39, %v5833_v46  ;;  %v2245_v16 = vadd.f32 %v3753_v6, %v1987_v31  ;;  %3776 = vpow2.f32 %v2695_v29 }
 0x284   :  { %v3759_v37 = vpop.eup %3758  ;;  %v1507_v13 = vmul.f32 %v4571_v44, %v1173_v20  ;;  %v1765_v4 = vmul.f32 %v4573_v22, %v1173_v20  ;;  %v2023_v63 = vmul.f32 %v4575_v19, %v1173_v20  ;;  %v2281_v11 = vmul.f32 %v4577_v43, %v1173_v20 }
 0x285   :  { %v3761_v40 = vpop.eup %3760  ;;  %v2503_v41 = vadd.f32 %v3755_v60, %v2245_v16  ;;  %v2539_v33 = vmul.f32 %v4579_v47, %v1173_v20  ;;  %v1539_v10 = vmul.f32 %v4571_v44, %v1205_v3  ;;  %2985 = vst [vmem:[%s5599_s7 + $0xe0] sm:$0xff] %v2857_v58  ;;  %v1078_v9 = vmul.f32 2.0, %v5299_v61 }
 0x286   :  { %v3763_v52 = vpop.eup %3762  ;;  %v1956_v57 = vadd.f32 %v3761_v40, %v3759_v37  ;;  %v1601_v48 = vmul.f32 1.442695, %v1507_v13  ;;  %v1859_v12 = vmul.f32 1.442695, %v1765_v4  ;;  %v2117_v54 = vmul.f32 1.442695, %v2023_v63 }
 0x287   :  { %v3765_v35 = vpop.eup %3764  ;;  %v2761_v23 = vadd.f32 %v3757_v32, %v2503_v41  ;;  %v2375_v2 = vmul.f32 1.442695, %v2281_v11  ;;  %v2633_v56 = vmul.f32 1.442695, %v2539_v33  ;;  %v1797_v51 = vmul.f32 %v4573_v22, %v1205_v3  ;;  %v5836_v32 = vld [vmem:[#allocation56_spill] sm:$0xff] }
 0x288   :  { %v3767_v55 = vpop.eup %3766  ;;  %v2214_v5 = vadd.f32 %v3763_v52, %v1956_v57  ;;  %3778 = vpow2.f32 %v1601_v48  ;;  %v2055_v1 = vmul.f32 %v4575_v19, %v1205_v3  ;;  %v1665_v45 = vmul.f32 1.442695, %v1539_v10 }
 0x289   :  { %v3769_v26 = vpop.eup %3768  ;;  %v2889_v50 = vmul.f32 %v2761_v23, %v1471_v62  ;;  %3780 = vpow2.f32 %v1859_v12  ;;  %v2313_v0 = vmul.f32 %v4577_v43, %v1205_v3  ;;  %v1923_v36 = vmul.f32 1.442695, %v1797_v51 }
 0x28a   :  { %v3771_v49 = vpop.eup %3770  ;;  %v2472_v28 = vadd.f32 %v3765_v35, %v2214_v5  ;;  %3782 = vpow2.f32 %v2117_v54  ;;  %v2571_v61 = vmul.f32 %v4579_v47, %v1205_v3  ;;  %v2181_v38 = vmul.f32 1.442695, %v2055_v1 }
 0x28b   :  { %v3773_v59 = vpop.eup %3772  ;;  %v1988_v8 = vadd.f32 %v3771_v49, %v3769_v26  ;;  %3784 = vpow2.f32 %v2375_v2  ;;  %v1174_v24 = vmax.f32 %v1110_v34, 0.0  ;;  %3017 = vst [vmem:[%s5599_s7 + $0x1e0] sm:$0xff] %v2889_v50  ;;  %v2439_v53 = vmul.f32 1.442695, %v2313_v0  ;;  %v5837_v0 = vld [vmem:[#allocation79_spill] sm:$0xff] }
 0x28c   :  { %v3775_v21 = vpop.eup %3774  ;;  %v2730_v14 = vadd.f32 %v3767_v55, %v2472_v28  ;;  %3786 = vpow2.f32 %v2633_v56  ;;  %v1142_v25 = vsub.f32 %v5834_v42, %v1078_v9  ;;  %v2697_v60 = vmul.f32 1.442695, %v2571_v61 }
 0x28d   :  { %v3777_v18 = vpop.eup %3776  ;;  %v2246_v17 = vadd.f32 %v3773_v59, %v1988_v8  ;;  %3788 = vpow2.f32 %v1665_v45  ;;  %v1508_v39 = vmul.f32 %v4571_v44, %v1174_v24  ;;  %v1766_v31 = vmul.f32 %v4573_v22, %v1174_v24  ;;  %v1398_v45 = vpop.permute.xlu1 %1397 }
 0x28e   :  { %v2858_v6 = vmul.f32 %v2730_v14, %v5835_v27  ;;  %3790 = vpow2.f32 %v1923_v36  ;;  %v2024_v20 = vmul.f32 %v4575_v19, %v1174_v24  ;;  %v2282_v3 = vmul.f32 %v4577_v43, %v1174_v24 }
 0x28f   :  { %v2504_v29 = vadd.f32 %v3775_v21, %v2246_v17  ;;  %3792 = vpow2.f32 %v2181_v38  ;;  %v1603_v30 = vmul.f32 1.442695, %v1508_v39  ;;  %v1861_v34 = vmul.f32 1.442695, %v1766_v31 }
 0x290   :  { %v1472_v62 = vmul.f32 %v5836_v32, %v5527_v7  ;;  %3794 = vpow2.f32 %v2439_v53  ;;  %v2119_v58 = vmul.f32 1.442695, %v2024_v20  ;;  %2986 = vst [vmem:[%s5599_s7 + $0xe8] sm:$0xff] %v2858_v6  ;;  %v2377_v37 = vmul.f32 1.442695, %v2282_v3 }
 0x291   :  { %v2762_v46 = vadd.f32 %v3777_v18, %v2504_v29  ;;  %3796 = vpow2.f32 %v1603_v30  ;;  %v2540_v13 = vmul.f32 %v4579_v47, %v1174_v24  ;;  %v1206_v4 = vmax.f32 %v1142_v25, 0.0 }
 0x292   :  { %v3779_v16 = vpop.eup %3778  ;;  %3798 = vpow2.f32 %v1861_v34  ;;  %v1473_v61 = vmul.f32 %v5832_v15, %v1398_v45  ;;  %v5838_v15 = vld [vmem:[#allocation80_spill] sm:$0xff]  ;;  %v1474_v3 = vmul.f32 %v5836_v32, %v1398_v45 }
 0x293   :  { %v3781_v63 = vpop.eup %3780  ;;  %v2890_v11 = vmul.f32 %v2762_v46, %v1472_v62  ;;  %3800 = vpow2.f32 %v2697_v60  ;;  %v2635_v7 = vmul.f32 1.442695, %v2540_v13  ;;  %v1540_v33 = vmul.f32 %v4571_v44, %v1206_v4 }
 0x294   :  { %v3783_v40 = vpop.eup %3782  ;;  %v1957_v41 = vadd.f32 %v3781_v63, %v3779_v16  ;;  %3802 = vpow2.f32 %v2119_v58  ;;  %v1798_v52 = vmul.f32 %v4573_v22, %v1206_v4  ;;  %v2056_v57 = vmul.f32 %v4575_v19, %v1206_v4 }
 0x295   :  { %v3785_v10 = vpop.eup %3784  ;;  %3804 = vpow2.f32 %v2377_v37  ;;  %v1667_v54 = vmul.f32 1.442695, %v1540_v33  ;;  %v2314_v35 = vmul.f32 %v4577_v43, %v1206_v4  ;;  %3018 = vst [vmem:[%s5599_s7 + $0x1e8] sm:$0xff] %v2890_v11  ;;  %v2572_v56 = vmul.f32 %v4579_v47, %v1206_v4 }
 0x296   :  { %v3787_v48 = vpop.eup %3786  ;;  %v2215_v12 = vadd.f32 %v3783_v40, %v1957_v41  ;;  %3806 = vpow2.f32 %v2635_v7  ;;  %v1925_v2 = vmul.f32 1.442695, %v1798_v52  ;;  %v2183_v44 = vmul.f32 1.442695, %v2056_v57 }
 0x297   :  { %v3789_v23 = vpop.eup %3788  ;;  %3808 = vpow2.f32 %v1667_v54  ;;  %v2441_v55 = vmul.f32 1.442695, %v2314_v35  ;;  %v2699_v26 = vmul.f32 1.442695, %v2572_v56 }
 0x298   :  { %v3791_v9 = vpop.eup %3790  ;;  %v2473_v22 = vadd.f32 %v3785_v10, %v2215_v12  ;;  %3810 = vpow2.f32 %v1925_v2 }
 0x299   :  { %v1989_v19 = vadd.f32 %v3791_v9, %v3789_v23  ;;  %v3793_v5 = vpop.eup %3792  ;;  %3812 = vpow2.f32 %v2183_v44 }
 0x29a   :  { %v2731_v51 = vadd.f32 %v3787_v48, %v2473_v22  ;;  %v3795_v1 = vpop.eup %3794  ;;  %3814 = vpow2.f32 %v2441_v55 }
 0x29b   :  { %v2247_v43 = vadd.f32 %v3793_v5, %v1989_v19  ;;  %v3797_v50 = vpop.eup %3796  ;;  %3816 = vpow2.f32 %v2699_v26 }
 0x29c   :  { %v2859_v49 = vmul.f32 %v2731_v51, %v5837_v0  ;;  %v3799_v28 = vpop.eup %3798 }
 0x29d   :  { %v2505_v36 = vadd.f32 %v3795_v1, %v2247_v43  ;;  %v3801_v47 = vpop.eup %3800  ;;  %v1958_v59 = vadd.f32 %v3799_v28, %v3797_v50 }
 0x29e   :  { %v3803_v8 = vpop.eup %3802  ;;  %2987 = vst [vmem:[%s5599_s7 + $0xf0] sm:$0xff] %v2859_v49 }
 0x29f   :  { %v2763_v21 = vadd.f32 %v3801_v47, %v2505_v36  ;;  %v3805_v14 = vpop.eup %3804  ;;  %v2216_v38 = vadd.f32 %v3803_v8, %v1958_v59 }
 0x2a0   :  { %v3807_v24 = vpop.eup %3806 }
 0x2a1   :  { %v2891_v18 = vmul.f32 %v2763_v21, %v1473_v61  ;;  %v3809_v17 = vpop.eup %3808  ;;  %v2474_v53 = vadd.f32 %v3805_v14, %v2216_v38 }
 0x2a2   :  { %v3811_v42 = vpop.eup %3810 }
 0x2a3   :  { %v2732_v25 = vadd.f32 %v3807_v24, %v2474_v53  ;;  %v1990_v27 = vadd.f32 %v3811_v42, %v3809_v17  ;;  %v3813_v6 = vpop.eup %3812  ;;  %3019 = vst [vmem:[%s5599_s7 + $0x1f0] sm:$0xff] %v2891_v18 }
 0x2a4   :  { %v3815_v29 = vpop.eup %3814 }
 0x2a5   :  { %v2860_v39 = vmul.f32 %v2732_v25, %v5838_v15  ;;  %v2248_v31 = vadd.f32 %v3813_v6, %v1990_v27  ;;  %v3817_v20 = vpop.eup %3816 }
 0x2a7   :  { %v2506_v60 = vadd.f32 %v3815_v29, %v2248_v31  ;;  %2988 = vst [vmem:[%s5599_s7 + $0xf8] sm:$0xff] %v2860_v39 }
 0x2a9   :  { %v2764_v30 = vadd.f32 %v3817_v20, %v2506_v60 }
 0x2ab   :  { %v2892_v34 = vmul.f32 %v2764_v30, %v1474_v3 }
 0x2ad   :  { %3020 = vst [vmem:[%s5599_s7 + $0x1f8] sm:$0xff] %v2892_v34 }

</bundles_post_ra>
